<compile_context>
chip_gen: v5e
topology: v5e:2x2
jax: 0.10.0
libtpu: 0.0.40
codegen_flags: <defaults>
</compile_context>

<pallas_src>
import functools

import jax
import jax.numpy as jnp
from jax.experimental import pallas as pl
from jax.experimental.pallas import tpu as pltpu

EPS = 1e-5                    # PyTorch LayerNorm / layer_norm_eps default
MATMUL_DTYPE = jnp.bfloat16   # MXU operand dtype (accumulation is f32)
NEG_BIG = -1e30               # bias for lane-padding of the classifier head

_PRO_NAMES = ('emb_w', 'emb_b', 'conv_w', 'conv_b', 'pe', 'ln_w', 'ln_b')
_LAYER_NAMES = ('wqkv', 'bqkv', 'wo', 'bo', 'ln1w', 'ln1b',
                'w1', 'b1', 'w2', 'b2', 'ln2w', 'ln2b')
_EPI_NAMES = ('enc_norm_w', 'enc_norm_b', 'fc_w', 'fc_b')


# ----------------------------------------------------------------------------
# in-kernel helpers (always f32)
# ----------------------------------------------------------------------------
def _layernorm(x, w, b):
    mu = jnp.mean(x, axis=-1, keepdims=True)
    var = jnp.mean((x - mu) ** 2, axis=-1, keepdims=True)
    return (x - mu) * jax.lax.rsqrt(var + EPS) * w + b


def _softmax(x):
    m = jnp.max(x, axis=-1, keepdims=True)
    e = jnp.exp(x - m)
    # divide -> EUP reciprocal + VPU multiply (frees VALU slots)
    return e * pl.reciprocal(jnp.sum(e, axis=-1, keepdims=True), approx=True)


def _vmem_limit_bytes():
    """~3/4 of physical VMEM: ~48 MiB on v7x (64 MiB), ~96 MiB on v5e/v6e."""
    try:
        cap = int(pltpu.get_tpu_info().vmem_capacity_bytes)
        if cap <= 0:
            raise ValueError("bad vmem capacity")
    except Exception:
        cap = 64 * 1024 * 1024
    return max(32 * 1024 * 1024, min(cap * 3 // 4, 100 * 1024 * 1024))


# ----------------------------------------------------------------------------
# Fused whole-model kernel.  grid = (batch_tiles, num_layers)
#   step (b, 0)      : embedding Linear+ReLU, Conv1d(im2col), +pe, LayerNorm
#   step (b, l)      : encoder layer l (weights streamed per layer)
#   step (b, L-1)    : final encoder LayerNorm + fc + log_softmax -> output
# Activations carried across layer steps in the (bt*S, D) VMEM scratch.
# ----------------------------------------------------------------------------
def _model_kernel(
        x_ref,
        emb_w_ref, emb_b_ref, conv_w_ref, conv_b_ref, pe_ref,
        ln_w_ref, ln_b_ref,
        wqkv_ref, bqkv_ref, wo_ref, bo_ref, ln1w_ref, ln1b_ref,
        w1_ref, b1_ref, w2_ref, b2_ref, ln2w_ref, ln2b_ref,
        encn_w_ref, encn_b_ref, fc_w_ref, fc_b_ref,
        o_ref,
        xs_ref,
        *, nhead, seq_len, d_model, block_batch):
    S, D, H, bt = seq_len, d_model, nhead, block_batch
    hd = D // H
    R = bt * S                               # matmul rows per grid step
    scale = 1.0 / float(hd) ** 0.5
    cdt = emb_w_ref.dtype                    # MXU operand dtype (bf16 / f32)

    layer = pl.program_id(1)
    n_layers = pl.num_programs(1)

    # ---- prologue (layer == 0): embedding + conv + pe + LayerNorm ----------
    @pl.when(layer == 0)
    def _prologue():
        xb = x_ref[...]                                  # (bt, IN, S) f32
        xb = jnp.swapaxes(xb, 1, 2)                      # (bt, S, IN)
        x2 = xb.reshape(R, xb.shape[-1])                 # (R, IN)
        emb = jnp.dot(x2.astype(cdt), emb_w_ref[...],
                      preferred_element_type=jnp.float32) + emb_b_ref[...]
        emb = jnp.maximum(emb, 0.0)                      # ReLU (Dropout = id)

        # Conv1d(k=5, padding=2) as ONE im2col matmul (R, K*D) @ (K*D, D)
        K = conv_w_ref.shape[0] // D
        pad = (K - 1) // 2
        emb3 = emb.reshape(bt, S, D)
        zp = jnp.zeros((bt, pad, D), jnp.float32)
        embp = jnp.concatenate([zp, emb3, zp], axis=1)   # (bt, S+2p, D)
        cols = [embp[:, k:k + S, :] for k in range(K)]
        im2col = jnp.concatenate(cols, axis=-1).reshape(R, K * D)
        y = jnp.dot(im2col.astype(cdt), conv_w_ref[...],
                    preferred_element_type=jnp.float32)
        y = y + conv_b_ref[...] + pe_ref[...]            # pe: same every pos
        xs_ref[...] = _layernorm(y, ln_w_ref[...], ln_b_ref[...])

    # ---- one post-norm TransformerEncoderLayer (this grid step's layer) ----
    xs = xs_ref[...]                                     # (R, D) f32

    # fused QKV projection: one (R, D) @ (D, 3D) matmul
    qkv = jnp.dot(xs.astype(cdt), wqkv_ref[0],
                  preferred_element_type=jnp.float32) + bqkv_ref[0]
    q = qkv[:, :D] * scale
    k_ = qkv[:, D:2 * D]
    v = qkv[:, 2 * D:]

    def to_heads(t):                                     # (R, D)->(H*bt, S, hd)
        t = t.reshape(R, H, hd)
        t = pltpu.einshape('nhd->hnd', t)                # (H, R, hd)
        return t.reshape(H * bt, S, hd)                  # pure reshape

    q3, k3, v3 = to_heads(q), to_heads(k_), to_heads(v)
    sc = jnp.einsum('nqd,nkd->nqk', q3.astype(cdt), k3.astype(cdt),
                    preferred_element_type=jnp.float32)  # (H*bt, S, S)
    p = _softmax(sc)
    ctx = jnp.einsum('nqk,nkd->nqd', p.astype(cdt), v3.astype(cdt),
                     preferred_element_type=jnp.float32)  # (H*bt, S, hd)
    ctx = pltpu.einshape('hnd->nhd', ctx.reshape(H, R, hd)).reshape(R, D)

    # output projection + residual + norm1
    attn = jnp.dot(ctx.astype(cdt), wo_ref[0],
                   preferred_element_type=jnp.float32) + bo_ref[0]
    xs = _layernorm(xs + attn, ln1w_ref[0], ln1b_ref[0])

    # feed-forward (ReLU) + residual + norm2
    h1 = jnp.maximum(
        jnp.dot(xs.astype(cdt), w1_ref[0],
                preferred_element_type=jnp.float32) + b1_ref[0], 0.0)
    ff = jnp.dot(h1.astype(cdt), w2_ref[0],
                 preferred_element_type=jnp.float32) + b2_ref[0]
    xs = _layernorm(xs + ff, ln2w_ref[0], ln2b_ref[0])
    xs_ref[...] = xs

    # ---- epilogue (last layer): final norm + fc + log_softmax --------------
    @pl.when(layer == n_layers - 1)
    def _epilogue():
        xl = xs.reshape(bt, S, D)[:, S - 1, :]           # last position (bt, D)
        xl = _layernorm(xl, encn_w_ref[...], encn_b_ref[...])
        # fc is lane-padded to >=128 classes; padded bias = -1e30 keeps the
        # log_softmax over the real classes exact.
        logits = jnp.dot(xl.astype(cdt), fc_w_ref[...],
                         preferred_element_type=jnp.float32) + fc_b_ref[...]
        m = jnp.max(logits, axis=-1, keepdims=True)
        s0 = logits - m
        o_ref[0] = s0 - jnp.log(jnp.sum(jnp.exp(s0), axis=-1, keepdims=True))


# ----------------------------------------------------------------------------
# Parameters (deterministic, PyTorch-shaped) + one-time weight preparation
# ----------------------------------------------------------------------------
def init_params(key, *, input_size, d_model, nhead, num_layers, dff,
                num_classes):
    keys = iter(jax.random.split(key, 64))

    def nrm(*shape, scale=0.05):
        return scale * jax.random.normal(next(keys), shape, jnp.float32)

    p = {
        'emb_w': nrm(d_model, input_size),        # nn.Linear(input_size, d_model)
        'emb_b': nrm(d_model),
        'conv_w': nrm(d_model, d_model, 5),       # nn.Conv1d(d_model, d_model, 5)
        'conv_b': nrm(d_model),
        'pe': jax.random.normal(next(keys), (1, d_model), jnp.float32),
        'ln_w': jnp.ones((d_model,), jnp.float32),
        'ln_b': jnp.zeros((d_model,), jnp.float32),
        'enc_norm_w': jnp.ones((d_model,), jnp.float32),   # encoder final norm
        'enc_norm_b': jnp.zeros((d_model,), jnp.float32),
        'fc_w': nrm(num_classes, d_model),
        'fc_b': nrm(num_classes),
        'layers': [],
    }
    for _ in range(num_layers):
        p['layers'].append({
            'in_proj_w': nrm(3 * d_model, d_model),
            'in_proj_b': nrm(3 * d_model),
            'out_proj_w': nrm(d_model, d_model),
            'out_proj_b': nrm(d_model),
            'ln1_w': jnp.ones((d_model,), jnp.float32),
            'ln1_b': jnp.zeros((d_model,), jnp.float32),
            'lin1_w': nrm(dff, d_model),
            'lin1_b': nrm(dff),
            'lin2_w': nrm(d_model, dff),
            'lin2_b': nrm(d_model),
            'ln2_w': jnp.ones((d_model,), jnp.float32),
            'ln2_b': jnp.zeros((d_model,), jnp.float32),
        })
    return p


def prepare_params(p, matmul_dtype=MATMUL_DTYPE):
    """One-time weight prep: transposes, conv flattening, per-layer stacking,
    lane-padding of the classifier head.  Matmul matrices -> matmul_dtype;
    biases / norm params stay f32."""
    D = p['emb_w'].shape[0]
    K = p['conv_w'].shape[2]
    C = p['fc_w'].shape[0]
    md = matmul_dtype
    layers = p['layers']

    def stk(fn):
        return jnp.stack([fn(lp) for lp in layers])

    c_pad = ((C + 127) // 128) * 128          # lane-dense classifier output
    fc_w = p['fc_w'].T.astype(md)                                  # (D, C)
    fc_b = p['fc_b'].reshape(1, -1).astype(jnp.float32)
    if c_pad > C:
        fc_w = jnp.concatenate([fc_w, jnp.zeros((D, c_pad - C), md)], axis=1)
        fc_b = jnp.concatenate(
            [fc_b, jnp.full((1, c_pad - C), NEG_BIG, jnp.float32)], axis=1)

    return {
        'emb_w': p['emb_w'].T.astype(md),                          # (IN, D)
        'emb_b': p['emb_b'].reshape(1, -1),
        # (co, ci, k) -> (k, ci, co) -> (K*D, D); row index = k*D + ci
        'conv_w': jnp.transpose(p['conv_w'], (2, 1, 0)).reshape(K * D, D).astype(md),
        'conv_b': p['conv_b'].reshape(1, -1),
        'pe': p['pe'],
        'ln_w': p['ln_w'].reshape(1, -1), 'ln_b': p['ln_b'].reshape(1, -1),
        'wqkv': stk(lambda lp: lp['in_proj_w'].T).astype(md),      # (L, D, 3D)
        'bqkv': stk(lambda lp: lp['in_proj_b'].reshape(1, -1)),    # (L, 1, 3D)
        'wo':   stk(lambda lp: lp['out_proj_w'].T).astype(md),     # (L, D, D)
        'bo':   stk(lambda lp: lp['out_proj_b'].reshape(1, -1)),
        'ln1w': stk(lambda lp: lp['ln1_w'].reshape(1, -1)),
        'ln1b': stk(lambda lp: lp['ln1_b'].reshape(1, -1)),
        'w1':   stk(lambda lp: lp['lin1_w'].T).astype(md),         # (L, D, dff)
        'b1':   stk(lambda lp: lp['lin1_b'].reshape(1, -1)),
        'w2':   stk(lambda lp: lp['lin2_w'].T).astype(md),         # (L, dff, D)
        'b2':   stk(lambda lp: lp['lin2_b'].reshape(1, -1)),
        'ln2w': stk(lambda lp: lp['ln2_w'].reshape(1, -1)),
        'ln2b': stk(lambda lp: lp['ln2_b'].reshape(1, -1)),
        'enc_norm_w': p['enc_norm_w'].reshape(1, -1),
        'enc_norm_b': p['enc_norm_b'].reshape(1, -1),
        'fc_w': fc_w,                                              # (D, c_pad)
        'fc_b': fc_b,                                              # (1, c_pad)
    }


# ----------------------------------------------------------------------------
# Forward: one pallas_call, grid = (batch_tiles [parallel], layers [arbitrary])
# ----------------------------------------------------------------------------
def transformer_classifier_forward(x, pp, *, nhead, num_layers, num_classes,
                                   block_batch=None):
    B, input_size, S = x.shape
    D = pp['ln_w'].shape[-1]
    c_pad = pp['fc_w'].shape[-1]

    # Batch tile: aim for ~256 matmul rows per step (fills v6e/v7x's 256-wide
    # MXU, >=128 for v5e) while keeping >= 2 grid steps so v7x's 2 TensorCores
    # can split the "parallel" batch axis.
    if block_batch is None:
        bt = max(1, min(B, 256 // max(S, 1)))
        if B >= 2:
            bt = max(1, min(bt, B // 2))
    else:
        bt = max(1, min(block_batch, B))
    while B % bt:              # largest divisor of B not above the target
        bt -= 1
    n_bt = B // bt

    kern = functools.partial(_model_kernel, nhead=nhead, seq_len=S,
                             d_model=D, block_batch=bt)

    def _const_spec(a):        # resident across the whole grid
        n = a.ndim
        return pl.BlockSpec(a.shape, lambda b, l, n=n: (0,) * n)

    def _layer_spec(a):        # streamed per layer step (double-buffered)
        n = a.ndim
        return pl.BlockSpec((1,) + a.shape[1:],
                            lambda b, l, n=n: (l,) + (0,) * (n - 1))

    in_specs = ([pl.BlockSpec((bt, input_size, S), lambda b, l: (b, 0, 0))]
                + [_const_spec(pp[k]) for k in _PRO_NAMES]
                + [_layer_spec(pp[k]) for k in _LAYER_NAMES]
                + [_const_spec(pp[k]) for k in _EPI_NAMES])
    args = ((x,)
            + tuple(pp[k] for k in _PRO_NAMES)
            + tuple(pp[k] for k in _LAYER_NAMES)
            + tuple(pp[k] for k in _EPI_NAMES))

    out = pl.pallas_call(
        kern,
        out_shape=jax.ShapeDtypeStruct((n_bt, bt, c_pad), jnp.float32),
        grid=(n_bt, num_layers),
        in_specs=in_specs,
        out_specs=pl.BlockSpec((1, bt, c_pad), lambda b, l: (b, 0, 0)),
        scratch_shapes=[pltpu.VMEM((bt * S, D), jnp.float32)],   # carried acts
        compiler_params=pltpu.CompilerParams(
            dimension_semantics=("parallel", "arbitrary"),
            vmem_limit_bytes=_vmem_limit_bytes()),
    )(*args)

    return out.reshape(B, c_pad)[:, :num_classes]


if __name__ == "__main__":
    B, INPUT_SIZE, SEQ = 8, 16, 8
    D_MODEL, NHEAD, NUM_LAYERS = 32, 4, 2
    DFF = 2048                 # nn.Transformer default dim_feedforward
    NUM_CLASSES = 2

    key = jax.random.PRNGKey(0)
    kx, kp = jax.random.split(key)
    x = jax.random.normal(kx, (B, INPUT_SIZE, SEQ), jnp.float32)
    params = init_params(kp, input_size=INPUT_SIZE, d_model=D_MODEL,
                         nhead=NHEAD, num_layers=NUM_LAYERS, dff=DFF,
                         num_classes=NUM_CLASSES)
    prepped = prepare_params(params)        # weight prep done ONCE, not per fwd

    fwd = jax.jit(functools.partial(transformer_classifier_forward,
                                    nhead=NHEAD, num_layers=NUM_LAYERS,
                                    num_classes=NUM_CLASSES))
    out = jax.block_until_ready(fwd(x, prepped))
    assert out.shape == (B, NUM_CLASSES)
    print("KERNEL_OK")
</pallas_src>

<mosaic_0001>
module attributes {stable_mosaic.version = 11 : i64} {
  func.func @_model_kernel(%arg0: i32, %arg1: i32, %arg2: memref<4x16x8xf32, #tpu.memory_space<vmem>>, %arg3: memref<16x32xbf16, #tpu.memory_space<vmem>>, %arg4: memref<1x32xf32, #tpu.memory_space<vmem>>, %arg5: memref<160x32xbf16, #tpu.memory_space<vmem>>, %arg6: memref<1x32xf32, #tpu.memory_space<vmem>>, %arg7: memref<1x32xf32, #tpu.memory_space<vmem>>, %arg8: memref<1x32xf32, #tpu.memory_space<vmem>>, %arg9: memref<1x32xf32, #tpu.memory_space<vmem>>, %arg10: memref<1x32x96xbf16, #tpu.memory_space<vmem>>, %arg11: memref<1x1x96xf32, #tpu.memory_space<vmem>>, %arg12: memref<1x32x32xbf16, #tpu.memory_space<vmem>>, %arg13: memref<1x1x32xf32, #tpu.memory_space<vmem>>, %arg14: memref<1x1x32xf32, #tpu.memory_space<vmem>>, %arg15: memref<1x1x32xf32, #tpu.memory_space<vmem>>, %arg16: memref<1x32x2048xbf16, #tpu.memory_space<vmem>>, %arg17: memref<1x1x2048xf32, #tpu.memory_space<vmem>>, %arg18: memref<1x2048x32xbf16, #tpu.memory_space<vmem>>, %arg19: memref<1x1x32xf32, #tpu.memory_space<vmem>>, %arg20: memref<1x1x32xf32, #tpu.memory_space<vmem>>, %arg21: memref<1x1x32xf32, #tpu.memory_space<vmem>>, %arg22: memref<1x32xf32, #tpu.memory_space<vmem>>, %arg23: memref<1x32xf32, #tpu.memory_space<vmem>>, %arg24: memref<32x128xbf16, #tpu.memory_space<vmem>>, %arg25: memref<1x128xf32, #tpu.memory_space<vmem>>, %arg26: memref<1x4x128xf32, #tpu.memory_space<vmem>>, %arg27: memref<32x32xf32, #tpu.memory_space<vmem>>) attributes {dimension_semantics = [#tpu.dimension_semantics<parallel>, #tpu.dimension_semantics<arbitrary>], iteration_bounds = array<i64: 2, 2>, scalar_prefetch = 0 : i64, scratch_operands = 1 : i64, tpu.core_type = #tpu.core_type<tc>, window_params = [{transform_indices = @transform_0, window_bounds = array<i64: 4, 16, 8>}, {pipeline_mode = #tpu.pipeline_mode<synchronous>, transform_indices = @transform_1, window_bounds = array<i64: 16, 32>}, {pipeline_mode = #tpu.pipeline_mode<synchronous>, transform_indices = @transform_2, window_bounds = array<i64: 1, 32>}, {pipeline_mode = #tpu.pipeline_mode<synchronous>, transform_indices = @transform_3, window_bounds = array<i64: 160, 32>}, {pipeline_mode = #tpu.pipeline_mode<synchronous>, transform_indices = @transform_4, window_bounds = array<i64: 1, 32>}, {pipeline_mode = #tpu.pipeline_mode<synchronous>, transform_indices = @transform_5, window_bounds = array<i64: 1, 32>}, {pipeline_mode = #tpu.pipeline_mode<synchronous>, transform_indices = @transform_6, window_bounds = array<i64: 1, 32>}, {pipeline_mode = #tpu.pipeline_mode<synchronous>, transform_indices = @transform_7, window_bounds = array<i64: 1, 32>}, {transform_indices = @transform_8, window_bounds = array<i64: 1, 32, 96>}, {transform_indices = @transform_9, window_bounds = array<i64: 1, 1, 96>}, {transform_indices = @transform_10, window_bounds = array<i64: 1, 32, 32>}, {transform_indices = @transform_11, window_bounds = array<i64: 1, 1, 32>}, {transform_indices = @transform_12, window_bounds = array<i64: 1, 1, 32>}, {transform_indices = @transform_13, window_bounds = array<i64: 1, 1, 32>}, {transform_indices = @transform_14, window_bounds = array<i64: 1, 32, 2048>}, {transform_indices = @transform_15, window_bounds = array<i64: 1, 1, 2048>}, {transform_indices = @transform_16, window_bounds = array<i64: 1, 2048, 32>}, {transform_indices = @transform_17, window_bounds = array<i64: 1, 1, 32>}, {transform_indices = @transform_18, window_bounds = array<i64: 1, 1, 32>}, {transform_indices = @transform_19, window_bounds = array<i64: 1, 1, 32>}, {pipeline_mode = #tpu.pipeline_mode<synchronous>, transform_indices = @transform_20, window_bounds = array<i64: 1, 32>}, {pipeline_mode = #tpu.pipeline_mode<synchronous>, transform_indices = @transform_21, window_bounds = array<i64: 1, 32>}, {pipeline_mode = #tpu.pipeline_mode<synchronous>, transform_indices = @transform_22, window_bounds = array<i64: 32, 128>}, {pipeline_mode = #tpu.pipeline_mode<synchronous>, transform_indices = @transform_23, window_bounds = array<i64: 1, 128>}, {transform_indices = @transform_24, window_bounds = array<i64: 1, 4, 128>}]} {
    %c0_i32 = arith.constant 0 : i32
    %0 = arith.cmpi eq, %arg1, %c0_i32 : i32
    %1 = arith.extui %0 : i1 to i32
    %c0_i32_0 = arith.constant 0 : i32
    %2 = arith.cmpi ne, %1, %c0_i32_0 : i32
    scf.if %2 {
      %c0_60 = arith.constant 0 : index
      %c0_61 = arith.constant 0 : index
      %c0_62 = arith.constant 0 : index
      %129 = vector.load %arg2[%c0_60, %c0_61, %c0_62] : memref<4x16x8xf32, #tpu.memory_space<vmem>>, vector<4x16x8xf32>
      %130 = tpu.transpose %129, [0, 2, 1] : vector<4x16x8xf32> -> vector<4x8x16xf32>
      %131 = vector.shape_cast %130 : vector<4x8x16xf32> to vector<32x16xf32>
      %132 = arith.truncf %131 : vector<32x16xf32> to vector<32x16xbf16>
      %c0_63 = arith.constant 0 : index
      %c0_64 = arith.constant 0 : index
      %133 = vector.load %arg3[%c0_63, %c0_64] : memref<16x32xbf16, #tpu.memory_space<vmem>>, vector<16x32xbf16>
      %cst_65 = arith.constant dense<0.000000e+00> : vector<32x32xf32>
      %134 = tpu.matmul %132, %133, %cst_65 {dimension_numbers = #tpu.dot_dimension_numbers<[1], [0], [0], [1], [0, 0, 1, 1], [], []>} : vector<32x16xbf16>, vector<16x32xbf16>, vector<32x32xf32> -> vector<32x32xf32>
      %c0_66 = arith.constant 0 : index
      %c0_67 = arith.constant 0 : index
      %135 = vector.load %arg4[%c0_66, %c0_67] : memref<1x32xf32, #tpu.memory_space<vmem>>, vector<1x32xf32>
      %136 = vector.broadcast %135 : vector<1x32xf32> to vector<32x32xf32>
      %137 = arith.addf %134, %136 : vector<32x32xf32>
      %cst_68 = arith.constant 0.000000e+00 : f32
      %138 = vector.broadcast %cst_68 : f32 to vector<32x32xf32>
      %139 = arith.maximumf %137, %138 : vector<32x32xf32>
      %140 = vector.shape_cast %139 : vector<32x32xf32> to vector<4x8x32xf32>
      %cst_69 = arith.constant 0.000000e+00 : f32
      %141 = vector.broadcast %cst_69 : f32 to vector<4x2x32xf32>
      %142 = tpu.concatenate %141, %140, %141 in 1 : vector<4x2x32xf32>, vector<4x8x32xf32>, vector<4x2x32xf32> -> vector<4x12x32xf32>
      %143 = vector.extract_strided_slice %142 {offsets = [0, 0, 0], sizes = [4, 8, 32], strides = [1, 1, 1]} : vector<4x12x32xf32> to vector<4x8x32xf32>
      %144 = vector.extract_strided_slice %142 {offsets = [0, 1, 0], sizes = [4, 8, 32], strides = [1, 1, 1]} : vector<4x12x32xf32> to vector<4x8x32xf32>
      %145 = vector.extract_strided_slice %142 {offsets = [0, 2, 0], sizes = [4, 8, 32], strides = [1, 1, 1]} : vector<4x12x32xf32> to vector<4x8x32xf32>
      %146 = vector.extract_strided_slice %142 {offsets = [0, 3, 0], sizes = [4, 8, 32], strides = [1, 1, 1]} : vector<4x12x32xf32> to vector<4x8x32xf32>
      %147 = vector.extract_strided_slice %142 {offsets = [0, 4, 0], sizes = [4, 8, 32], strides = [1, 1, 1]} : vector<4x12x32xf32> to vector<4x8x32xf32>
      %148 = tpu.concatenate %143, %144, %145, %146, %147 in 2 : vector<4x8x32xf32>, vector<4x8x32xf32>, vector<4x8x32xf32>, vector<4x8x32xf32>, vector<4x8x32xf32> -> vector<4x8x160xf32>
      %149 = vector.shape_cast %148 : vector<4x8x160xf32> to vector<32x160xf32>
      %150 = arith.truncf %149 : vector<32x160xf32> to vector<32x160xbf16>
      %c0_70 = arith.constant 0 : index
      %c0_71 = arith.constant 0 : index
      %151 = vector.load %arg5[%c0_70, %c0_71] : memref<160x32xbf16, #tpu.memory_space<vmem>>, vector<160x32xbf16>
      %cst_72 = arith.constant dense<0.000000e+00> : vector<32x32xf32>
      %152 = tpu.matmul %150, %151, %cst_72 {dimension_numbers = #tpu.dot_dimension_numbers<[1], [0], [0], [1], [0, 0, 1, 1], [], []>} : vector<32x160xbf16>, vector<160x32xbf16>, vector<32x32xf32> -> vector<32x32xf32>
      %c0_73 = arith.constant 0 : index
      %c0_74 = arith.constant 0 : index
      %153 = vector.load %arg6[%c0_73, %c0_74] : memref<1x32xf32, #tpu.memory_space<vmem>>, vector<1x32xf32>
      %154 = vector.broadcast %153 : vector<1x32xf32> to vector<32x32xf32>
      %155 = arith.addf %152, %154 : vector<32x32xf32>
      %c0_75 = arith.constant 0 : index
      %c0_76 = arith.constant 0 : index
      %156 = vector.load %arg7[%c0_75, %c0_76] : memref<1x32xf32, #tpu.memory_space<vmem>>, vector<1x32xf32>
      %157 = vector.broadcast %156 : vector<1x32xf32> to vector<32x32xf32>
      %158 = arith.addf %155, %157 : vector<32x32xf32>
      %c0_77 = arith.constant 0 : index
      %c0_78 = arith.constant 0 : index
      %159 = vector.load %arg8[%c0_77, %c0_78] : memref<1x32xf32, #tpu.memory_space<vmem>>, vector<1x32xf32>
      %c0_79 = arith.constant 0 : index
      %c0_80 = arith.constant 0 : index
      %160 = vector.load %arg9[%c0_79, %c0_80] : memref<1x32xf32, #tpu.memory_space<vmem>>, vector<1x32xf32>
      %cst_81 = arith.constant dense<0.000000e+00> : vector<32xf32>
      %161 = vector.multi_reduction <add>, %158, %cst_81 [1] : vector<32x32xf32> to vector<32xf32>
      %162 = vector.shape_cast %161 : vector<32xf32> to vector<32x1xf32>
      %cst_82 = arith.constant 3.200000e+01 : f32
      %163 = vector.broadcast %cst_82 : f32 to vector<32x1xf32>
      %164 = arith.divf %162, %163 : vector<32x1xf32>
      %165 = vector.broadcast %164 : vector<32x1xf32> to vector<32x32xf32>
      %166 = arith.subf %158, %165 : vector<32x32xf32>
      %167 = arith.mulf %166, %166 : vector<32x32xf32>
      %cst_83 = arith.constant dense<0.000000e+00> : vector<32xf32>
      %168 = vector.multi_reduction <add>, %167, %cst_83 [1] : vector<32x32xf32> to vector<32xf32>
      %169 = vector.shape_cast %168 : vector<32xf32> to vector<32x1xf32>
      %cst_84 = arith.constant 3.200000e+01 : f32
      %170 = vector.broadcast %cst_84 : f32 to vector<32x1xf32>
      %171 = arith.divf %169, %170 : vector<32x1xf32>
      %172 = vector.broadcast %164 : vector<32x1xf32> to vector<32x32xf32>
      %173 = arith.subf %158, %172 : vector<32x32xf32>
      %cst_85 = arith.constant 9.99999974E-6 : f32
      %174 = vector.broadcast %cst_85 : f32 to vector<32x1xf32>
      %175 = arith.addf %171, %174 : vector<32x1xf32>
      %176 = math.rsqrt %175 : vector<32x1xf32>
      %177 = vector.broadcast %176 : vector<32x1xf32> to vector<32x32xf32>
      %178 = arith.mulf %173, %177 : vector<32x32xf32>
      %179 = vector.broadcast %159 : vector<1x32xf32> to vector<32x32xf32>
      %180 = arith.mulf %178, %179 : vector<32x32xf32>
      %181 = vector.broadcast %160 : vector<1x32xf32> to vector<32x32xf32>
      %182 = arith.addf %180, %181 : vector<32x32xf32>
      %c0_86 = arith.constant 0 : index
      %c0_87 = arith.constant 0 : index
      %183 = vector.load %arg27[%c0_86, %c0_87] : memref<32x32xf32, #tpu.memory_space<vmem>>, vector<32x32xf32>
      tpu.vector_store %arg27[%c0_86, %c0_87], %182 {strides = array<i32>} : memref<32x32xf32, #tpu.memory_space<vmem>>, vector<32x32xf32>,
    } else {
    }
    %c0 = arith.constant 0 : index
    %c0_1 = arith.constant 0 : index
    %3 = vector.load %arg27[%c0, %c0_1] : memref<32x32xf32, #tpu.memory_space<vmem>>, vector<32x32xf32>
    %4 = arith.truncf %3 : vector<32x32xf32> to vector<32x32xbf16>
    %c0_2 = arith.constant 0 : index
    %c0_3 = arith.constant 0 : index
    %c0_4 = arith.constant 0 : index
    %5 = vector.load %arg10[%c0_2, %c0_3, %c0_4] : memref<1x32x96xbf16, #tpu.memory_space<vmem>>, vector<1x32x96xbf16>
    %6 = vector.shape_cast %5 : vector<1x32x96xbf16> to vector<32x96xbf16>
    %cst = arith.constant dense<0.000000e+00> : vector<32x96xf32>
    %7 = tpu.matmul %4, %6, %cst {dimension_numbers = #tpu.dot_dimension_numbers<[1], [0], [0], [1], [0, 0, 1, 1], [], []>} : vector<32x32xbf16>, vector<32x96xbf16>, vector<32x96xf32> -> vector<32x96xf32>
    %c0_5 = arith.constant 0 : index
    %c0_6 = arith.constant 0 : index
    %c0_7 = arith.constant 0 : index
    %8 = vector.load %arg11[%c0_5, %c0_6, %c0_7] : memref<1x1x96xf32, #tpu.memory_space<vmem>>, vector<1x1x96xf32>
    %9 = vector.shape_cast %8 : vector<1x1x96xf32> to vector<1x96xf32>
    %10 = vector.broadcast %9 : vector<1x96xf32> to vector<32x96xf32>
    %11 = arith.addf %7, %10 : vector<32x96xf32>
    %12 = vector.extract_strided_slice %11 {offsets = [0, 0], sizes = [32, 32], strides = [1, 1]} : vector<32x96xf32> to vector<32x32xf32>
    %cst_8 = arith.constant 0.353553385 : f32
    %13 = vector.broadcast %cst_8 : f32 to vector<32x32xf32>
    %14 = arith.mulf %12, %13 : vector<32x32xf32>
    %15 = vector.extract_strided_slice %11 {offsets = [0, 32], sizes = [32, 32], strides = [1, 1]} : vector<32x96xf32> to vector<32x32xf32>
    %16 = vector.extract_strided_slice %11 {offsets = [0, 64], sizes = [32, 32], strides = [1, 1]} : vector<32x96xf32> to vector<32x32xf32>
    %17 = vector.shape_cast %14 : vector<32x32xf32> to vector<32x4x8xf32>
    %18 = tpu.transpose %17, [1, 0, 2] : vector<32x4x8xf32> -> vector<4x32x8xf32>
    %19 = vector.shape_cast %18 : vector<4x32x8xf32> to vector<16x8x8xf32>
    %20 = vector.shape_cast %15 : vector<32x32xf32> to vector<32x4x8xf32>
    %21 = tpu.transpose %20, [1, 0, 2] : vector<32x4x8xf32> -> vector<4x32x8xf32>
    %22 = vector.shape_cast %21 : vector<4x32x8xf32> to vector<16x8x8xf32>
    %23 = vector.shape_cast %16 : vector<32x32xf32> to vector<32x4x8xf32>
    %24 = tpu.transpose %23, [1, 0, 2] : vector<32x4x8xf32> -> vector<4x32x8xf32>
    %25 = vector.shape_cast %24 : vector<4x32x8xf32> to vector<16x8x8xf32>
    %26 = arith.truncf %19 : vector<16x8x8xf32> to vector<16x8x8xbf16>
    %27 = arith.truncf %22 : vector<16x8x8xf32> to vector<16x8x8xbf16>
    "tpu.trace_start"() <{level = 10 : i32, message = "nqd,nkd->nqk"}> : () -> ()
    %cst_9 = arith.constant dense<0.000000e+00> : vector<16x8x8xf32>
    %28 = tpu.matmul %26, %27, %cst_9 {dimension_numbers = #tpu.dot_dimension_numbers<[2], [2], [1], [1], [0, 0, 0, 1, 1, 1], [0], [0]>} : vector<16x8x8xbf16>, vector<16x8x8xbf16>, vector<16x8x8xf32> -> vector<16x8x8xf32>
    "tpu.trace_stop"() : () -> ()
    %cst_10 = arith.constant dense<0xFF800000> : vector<16x8xf32>
    %29 = vector.multi_reduction <maximumf>, %28, %cst_10 [2] : vector<16x8x8xf32> to vector<16x8xf32>
    %30 = vector.shape_cast %29 : vector<16x8xf32> to vector<16x8x1xf32>
    %31 = vector.broadcast %30 : vector<16x8x1xf32> to vector<16x8x8xf32>
    %32 = arith.subf %28, %31 : vector<16x8x8xf32>
    %33 = math.exp %32 : vector<16x8x8xf32>
    %cst_11 = arith.constant dense<0.000000e+00> : vector<16x8xf32>
    %34 = vector.multi_reduction <add>, %33, %cst_11 [2] : vector<16x8x8xf32> to vector<16x8xf32>
    %35 = vector.shape_cast %34 : vector<16x8xf32> to vector<16x8x1xf32>
    %36 = tpu.reciprocal %35 {approx = true} : vector<16x8x1xf32> -> vector<16x8x1xf32>
    %37 = vector.broadcast %36 : vector<16x8x1xf32> to vector<16x8x8xf32>
    %38 = arith.mulf %33, %37 : vector<16x8x8xf32>
    %39 = arith.truncf %38 : vector<16x8x8xf32> to vector<16x8x8xbf16>
    %40 = arith.truncf %25 : vector<16x8x8xf32> to vector<16x8x8xbf16>
    "tpu.trace_start"() <{level = 10 : i32, message = "nqk,nkd->nqd"}> : () -> ()
    %cst_12 = arith.constant dense<0.000000e+00> : vector<16x8x8xf32>
    %41 = tpu.matmul %39, %40, %cst_12 {dimension_numbers = #tpu.dot_dimension_numbers<[2], [1], [1], [2], [0, 0, 0, 1, 1, 2], [0], [0]>} : vector<16x8x8xbf16>, vector<16x8x8xbf16>, vector<16x8x8xf32> -> vector<16x8x8xf32>
    "tpu.trace_stop"() : () -> ()
    %42 = vector.shape_cast %41 : vector<16x8x8xf32> to vector<4x32x8xf32>
    %43 = tpu.transpose %42, [1, 0, 2] : vector<4x32x8xf32> -> vector<32x4x8xf32>
    %44 = vector.shape_cast %43 : vector<32x4x8xf32> to vector<32x32xf32>
    %45 = arith.truncf %44 : vector<32x32xf32> to vector<32x32xbf16>
    %c0_13 = arith.constant 0 : index
    %c0_14 = arith.constant 0 : index
    %c0_15 = arith.constant 0 : index
    %46 = vector.load %arg12[%c0_13, %c0_14, %c0_15] : memref<1x32x32xbf16, #tpu.memory_space<vmem>>, vector<1x32x32xbf16>
    %47 = vector.shape_cast %46 : vector<1x32x32xbf16> to vector<32x32xbf16>
    %cst_16 = arith.constant dense<0.000000e+00> : vector<32x32xf32>
    %48 = tpu.matmul %45, %47, %cst_16 {dimension_numbers = #tpu.dot_dimension_numbers<[1], [0], [0], [1], [0, 0, 1, 1], [], []>} : vector<32x32xbf16>, vector<32x32xbf16>, vector<32x32xf32> -> vector<32x32xf32>
    %c0_17 = arith.constant 0 : index
    %c0_18 = arith.constant 0 : index
    %c0_19 = arith.constant 0 : index
    %49 = vector.load %arg13[%c0_17, %c0_18, %c0_19] : memref<1x1x32xf32, #tpu.memory_space<vmem>>, vector<1x1x32xf32>
    %50 = vector.shape_cast %49 : vector<1x1x32xf32> to vector<1x32xf32>
    %51 = vector.broadcast %50 : vector<1x32xf32> to vector<32x32xf32>
    %52 = arith.addf %48, %51 : vector<32x32xf32>
    %53 = arith.addf %3, %52 : vector<32x32xf32>
    %c0_20 = arith.constant 0 : index
    %c0_21 = arith.constant 0 : index
    %c0_22 = arith.constant 0 : index
    %54 = vector.load %arg14[%c0_20, %c0_21, %c0_22] : memref<1x1x32xf32, #tpu.memory_space<vmem>>, vector<1x1x32xf32>
    %55 = vector.shape_cast %54 : vector<1x1x32xf32> to vector<1x32xf32>
    %c0_23 = arith.constant 0 : index
    %c0_24 = arith.constant 0 : index
    %c0_25 = arith.constant 0 : index
    %56 = vector.load %arg15[%c0_23, %c0_24, %c0_25] : memref<1x1x32xf32, #tpu.memory_space<vmem>>, vector<1x1x32xf32>
    %57 = vector.shape_cast %56 : vector<1x1x32xf32> to vector<1x32xf32>
    %cst_26 = arith.constant dense<0.000000e+00> : vector<32xf32>
    %58 = vector.multi_reduction <add>, %53, %cst_26 [1] : vector<32x32xf32> to vector<32xf32>
    %59 = vector.shape_cast %58 : vector<32xf32> to vector<32x1xf32>
    %cst_27 = arith.constant 3.200000e+01 : f32
    %60 = vector.broadcast %cst_27 : f32 to vector<32x1xf32>
    %61 = arith.divf %59, %60 : vector<32x1xf32>
    %62 = vector.broadcast %61 : vector<32x1xf32> to vector<32x32xf32>
    %63 = arith.subf %53, %62 : vector<32x32xf32>
    %64 = arith.mulf %63, %63 : vector<32x32xf32>
    %cst_28 = arith.constant dense<0.000000e+00> : vector<32xf32>
    %65 = vector.multi_reduction <add>, %64, %cst_28 [1] : vector<32x32xf32> to vector<32xf32>
    %66 = vector.shape_cast %65 : vector<32xf32> to vector<32x1xf32>
    %cst_29 = arith.constant 3.200000e+01 : f32
    %67 = vector.broadcast %cst_29 : f32 to vector<32x1xf32>
    %68 = arith.divf %66, %67 : vector<32x1xf32>
    %69 = vector.broadcast %61 : vector<32x1xf32> to vector<32x32xf32>
    %70 = arith.subf %53, %69 : vector<32x32xf32>
    %cst_30 = arith.constant 9.99999974E-6 : f32
    %71 = vector.broadcast %cst_30 : f32 to vector<32x1xf32>
    %72 = arith.addf %68, %71 : vector<32x1xf32>
    %73 = math.rsqrt %72 : vector<32x1xf32>
    %74 = vector.broadcast %73 : vector<32x1xf32> to vector<32x32xf32>
    %75 = arith.mulf %70, %74 : vector<32x32xf32>
    %76 = vector.broadcast %55 : vector<1x32xf32> to vector<32x32xf32>
    %77 = arith.mulf %75, %76 : vector<32x32xf32>
    %78 = vector.broadcast %57 : vector<1x32xf32> to vector<32x32xf32>
    %79 = arith.addf %77, %78 : vector<32x32xf32>
    %80 = arith.truncf %79 : vector<32x32xf32> to vector<32x32xbf16>
    %c0_31 = arith.constant 0 : index
    %c0_32 = arith.constant 0 : index
    %c0_33 = arith.constant 0 : index
    %81 = vector.load %arg16[%c0_31, %c0_32, %c0_33] : memref<1x32x2048xbf16, #tpu.memory_space<vmem>>, vector<1x32x2048xbf16>
    %82 = vector.shape_cast %81 : vector<1x32x2048xbf16> to vector<32x2048xbf16>
    %cst_34 = arith.constant dense<0.000000e+00> : vector<32x2048xf32>
    %83 = tpu.matmul %80, %82, %cst_34 {dimension_numbers = #tpu.dot_dimension_numbers<[1], [0], [0], [1], [0, 0, 1, 1], [], []>} : vector<32x32xbf16>, vector<32x2048xbf16>, vector<32x2048xf32> -> vector<32x2048xf32>
    %c0_35 = arith.constant 0 : index
    %c0_36 = arith.constant 0 : index
    %c0_37 = arith.constant 0 : index
    %84 = vector.load %arg17[%c0_35, %c0_36, %c0_37] : memref<1x1x2048xf32, #tpu.memory_space<vmem>>, vector<1x1x2048xf32>
    %85 = vector.shape_cast %84 : vector<1x1x2048xf32> to vector<1x2048xf32>
    %86 = vector.broadcast %85 : vector<1x2048xf32> to vector<32x2048xf32>
    %87 = arith.addf %83, %86 : vector<32x2048xf32>
    %cst_38 = arith.constant 0.000000e+00 : f32
    %88 = vector.broadcast %cst_38 : f32 to vector<32x2048xf32>
    %89 = arith.maximumf %87, %88 : vector<32x2048xf32>
    %90 = arith.truncf %89 : vector<32x2048xf32> to vector<32x2048xbf16>
    %c0_39 = arith.constant 0 : index
    %c0_40 = arith.constant 0 : index
    %c0_41 = arith.constant 0 : index
    %91 = vector.load %arg18[%c0_39, %c0_40, %c0_41] : memref<1x2048x32xbf16, #tpu.memory_space<vmem>>, vector<1x2048x32xbf16>
    %92 = vector.shape_cast %91 : vector<1x2048x32xbf16> to vector<2048x32xbf16>
    %cst_42 = arith.constant dense<0.000000e+00> : vector<32x32xf32>
    %93 = tpu.matmul %90, %92, %cst_42 {dimension_numbers = #tpu.dot_dimension_numbers<[1], [0], [0], [1], [0, 0, 1, 1], [], []>} : vector<32x2048xbf16>, vector<2048x32xbf16>, vector<32x32xf32> -> vector<32x32xf32>
    %c0_43 = arith.constant 0 : index
    %c0_44 = arith.constant 0 : index
    %c0_45 = arith.constant 0 : index
    %94 = vector.load %arg19[%c0_43, %c0_44, %c0_45] : memref<1x1x32xf32, #tpu.memory_space<vmem>>, vector<1x1x32xf32>
    %95 = vector.shape_cast %94 : vector<1x1x32xf32> to vector<1x32xf32>
    %96 = vector.broadcast %95 : vector<1x32xf32> to vector<32x32xf32>
    %97 = arith.addf %93, %96 : vector<32x32xf32>
    %98 = arith.addf %79, %97 : vector<32x32xf32>
    %c0_46 = arith.constant 0 : index
    %c0_47 = arith.constant 0 : index
    %c0_48 = arith.constant 0 : index
    %99 = vector.load %arg20[%c0_46, %c0_47, %c0_48] : memref<1x1x32xf32, #tpu.memory_space<vmem>>, vector<1x1x32xf32>
    %100 = vector.shape_cast %99 : vector<1x1x32xf32> to vector<1x32xf32>
    %c0_49 = arith.constant 0 : index
    %c0_50 = arith.constant 0 : index
    %c0_51 = arith.constant 0 : index
    %101 = vector.load %arg21[%c0_49, %c0_50, %c0_51] : memref<1x1x32xf32, #tpu.memory_space<vmem>>, vector<1x1x32xf32>
    %102 = vector.shape_cast %101 : vector<1x1x32xf32> to vector<1x32xf32>
    %cst_52 = arith.constant dense<0.000000e+00> : vector<32xf32>
    %103 = vector.multi_reduction <add>, %98, %cst_52 [1] : vector<32x32xf32> to vector<32xf32>
    %104 = vector.shape_cast %103 : vector<32xf32> to vector<32x1xf32>
    %cst_53 = arith.constant 3.200000e+01 : f32
    %105 = vector.broadcast %cst_53 : f32 to vector<32x1xf32>
    %106 = arith.divf %104, %105 : vector<32x1xf32>
    %107 = vector.broadcast %106 : vector<32x1xf32> to vector<32x32xf32>
    %108 = arith.subf %98, %107 : vector<32x32xf32>
    %109 = arith.mulf %108, %108 : vector<32x32xf32>
    %cst_54 = arith.constant dense<0.000000e+00> : vector<32xf32>
    %110 = vector.multi_reduction <add>, %109, %cst_54 [1] : vector<32x32xf32> to vector<32xf32>
    %111 = vector.shape_cast %110 : vector<32xf32> to vector<32x1xf32>
    %cst_55 = arith.constant 3.200000e+01 : f32
    %112 = vector.broadcast %cst_55 : f32 to vector<32x1xf32>
    %113 = arith.divf %111, %112 : vector<32x1xf32>
    %114 = vector.broadcast %106 : vector<32x1xf32> to vector<32x32xf32>
    %115 = arith.subf %98, %114 : vector<32x32xf32>
    %cst_56 = arith.constant 9.99999974E-6 : f32
    %116 = vector.broadcast %cst_56 : f32 to vector<32x1xf32>
    %117 = arith.addf %113, %116 : vector<32x1xf32>
    %118 = math.rsqrt %117 : vector<32x1xf32>
    %119 = vector.broadcast %118 : vector<32x1xf32> to vector<32x32xf32>
    %120 = arith.mulf %115, %119 : vector<32x32xf32>
    %121 = vector.broadcast %100 : vector<1x32xf32> to vector<32x32xf32>
    %122 = arith.mulf %120, %121 : vector<32x32xf32>
    %123 = vector.broadcast %102 : vector<1x32xf32> to vector<32x32xf32>
    %124 = arith.addf %122, %123 : vector<32x32xf32>
    %c0_57 = arith.constant 0 : index
    %c0_58 = arith.constant 0 : index
    %125 = vector.load %arg27[%c0_57, %c0_58] : memref<32x32xf32, #tpu.memory_space<vmem>>, vector<32x32xf32>
    tpu.vector_store %arg27[%c0_57, %c0_58], %124 {strides = array<i32>} : memref<32x32xf32, #tpu.memory_space<vmem>>, vector<32x32xf32>,
    %c1_i32 = arith.constant 1 : i32
    %126 = arith.cmpi eq, %arg1, %c1_i32 : i32
    %127 = arith.extui %126 : i1 to i32
    %c0_i32_59 = arith.constant 0 : i32
    %128 = arith.cmpi ne, %127, %c0_i32_59 : i32
    scf.if %128 {
      %129 = vector.shape_cast %124 : vector<32x32xf32> to vector<4x8x32xf32>
      %130 = vector.extract_strided_slice %129 {offsets = [0, 7, 0], sizes = [4, 1, 32], strides = [1, 1, 1]} : vector<4x8x32xf32> to vector<4x1x32xf32>
      %131 = vector.shape_cast %130 : vector<4x1x32xf32> to vector<4x32xf32>
      %c0_60 = arith.constant 0 : index
      %c0_61 = arith.constant 0 : index
      %132 = vector.load %arg22[%c0_60, %c0_61] : memref<1x32xf32, #tpu.memory_space<vmem>>, vector<1x32xf32>
      %c0_62 = arith.constant 0 : index
      %c0_63 = arith.constant 0 : index
      %133 = vector.load %arg23[%c0_62, %c0_63] : memref<1x32xf32, #tpu.memory_space<vmem>>, vector<1x32xf32>
      %cst_64 = arith.constant dense<0.000000e+00> : vector<4xf32>
      %134 = vector.multi_reduction <add>, %131, %cst_64 [1] : vector<4x32xf32> to vector<4xf32>
      %135 = vector.shape_cast %134 : vector<4xf32> to vector<4x1xf32>
      %cst_65 = arith.constant 3.200000e+01 : f32
      %136 = vector.broadcast %cst_65 : f32 to vector<4x1xf32>
      %137 = arith.divf %135, %136 : vector<4x1xf32>
      %138 = vector.broadcast %137 : vector<4x1xf32> to vector<4x32xf32>
      %139 = arith.subf %131, %138 : vector<4x32xf32>
      %140 = arith.mulf %139, %139 : vector<4x32xf32>
      %cst_66 = arith.constant dense<0.000000e+00> : vector<4xf32>
      %141 = vector.multi_reduction <add>, %140, %cst_66 [1] : vector<4x32xf32> to vector<4xf32>
      %142 = vector.shape_cast %141 : vector<4xf32> to vector<4x1xf32>
      %cst_67 = arith.constant 3.200000e+01 : f32
      %143 = vector.broadcast %cst_67 : f32 to vector<4x1xf32>
      %144 = arith.divf %142, %143 : vector<4x1xf32>
      %145 = vector.broadcast %137 : vector<4x1xf32> to vector<4x32xf32>
      %146 = arith.subf %131, %145 : vector<4x32xf32>
      %cst_68 = arith.constant 9.99999974E-6 : f32
      %147 = vector.broadcast %cst_68 : f32 to vector<4x1xf32>
      %148 = arith.addf %144, %147 : vector<4x1xf32>
      %149 = math.rsqrt %148 : vector<4x1xf32>
      %150 = vector.broadcast %149 : vector<4x1xf32> to vector<4x32xf32>
      %151 = arith.mulf %146, %150 : vector<4x32xf32>
      %152 = vector.broadcast %132 : vector<1x32xf32> to vector<4x32xf32>
      %153 = arith.mulf %151, %152 : vector<4x32xf32>
      %154 = vector.broadcast %133 : vector<1x32xf32> to vector<4x32xf32>
      %155 = arith.addf %153, %154 : vector<4x32xf32>
      %156 = arith.truncf %155 : vector<4x32xf32> to vector<4x32xbf16>
      %c0_69 = arith.constant 0 : index
      %c0_70 = arith.constant 0 : index
      %157 = vector.load %arg24[%c0_69, %c0_70] : memref<32x128xbf16, #tpu.memory_space<vmem>>, vector<32x128xbf16>
      %cst_71 = arith.constant dense<0.000000e+00> : vector<4x128xf32>
      %158 = tpu.matmul %156, %157, %cst_71 {dimension_numbers = #tpu.dot_dimension_numbers<[1], [0], [0], [1], [0, 0, 1, 1], [], []>} : vector<4x32xbf16>, vector<32x128xbf16>, vector<4x128xf32> -> vector<4x128xf32>
      %c0_72 = arith.constant 0 : index
      %c0_73 = arith.constant 0 : index
      %159 = vector.load %arg25[%c0_72, %c0_73] : memref<1x128xf32, #tpu.memory_space<vmem>>, vector<1x128xf32>
      %160 = vector.broadcast %159 : vector<1x128xf32> to vector<4x128xf32>
      %161 = arith.addf %158, %160 : vector<4x128xf32>
      %cst_74 = arith.constant dense<0xFF800000> : vector<4xf32>
      %162 = vector.multi_reduction <maximumf>, %161, %cst_74 [1] : vector<4x128xf32> to vector<4xf32>
      %163 = vector.shape_cast %162 : vector<4xf32> to vector<4x1xf32>
      %164 = vector.broadcast %163 : vector<4x1xf32> to vector<4x128xf32>
      %165 = arith.subf %161, %164 : vector<4x128xf32>
      %166 = math.exp %165 : vector<4x128xf32>
      %cst_75 = arith.constant dense<0.000000e+00> : vector<4xf32>
      %167 = vector.multi_reduction <add>, %166, %cst_75 [1] : vector<4x128xf32> to vector<4xf32>
      %168 = vector.shape_cast %167 : vector<4xf32> to vector<4x1xf32>
      %169 = math.log %168 : vector<4x1xf32>
      %170 = vector.broadcast %169 : vector<4x1xf32> to vector<4x128xf32>
      %171 = arith.subf %165, %170 : vector<4x128xf32>
      %c0_76 = arith.constant 0 : index
      %c0_77 = arith.constant 0 : index
      %c0_78 = arith.constant 0 : index
      %172 = vector.load %arg26[%c0_76, %c0_77, %c0_78] : memref<1x4x128xf32, #tpu.memory_space<vmem>>, vector<1x4x128xf32>
      %173 = vector.shape_cast %172 : vector<1x4x128xf32> to vector<4x128xf32>
      %174 = vector.shape_cast %171 : vector<4x128xf32> to vector<1x4x128xf32>
      tpu.vector_store %arg26[%c0_76, %c0_77, %c0_78], %174 {strides = array<i32>} : memref<1x4x128xf32, #tpu.memory_space<vmem>>, vector<1x4x128xf32>,
    } else {
    }
    return
  }
  func.func @transform_0(%arg0: i32, %arg1: i32) -> (i32, i32, i32) {
    %c0_i32 = arith.constant 0 : i32
    %c0_i32_0 = arith.constant 0 : i32
    %c0_i32_1 = arith.constant 0 : i32
    return %arg0, %c0_i32, %c0_i32_0 : i32, i32, i32
  }
  func.func @transform_1(%arg0: i32, %arg1: i32) -> (i32, i32) {
    %c0_i32 = arith.constant 0 : i32
    %c0_i32_0 = arith.constant 0 : i32
    %c0_i32_1 = arith.constant 0 : i32
    return %c0_i32, %c0_i32_0 : i32, i32
  }
  func.func @transform_2(%arg0: i32, %arg1: i32) -> (i32, i32) {
    %c0_i32 = arith.constant 0 : i32
    %c0_i32_0 = arith.constant 0 : i32
    %c0_i32_1 = arith.constant 0 : i32
    return %c0_i32, %c0_i32_0 : i32, i32
  }
  func.func @transform_3(%arg0: i32, %arg1: i32) -> (i32, i32) {
    %c0_i32 = arith.constant 0 : i32
    %c0_i32_0 = arith.constant 0 : i32
    %c0_i32_1 = arith.constant 0 : i32
    return %c0_i32, %c0_i32_0 : i32, i32
  }
  func.func @transform_4(%arg0: i32, %arg1: i32) -> (i32, i32) {
    %c0_i32 = arith.constant 0 : i32
    %c0_i32_0 = arith.constant 0 : i32
    %c0_i32_1 = arith.constant 0 : i32
    return %c0_i32, %c0_i32_0 : i32, i32
  }
  func.func @transform_5(%arg0: i32, %arg1: i32) -> (i32, i32) {
    %c0_i32 = arith.constant 0 : i32
    %c0_i32_0 = arith.constant 0 : i32
    %c0_i32_1 = arith.constant 0 : i32
    return %c0_i32, %c0_i32_0 : i32, i32
  }
  func.func @transform_6(%arg0: i32, %arg1: i32) -> (i32, i32) {
    %c0_i32 = arith.constant 0 : i32
    %c0_i32_0 = arith.constant 0 : i32
    %c0_i32_1 = arith.constant 0 : i32
    return %c0_i32, %c0_i32_0 : i32, i32
  }
  func.func @transform_7(%arg0: i32, %arg1: i32) -> (i32, i32) {
    %c0_i32 = arith.constant 0 : i32
    %c0_i32_0 = arith.constant 0 : i32
    %c0_i32_1 = arith.constant 0 : i32
    return %c0_i32, %c0_i32_0 : i32, i32
  }
  func.func @transform_8(%arg0: i32, %arg1: i32) -> (i32, i32, i32) {
    %c0_i32 = arith.constant 0 : i32
    %c0_i32_0 = arith.constant 0 : i32
    %c0_i32_1 = arith.constant 0 : i32
    return %arg1, %c0_i32, %c0_i32_0 : i32, i32, i32
  }
  func.func @transform_9(%arg0: i32, %arg1: i32) -> (i32, i32, i32) {
    %c0_i32 = arith.constant 0 : i32
    %c0_i32_0 = arith.constant 0 : i32
    %c0_i32_1 = arith.constant 0 : i32
    return %arg1, %c0_i32, %c0_i32_0 : i32, i32, i32
  }
  func.func @transform_10(%arg0: i32, %arg1: i32) -> (i32, i32, i32) {
    %c0_i32 = arith.constant 0 : i32
    %c0_i32_0 = arith.constant 0 : i32
    %c0_i32_1 = arith.constant 0 : i32
    return %arg1, %c0_i32, %c0_i32_0 : i32, i32, i32
  }
  func.func @transform_11(%arg0: i32, %arg1: i32) -> (i32, i32, i32) {
    %c0_i32 = arith.constant 0 : i32
    %c0_i32_0 = arith.constant 0 : i32
    %c0_i32_1 = arith.constant 0 : i32
    return %arg1, %c0_i32, %c0_i32_0 : i32, i32, i32
  }
  func.func @transform_12(%arg0: i32, %arg1: i32) -> (i32, i32, i32) {
    %c0_i32 = arith.constant 0 : i32
    %c0_i32_0 = arith.constant 0 : i32
    %c0_i32_1 = arith.constant 0 : i32
    return %arg1, %c0_i32, %c0_i32_0 : i32, i32, i32
  }
  func.func @transform_13(%arg0: i32, %arg1: i32) -> (i32, i32, i32) {
    %c0_i32 = arith.constant 0 : i32
    %c0_i32_0 = arith.constant 0 : i32
    %c0_i32_1 = arith.constant 0 : i32
    return %arg1, %c0_i32, %c0_i32_0 : i32, i32, i32
  }
  func.func @transform_14(%arg0: i32, %arg1: i32) -> (i32, i32, i32) {
    %c0_i32 = arith.constant 0 : i32
    %c0_i32_0 = arith.constant 0 : i32
    %c0_i32_1 = arith.constant 0 : i32
    return %arg1, %c0_i32, %c0_i32_0 : i32, i32, i32
  }
  func.func @transform_15(%arg0: i32, %arg1: i32) -> (i32, i32, i32) {
    %c0_i32 = arith.constant 0 : i32
    %c0_i32_0 = arith.constant 0 : i32
    %c0_i32_1 = arith.constant 0 : i32
    return %arg1, %c0_i32, %c0_i32_0 : i32, i32, i32
  }
  func.func @transform_16(%arg0: i32, %arg1: i32) -> (i32, i32, i32) {
    %c0_i32 = arith.constant 0 : i32
    %c0_i32_0 = arith.constant 0 : i32
    %c0_i32_1 = arith.constant 0 : i32
    return %arg1, %c0_i32, %c0_i32_0 : i32, i32, i32
  }
  func.func @transform_17(%arg0: i32, %arg1: i32) -> (i32, i32, i32) {
    %c0_i32 = arith.constant 0 : i32
    %c0_i32_0 = arith.constant 0 : i32
    %c0_i32_1 = arith.constant 0 : i32
    return %arg1, %c0_i32, %c0_i32_0 : i32, i32, i32
  }
  func.func @transform_18(%arg0: i32, %arg1: i32) -> (i32, i32, i32) {
    %c0_i32 = arith.constant 0 : i32
    %c0_i32_0 = arith.constant 0 : i32
    %c0_i32_1 = arith.constant 0 : i32
    return %arg1, %c0_i32, %c0_i32_0 : i32, i32, i32
  }
  func.func @transform_19(%arg0: i32, %arg1: i32) -> (i32, i32, i32) {
    %c0_i32 = arith.constant 0 : i32
    %c0_i32_0 = arith.constant 0 : i32
    %c0_i32_1 = arith.constant 0 : i32
    return %arg1, %c0_i32, %c0_i32_0 : i32, i32, i32
  }
  func.func @transform_20(%arg0: i32, %arg1: i32) -> (i32, i32) {
    %c0_i32 = arith.constant 0 : i32
    %c0_i32_0 = arith.constant 0 : i32
    %c0_i32_1 = arith.constant 0 : i32
    return %c0_i32, %c0_i32_0 : i32, i32
  }
  func.func @transform_21(%arg0: i32, %arg1: i32) -> (i32, i32) {
    %c0_i32 = arith.constant 0 : i32
    %c0_i32_0 = arith.constant 0 : i32
    %c0_i32_1 = arith.constant 0 : i32
    return %c0_i32, %c0_i32_0 : i32, i32
  }
  func.func @transform_22(%arg0: i32, %arg1: i32) -> (i32, i32) {
    %c0_i32 = arith.constant 0 : i32
    %c0_i32_0 = arith.constant 0 : i32
    %c0_i32_1 = arith.constant 0 : i32
    return %c0_i32, %c0_i32_0 : i32, i32
  }
  func.func @transform_23(%arg0: i32, %arg1: i32) -> (i32, i32) {
    %c0_i32 = arith.constant 0 : i32
    %c0_i32_0 = arith.constant 0 : i32
    %c0_i32_1 = arith.constant 0 : i32
    return %c0_i32, %c0_i32_0 : i32, i32
  }
  func.func @transform_24(%arg0: i32, %arg1: i32) -> (i32, i32, i32) {
    %c0_i32 = arith.constant 0 : i32
    %c0_i32_0 = arith.constant 0 : i32
    %c0_i32_1 = arith.constant 0 : i32
    return %arg0, %c0_i32, %c0_i32_0 : i32, i32, i32
  }
}

</mosaic_0001>

<bundles_post_ra>
// kernel: transformer_classifier_forward.1
= control target key start
LH: loop header
LB: loop body
LE: loop exit
PB: predicated region body
PF: predicated region fallthrough
CT: control target
= control target key end

     0   :  { %s8573_s26 = smov 0   ;;  %s8575_s27 = smov 0   ;;  %s10986_s0 = inlined_call_operand.vmem [shape: f32[8,16,8], index: 0, kind: input, shape index: {}]   ;;  %s10987_s1 = inlined_call_operand.vmem [shape: bf16[16,32], index: 1, kind: input, shape index: {}]   ;;  %s10988_s2 = inlined_call_operand.vmem [shape: f32[1,32], index: 2, kind: input, shape index: {}]   ;;  %s10989_s3 = inlined_call_operand.vmem [shape: bf16[160,32], index: 3, kind: input, shape index: {}]   ;;  %s10990_s4 = inlined_call_operand.vmem [shape: f32[1,32], index: 4, kind: input, shape index: {}]   ;;  %s10991_s5 = inlined_call_operand.vmem [shape: f32[1,32], index: 5, kind: input, shape index: {}]   ;;  %s10992_s6 = inlined_call_operand.vmem [shape: f32[1,32], index: 6, kind: input, shape index: {}]   ;;  %s10993_s7 = inlined_call_operand.vmem [shape: f32[1,32], index: 7, kind: input, shape index: {}]   ;;  %s10994_s8 = inlined_call_operand.vmem [shape: bf16[2,32,96], index: 8, kind: input, shape index: {}]   ;;  %s10995_s9 = inlined_call_operand.vmem [shape: f32[2,1,96], index: 9, kind: input, shape index: {}]   ;;  %s10996_s10 = inlined_call_operand.vmem [shape: bf16[2,32,32], index: 10, kind: input, shape index: {}]   ;;  %s10997_s11 = inlined_call_operand.vmem [shape: f32[2,1,32], index: 11, kind: input, shape index: {}]   ;;  %s10998_s12 = inlined_call_operand.vmem [shape: f32[2,1,32], index: 12, kind: input, shape index: {}]   ;;  %s10999_s13 = inlined_call_operand.vmem [shape: f32[2,1,32], index: 13, kind: input, shape index: {}]   ;;  %s11000_s14 = inlined_call_operand.vmem [shape: bf16[2,32,2048], index: 14, kind: input, shape index: {}]   ;;  %s11001_s15 = inlined_call_operand.vmem [shape: f32[2,1,2048], index: 15, kind: input, shape index: {}]   ;;  %s11002_s16 = inlined_call_operand.vmem [shape: bf16[2,2048,32], index: 16, kind: input, shape index: {}]   ;;  %s11003_s17 = inlined_call_operand.vmem [shape: f32[2,1,32], index: 17, kind: input, shape index: {}]   ;;  %s11004_s18 = inlined_call_operand.vmem [shape: f32[2,1,32], index: 18, kind: input, shape index: {}]   ;;  %s11005_s19 = inlined_call_operand.vmem [shape: f32[2,1,32], index: 19, kind: input, shape index: {}]   ;;  %s11006_s20 = inlined_call_operand.vmem [shape: f32[1,32], index: 20, kind: input, shape index: {}]   ;;  %s11007_s21 = inlined_call_operand.vmem [shape: f32[1,32], index: 21, kind: input, shape index: {}]   ;;  %s11008_s22 = inlined_call_operand.vmem [shape: bf16[32,128], index: 22, kind: input, shape index: {}]   ;;  %s11009_s23 = inlined_call_operand.vmem [shape: f32[1,128], index: 23, kind: input, shape index: {}]   ;;  %s11010_s24 = inlined_call_operand.vmem [shape: f32[2,4,128], index: 24, kind: output, shape index: {}]  }
   0x1   :  { %11024 = sst [smem:[#allocation14_spill]] %s10986_s0  ;;  %s8577_s28 = smov 0  }
   0x2   :  { %11025 = sst [smem:[#allocation15_spill]] %s10987_s1 }
   0x3   :  { %11026 = sst [smem:[#allocation16_spill]] %s10988_s2 }
   0x4   :  { %11027 = sst [smem:[#allocation17_spill]] %s10989_s3 }
   0x5   :  { %11028 = sst [smem:[#allocation18_spill]] %s10990_s4 }
   0x6   :  { %11029 = sst [smem:[#allocation19_spill]] %s10991_s5  ;;  %s8571_s5 = smov 0  }
   0x7   :  { %11030 = sst [smem:[#allocation20_spill]] %s10992_s6  ;;  %s8579_s6 = smov 0  }
   0x8   :  { %11031 = sst [smem:[#allocation21_spill]] %s10993_s7 }
   0x9   :  { %11032 = sst [smem:[#allocation22_spill]] %s10994_s8 }
   0xa   :  { %11033 = sst [smem:[#allocation23_spill]] %s10995_s9 }
   0xb   :  { %11034 = sst [smem:[#allocation24_spill]] %s10996_s10 }
   0xc   :  { %11035 = sst [smem:[#allocation25_spill]] %s11006_s20 }
   0xd   :  { %11036 = sst [smem:[#allocation26_spill]] %s11007_s21 }
   0xe   :  { %11037 = sst [smem:[#allocation27_spill]] %s11008_s22 }
   0xf   :  { %11038 = sst [smem:[#allocation28_spill]] %s11009_s23 }
  0x10   :  { %11039 = sst [smem:[#allocation29_spill]] %s11010_s24 }
  0x11 LB: > { %11040 = sst [smem:[#allocation3_spill]] %s8413_s5  ;;  %s43_s2 = sadd.s32 1, %s8421_s27  ;;  %s8429_s6 = sphi %s8579_s6, %s34_s6   ;;  %s8425_s28 = sphi %s8577_s28, %s11112_s28   ;;  %s8421_s27 = sphi %s8575_s27, %s11111_s27   ;;  %s8417_s26 = sphi %s8573_s26, %s11110_s26   ;;  %s8413_s5 = sphi %s8571_s5, %s11109_s5  }
  0x12   : > { %11041 = sst [smem:[#allocation4_spill]] %s8421_s27  ;;  %s46_s29 = sadd.s32 1, %s8425_s28 }
  0x13   : > { %11042 = sst [smem:[#allocation5_spill]] %s8425_s28  ;;  %p44_p0 = scmp.ge.s32.totalorder %s43_s2, 2 }
  0x14   : > { %11043 = sst [smem:[#allocation6_spill]] %s8429_s6  ;;  %p7034_p1 = scmp.ge.s32.totalorder %s8429_s6, 1 }
  0x15   : > { %p781_p2 = scmp.lt.s32.totalorder %s8429_s6, 5  ;;  %s11114_s2 = smov (%p44_p0, %s43_s2), 0 }
  0x16   : > { %11044 = sst [smem:[#allocation7_spill]] %s11114_s2  ;;  %s11116_s29 = smov (!%p44_p0, %s46_s29), %s8425_s28 }
  0x17   : > { %p782_p3 = pnand %p7034_p1, %p781_p2  ;;  %p48_p4 = scmp.ge.s32.totalorder %s11116_s29, 2 }
  0x19   : > { %s11118_s29 = smov (%p48_p4, %s11116_s29), 0  ;;  %785 = sbr.rel (%p782_p3) target bundleno = 4088 (0xff8), region = 116 }
  0x1a   : > { %11045 = sst [smem:[#allocation8_spill]] %s11118_s29 }
  0x1e   : > { %s7035_s0 = sshll.u32 %s8417_s26, 2  ;;  %p899_p5 = scmp.lt.s32.totalorder %s8413_s5, 1 }
  0x1f   : > { %p893_p6 = scmp.lt.s32.totalorder %s7035_s0, 7  ;;  %p944_p7 = scmp.lt.s32.totalorder %s8417_s26, 1 }
  0x20   : > { %s8609_s7 = scalar_select %p899_p5, %s8413_s5, 1 }
  0x21   : > { %s11120_s0 = smov (!%p893_p6, %s7035_s0), 7  ;;  %s11047_s2 = sld [smem:[#allocation22_spill]] }
  0x22   : > { %s7834_s30 = sshll.u32 %s8609_s7, 4  ;;  %s7833_s4 = sshll.u32 %s11120_s0, 4 }
  0x23   : > { %s11049_s23 = sld [smem:[#allocation14_spill]]  ;;  %s7837_s3 = sshll.u32 %s8609_s7, 10 }
  0x24   : > { %s11050_s10 = sld [smem:[#allocation24_spill]]  ;;  %s8660_s29 = scalar_lea.vmem %s11002_s16, %s7837_s3 }
  0x25   : > { %s943_s20 = scalar_lea.vmem %s11005_s19, %s8609_s7  ;;  %s11122_s26 = smov (!%p944_p7, %s8417_s26), 1 }
  0x26   : > { %s11051_s8 = sld [smem:[#allocation29_spill]] }
  0x27   : > { %s8619_s28 = scalar_lea.vmem %s11047_s2, %s7834_s30  ;;  %s11052_s9 = sld [smem:[#allocation3_spill]] }
  0x28   : > { %11048 = sst [smem:[#allocation9_spill]] %s8619_s28  ;;  %s7836_s28 = sshll.u32 %s8609_s7, 8 }
  0x29   : > { %s897_s21 = scalar_lea.vmem %s11049_s23, %s7833_s4  ;;  %s8645_s6 = scalar_lea.vmem %s11000_s14, %s7836_s28 }
  0x2a   : > { %s8627_s5 = scalar_lea.vmem %s11050_s10, %s7834_s30  ;;  %s8650_s4 = scalar_lea.vmem %s11001_s15, %s7834_s30 }
  0x2b   : > { %s940_s28 = scalar_lea.vmem %s11004_s18, %s8609_s7  ;;  %s7047_s30 = sshll.u32 %s11122_s26, 2 }
  0x2c   : > { %s8676_s25 = scalar_lea.vmem %s11051_s8, %s7047_s30 }
  0x2d   : > { %p7048_p8 = scmp.ne.s32.totalorder %s11052_s9, 0 }
  0x2e   : > { %s11053_s26 = sld [smem:[#allocation15_spill]] (!%p7048_p8)  ;;  %s8431_s30 = smov (!%p7048_p8), 32  }
  0x2f   : > { %952 = sbr.rel (%p7048_p8) target bundleno = 932 (0x3a4), region = 120  ;;  %s11054_s3 = sld [smem:[#allocation17_spill]] (!%p7048_p8) }
  0x30   : > { %s11055_s23 = sld [smem:[#allocation16_spill]] (!%p7048_p8)  ;;  %s8432_s10 = smov (!%p7048_p8), 96  }
  0x31   : > { %s8433_s24 = smov (!%p7048_p8), 64   ;;  %s11056_s9 = sld [smem:[#allocation18_spill]] (!%p7048_p8) }
  0x32   : > { %s11057_s27 = sld [smem:[#allocation19_spill]] (!%p7048_p8) }
  0x33   : > { %s11058_s22 = sld [smem:[#allocation20_spill]] (!%p7048_p8) }
  0x34   : > { %v953_v0 = vld [vmem:[%s897_s21] sm:$0xff]  ;;  %v955_v1 = vld [vmem:[%s897_s21 + $0x10] sm:$0xff]  ;;  %v954_v6 = vld [vmem:[%s897_s21 + $0x8] sm:$0xff]  ;;  %vm1103_vm0 = vcmask 130048   ;;  %vm1145_vm1 = vcmask 1041408   ;;  %vm1237_vm2 = vcmask 1043456  }
  0x35   : > { %v8079_v2 = vpack.i.bf16 %v955_v1, %v953_v0  ;;  %v957_v3 = vld [vmem:[%s897_s21 + $0x20] sm:$0xff]  ;;  %v959_v4 = vld [vmem:[%s897_s21 + $0x30] sm:$0xff]  ;;  %v956_v7 = vld [vmem:[%s897_s21 + $0x18] sm:$0xff]  ;;  %vm1162_vm3 = vcmask 1046528   ;;  %vm1254_vm4 = vcmask 261120   ;;  %vm1212_vm5 = vcmask 1044480  }
  0x36   : > { %v8088_v5 = vpack.i.bf16 %v959_v4, %v957_v3  ;;  %v958_v8 = vld [vmem:[%s897_s21 + $0x28] sm:$0xff]  ;;  %v960_v9 = vld [vmem:[%s897_s21 + $0x38] sm:$0xff]  ;;  %v8081_v10 = vpack.i.bf16 %v956_v7, %v954_v6  ;;  %v7838_v12 = vld [vmem:[%s11053_s26] sm:$0xff]  ;;  %vm1187_vm6 = vcmask 1045504   ;;  %vm1259_vm7 = vcmask 523264  }
  0x37   : > { %8080 = vxpose.xlu0.b32.start [1/2] (short) (narrow) %v8079_v2, 8  ;;  %v8090_v11 = vpack.i.bf16 %v960_v9, %v958_v8  ;;  %1117 = vmatpush.bf16.msra.mxu0 %v7838_v12  ;;  %v7848_v21 = vld [vmem:[%s11054_s3 + $0x48] sm:$0xff]  ;;  %v7847_v22 = vld [vmem:[%s11054_s3 + $0x40] sm:$0xff]  ;;  %v7846_v0 = vld [vmem:[%s11054_s3 + $0x38] sm:$0xff]  ;;  %vm1264_vm8 = vcmask 785408  }
  0x38   : > { %8089 = vxpose.xlu1.b32.start [1/2] (short) (narrow) %v8088_v5, 8  ;;  %1388 = vmatpush.bf16.msra.mxu2 %v7848_v21  ;;  %v8127_v23 = vld [vmem:[%s11055_s23] ss:$0 sm:$0xff] }
  0x39   : > { %1363 = vmatpush.bf16.msra.mxu1 %v7846_v0  ;;  %8015 = vmatpush.bf16.msra.mxu3 %v7846_v0 }
  0x3c   : > { %1389 = vmatpush.bf16.msra.mxu2 %v7847_v22 }
  0x3f   : > { %8082 = vxpose.xlu0.b32.end [2/2] (short) (narrow) %v8081_v10, 8 }
  0x40   : > { %8091 = vxpose.xlu1.b32.end [2/2] (short) (narrow) %v8090_v11, 8 }
  0xdb   : > { %v8083_v13 = vpop.trf.xlu0 }
  0xdc   : > { %v8087_v14 = vunpack.i.h.bf16 %v8083_v13  ;;  %v8084_v15 = vunpack.i.l.bf16 %v8083_v13  ;;  %v8092_v16 = vpop.trf.xlu1 }
  0xdd   : > { %v8096_v18 = vunpack.i.h.bf16 %v8092_v16  ;;  %v8093_v19 = vunpack.i.l.bf16 %v8092_v16 }
  0xde   : > { %v1089_v17 = vpack.c.bf16 %v8087_v14, %v8084_v15 }
  0xdf   : > { %v1090_v20 = vpack.c.bf16 %v8096_v18, %v8093_v19 }
  0xe0   : > { %7053 = vmatmul.msk.bf16.vlgmr.msra.gmra.mxu0 %vm1103_vm0, %v1089_v17 }
  0xf0   : > { %7054 = vmatmul.msk.bf16.gmra.mxu0 %vm1103_vm0, %v1090_v20 }
 0x15d   : > { %v1119_v24 = vpop.f32.mrf.mxu0 }
 0x15e   : > { %v1120_v25 = vadd.f32 %v8127_v23, %v1119_v24 }
 0x160   : > { %v1129_v26 = vmax.f32 %v1120_v25, 0.0 }
 0x162   : > { %v1137_v27 = vrot.slane %v1129_v26, 6 }
 0x164   : > { %v8692_v30 = vsel %vm1145_vm1, 0.0, %v1137_v27  ;;  %v8695_v31 = vsel %vm1145_vm1, %v1137_v27, 0.0 }
 0x165   : > { %v1121_v28 = vpop.f32.mrf.mxu0  ;;  %v1239_v34 = vrot.slane %v8695_v31, 4  ;;  %v1238_v35 = vrot.slane %v8692_v30, 4  ;;  %v1164_v36 = vrot.slane %v8695_v31, 1  ;;  %v1163_v39 = vrot.slane %v8692_v30, 1 }
 0x166   : > { %v1122_v29 = vadd.f32 %v8127_v23, %v1121_v28 }
 0x167   : > { %v1240_v46 = vsel %vm1237_vm2, %v1238_v35, %v1239_v34  ;;  %v1165_v49 = vsel %vm1162_vm3, %v1163_v39, %v1164_v36 }
 0x168   : > { %v1130_v32 = vmax.f32 %v1122_v29, 0.0  ;;  %v1189_v29 = vrot.slane %v8695_v31, 2 }
 0x16a   : > { %v1138_v33 = vrot.slane %v1130_v32, 6  ;;  %v1188_v32 = vrot.slane %v8692_v30, 2 }
 0x16c   : > { %v8701_v37 = vsel %vm1145_vm1, 0.0, %v1138_v33  ;;  %v8704_v38 = vsel %vm1145_vm1, %v1138_v33, 0.0  ;;  %v1190_v34 = vsel %vm1187_vm6, %v1188_v32, %v1189_v29 }
 0x16d   : > { %v1167_v40 = vrot.slane %v8704_v38, 1  ;;  %v1242_v41 = vrot.slane %v8704_v38, 4  ;;  %v1124_v42 = vpop.f32.mrf.mxu0  ;;  %v1241_v44 = vrot.slane %v8701_v37, 4  ;;  %v1166_v45 = vrot.slane %v8701_v37, 1 }
 0x16e   : > { %v1125_v43 = vadd.f32 %v8127_v23, %v1124_v42  ;;  %v1192_v27 = vrot.slane %v8704_v38, 2  ;;  %v1191_v28 = vrot.slane %v8701_v37, 2  ;;  %v1217_v36 = vrot.slane %v8704_v38, 3  ;;  %v7844_v38 = vld [vmem:[%s11054_s3 + $0x28] sm:$0xff] }
 0x16f   : > { %v1243_v48 = vsel %vm1237_vm2, %v1241_v44, %v1242_v41  ;;  %v1168_v50 = vsel %vm1162_vm3, %v1166_v45, %v1167_v40  ;;  %v1216_v39 = vrot.slane %v8701_v37, 3  ;;  %v1214_v40 = vrot.slane %v8695_v31, 3  ;;  %v7845_v45 = vld [vmem:[%s11054_s3 + $0x30] sm:$0xff]  ;;  %v7843_v31 = vld [vmem:[%s11054_s3 + $0x20] sm:$0xff] }
 0x170   : > { %v1131_v47 = vmax.f32 %v1125_v43, 0.0  ;;  %v1270_v51 = vpack.c.bf16 %v1243_v48, %v1240_v46  ;;  %v8112_v52 = vpack.i.bf16 %v1168_v50, %v1165_v49  ;;  %v1193_v33 = vsel %vm1187_vm6, %v1191_v28, %v1192_v27  ;;  %1364 = vmatpush.bf16.msra.mxu1 %v7845_v45  ;;  %8016 = vmatpush.bf16.msra.mxu3 %v7845_v45  ;;  %v7842_v46 = vld [vmem:[%s11054_s3 + $0x18] sm:$0xff]  ;;  %v7840_v48 = vld [vmem:[%s11054_s3 + $0x8] sm:$0xff]  ;;  %v7839_v49 = vld [vmem:[%s11054_s3] sm:$0xff] }
 0x171   : > { %v8117_v35 = vpack.i.bf16 %v1193_v33, %v1190_v34  ;;  %v1213_v41 = vrot.slane %v8692_v30, 3  ;;  %v1218_v42 = vsel %vm1212_vm5, %v1216_v39, %v1217_v36 }
 0x172   : > { %7095 = vmatmul.msk.bf16.vlgmr.msra.gmra.mxu2 %vm1254_vm4, %v1270_v51  ;;  %8113 = vrot.lane.b32.xlu1 %v8112_v52, %s8431_s30  ;;  %v1139_v53 = vrot.slane %v1131_v47, 6  ;;  %v7841_v47 = vld [vmem:[%s11054_s3 + $0x10] sm:$0xff] }
 0x173   : > { %v1215_v43 = vsel %vm1212_vm5, %v1213_v41, %v1214_v40 }
 0x174   : > { %v8718_v56 = vsel %vm1145_vm1, 0.0, %v1139_v53  ;;  %v1152_v57 = vsel %vm1145_vm1, %v1139_v53, 0.0  ;;  %v8122_v44 = vpack.i.bf16 %v1218_v42, %v1215_v43  ;;  %1365 = vmatpush.bf16.msra.mxu1 %v7844_v38  ;;  %8017 = vmatpush.bf16.msra.mxu3 %v7844_v38  ;;  %v8434_v38 = vmov 32.0  }
 0x175   : > { %v1126_v54 = vpop.f32.mrf.mxu0  ;;  %v1220_v60 = vrot.slane %v1152_v57, 3  ;;  %v1219_v61 = vrot.slane %v8718_v56, 3  ;;  %v1169_v62 = vrot.slane %v8718_v56, 1  ;;  %v1170_v63 = vrot.slane %v1152_v57, 1 }
 0x176   : > { %v1127_v55 = vadd.f32 %v8127_v23, %v1126_v54  ;;  %v1245_v1 = vrot.slane %v1152_v57, 4  ;;  %v1244_v4 = vrot.slane %v8718_v56, 4  ;;  %v1195_v22 = vrot.slane %v1152_v57, 2 }
 0x177   : > { %v1221_v11 = vsel %vm1212_vm5, %v1219_v61, %v1220_v60  ;;  %v1171_v13 = vsel %vm1162_vm3, %v1169_v62, %v1170_v63  ;;  %v1194_v23 = vrot.slane %v8718_v56, 2  ;;  %8132 = vrcp.f32 %v8434_v38 }
 0x178   : > { %v1132_v58 = vmax.f32 %v1127_v55, 0.0  ;;  %v1246_v16 = vsel %vm1237_vm2, %v1244_v4, %v1245_v1  ;;  %1366 = vmatpush.bf16.msra.mxu1 %v7843_v31  ;;  %8018 = vmatpush.bf16.msra.mxu3 %v7843_v31 }
 0x179   : > { %v1196_v25 = vsel %vm1187_vm6, %v1194_v23, %v1195_v22 }
 0x17a   : > { %v1140_v59 = vrot.slane %v1132_v58, 6 }
 0x17c   : > { %v8727_v2 = vsel %vm1145_vm1, 0.0, %v1140_v59  ;;  %v1153_v3 = vsel %vm1145_vm1, %v1140_v59, 0.0  ;;  %1367 = vmatpush.bf16.msra.mxu1 %v7842_v46  ;;  %8019 = vmatpush.bf16.msra.mxu3 %v7842_v46 }
 0x17d   : > { %v1223_v5 = vrot.slane %v1153_v3, 3  ;;  %v1248_v6 = vrot.slane %v1153_v3, 4  ;;  %v1222_v7 = vrot.slane %v8727_v2, 3  ;;  %v1172_v8 = vrot.slane %v8727_v2, 1  ;;  %v8133_v31 = vpop.eup %8132 }
 0x17e   : > { %v1173_v9 = vrot.slane %v1153_v3, 1  ;;  %v1247_v10 = vrot.slane %v8727_v2, 4  ;;  %v1198_v20 = vrot.slane %v1153_v3, 2  ;;  %v1197_v21 = vrot.slane %v8727_v2, 2 }
 0x17f   : > { %v1224_v12 = vsel %vm1212_vm5, %v1222_v7, %v1223_v5  ;;  %v1424_v46 = vmul.f32 32.0, %v8133_v31  ;;  %vm1428_vm9 = vweird.f32 %v8133_v31 }
 0x180   : > { %v8107_v14 = vpack.i.bf16 %v1224_v12, %v1221_v11  ;;  %v1174_v15 = vsel %vm1162_vm3, %v1172_v8, %v1173_v9  ;;  %v1249_v17 = vsel %vm1237_vm2, %v1247_v10, %v1248_v6  ;;  %v1199_v24 = vsel %vm1187_vm6, %v1197_v21, %v1198_v20  ;;  %1368 = vmatpush.bf16.msra.mxu1 %v7841_v47  ;;  %v8129_v20 = vld [vmem:[%s11057_s27] ss:$0 sm:$0xff] }
 0x181   : > { %v8097_v18 = vpack.i.bf16 %v1174_v15, %v1171_v13  ;;  %v1272_v19 = vpack.c.bf16 %v1249_v17, %v1246_v16  ;;  %v8102_v26 = vpack.i.bf16 %v1199_v24, %v1196_v25  ;;  %8020 = vmatpush.bf16.msra.mxu3 %v7841_v47  ;;  %v1425_v47 = vsub.f32 1.0, %v1424_v46 }
 0x182   : > { %8108 = vrot.lane.b32.xlu0 %v8107_v14, %s8432_s10 }
 0x183   : > { %8098 = vrot.lane.b32.xlu2 %v8097_v18, %s8431_s30  ;;  %7096 = vmatmul.msk.bf16.gmra.mxu2 %vm1254_vm4, %v1272_v19 }
 0x184   : > { %1369 = vmatpush.bf16.msra.mxu1 %v7840_v48 }
 0x185   : > { %8021 = vmatpush.bf16.msra.mxu3 %v7840_v48  ;;  %v1426_v48 = vmul.f32 %v8133_v31, %v1425_v47 }
 0x188   : > { %1370 = vmatpush.bf16.msra.mxu1 %v7839_v49 }
 0x189   : > { %8022 = vmatpush.bf16.msra.mxu3 %v7839_v49  ;;  %v1427_v49 = vadd.f32 %v8133_v31, %v1426_v48 }
 0x18b   : > { %8103 = vrot.lane.b32.xlu2 %v8102_v26, %s8433_s24 }
 0x193   : > { %8118 = vrot.lane.b32.xlu2 %v8117_v35, %s8433_s24  ;;  %s11059_s24 = sld [smem:[#allocation21_spill]] }
 0x19b   : > { %8123 = vrot.lane.b32.xlu2 %v8122_v44, %s8432_s10 }
 0x1dd   : > { %v8099_v50 = vpop.permute.xlu2 %8098 }
 0x1de   : > { %v8101_v54 = vunpack.i.h.bf16 %v8099_v50  ;;  %v8100_v55 = vunpack.i.l.bf16 %v8099_v50  ;;  %v1429_v50 = vsel %vm1428_vm9, %v8133_v31, %v1427_v49 }
 0x1e0   : > { %v1258_v63 = vsel %vm1254_vm4, %v8727_v2, %v8101_v54  ;;  %v1257_v0 = vsel %vm1254_vm4, %v8718_v56, %v8100_v55 }
 0x1e4   : > { %v8114_v53 = vpop.permute.xlu1 %8113 }
 0x1e5   : > { %v8104_v51 = vpop.permute.xlu2 %8103  ;;  %v8116_v57 = vunpack.i.h.bf16 %v8114_v53  ;;  %v8115_v58 = vunpack.i.l.bf16 %v8114_v53 }
 0x1e6   : > { %v8106_v59 = vunpack.i.h.bf16 %v8104_v51  ;;  %v8105_v60 = vunpack.i.l.bf16 %v8104_v51 }
 0x1e7   : > { %v1256_v3 = vsel %vm1254_vm4, %v8701_v37, %v8116_v57  ;;  %v1255_v4 = vsel %vm1254_vm4, %v8692_v30, %v8115_v58  ;;  %v8128_v30 = vld [vmem:[%s11056_s9] ss:$0 sm:$0xff] }
 0x1e8   : > { %v1262_v10 = vsel %vm1259_vm7, %v1257_v0, %v8105_v60  ;;  %v1263_v11 = vsel %vm1259_vm7, %v1258_v63, %v8106_v59 }
 0x1ed   : > { %v8119_v52 = vpop.permute.xlu2 %8118 }
 0x1ee   : > { %v8121_v61 = vunpack.i.h.bf16 %v8119_v52  ;;  %v8120_v62 = vunpack.i.l.bf16 %v8119_v52 }
 0x1f0   : > { %v1260_v12 = vsel %vm1259_vm7, %v1255_v4, %v8120_v62  ;;  %v1261_v2 = vsel %vm1259_vm7, %v1256_v3, %v8121_v61 }
 0x1f4   : > { %v8109_v1 = vpop.permute.xlu0 %8108 }
 0x1f5   : > { %v8111_v5 = vunpack.i.h.bf16 %v8109_v1  ;;  %v8110_v6 = vunpack.i.l.bf16 %v8109_v1  ;;  %v8124_v7 = vpop.permute.xlu2 %8123  ;;  %v1391_v37 = vpop.f32.mrf.mxu2 }
 0x1f6   : > { %v8126_v8 = vunpack.i.h.bf16 %v8124_v7  ;;  %v8125_v9 = vunpack.i.l.bf16 %v8124_v7 }
 0x1f7   : > { %v1267_v13 = vsel %vm1264_vm8, %v1262_v10, %v8110_v6  ;;  %v1268_v14 = vsel %vm1264_vm8, %v1263_v11, %v8111_v5 }
 0x1f8   : > { %v1265_v56 = vsel %vm1264_vm8, %v1260_v12, %v8125_v9  ;;  %v1266_v15 = vsel %vm1264_vm8, %v1261_v2, %v8126_v8  ;;  %v1271_v16 = vpack.c.bf16 %v1268_v14, %v1267_v13 }
 0x1f9   : > { %v1269_v17 = vpack.c.bf16 %v1266_v15, %v1265_v56 }
 0x1fa   : > { %1376 = vmatmul.bf16.vlgmr.msra.gmra.mxu3 %v1271_v16 }
 0x1fb   : > { %1371 = vmatmul.bf16.vlgmr.msra.gmra.mxu1 %v1269_v17 }
 0x1fd   : > { %v1393_v21 = vpop.f32.mrf.mxu2 }
 0x206   : > { %v1396_v32 = vpop.f32.mrf.mxu2 }
 0x20e   : > { %v1398_v41 = vpop.f32.mrf.mxu2 }
 0x278   : > { %v1372_v18 = vpop.f32.mrf.mxu1 }
 0x279   : > { %v1373_v19 = vadd.f32 %v8128_v30, %v1372_v18 }
 0x27b   : > { %v1392_v22 = vadd.f32 %v1391_v37, %v1373_v19 }
 0x27d   : > { %v1405_v23 = vadd.f32 %v8129_v20, %v1392_v22  ;;  %v1377_v24 = vpop.f32.mrf.mxu3  ;;  %v8130_v22 = vld [vmem:[%s11058_s22] ss:$0 sm:$0xff] }
 0x27e   : > { %v1378_v28 = vadd.f32 %v8128_v30, %v1377_v24 }
 0x27f   : > { %v1411_v25 = vsel %vm1254_vm4, %v1405_v23, 0.0 }
 0x280   : > { %v1374_v26 = vpop.f32.mrf.mxu1  ;;  %1412 = vadd.xlane.f32.xlu2 %v1411_v25  ;;  %v1397_v34 = vadd.f32 %v1396_v32, %v1378_v28  ;;  %v8131_v25 = vld [vmem:[%s11059_s24] ss:$0 sm:$0xff] }
 0x281   : > { %v1375_v27 = vadd.f32 %v8128_v30, %v1374_v26 }
 0x282   : > { %v1407_v40 = vadd.f32 %v8129_v20, %v1397_v34 }
 0x283   : > { %v1394_v29 = vadd.f32 %v1393_v21, %v1375_v27 }
 0x284   : > { %v1417_v43 = vsel %vm1254_vm4, %v1407_v40, 0.0 }
 0x285   : > { %v1406_v33 = vadd.f32 %v8129_v20, %v1394_v29  ;;  %v1379_v36 = vpop.f32.mrf.mxu3 }
 0x286   : > { %v1380_v39 = vadd.f32 %v8128_v30, %v1379_v36 }
 0x287   : > { %v1414_v35 = vsel %vm1254_vm4, %v1406_v33, 0.0 }
 0x288   : > { %1415 = vadd.xlane.f32.xlu2 %v1414_v35  ;;  %v1399_v42 = vadd.f32 %v1398_v41, %v1380_v39 }
 0x28a   : > { %v1408_v44 = vadd.f32 %v8129_v20, %v1399_v42 }
 0x28c   : > { %v1420_v45 = vsel %vm1254_vm4, %v1408_v44, 0.0 }
 0x290   : > { %1418 = vadd.xlane.f32.xlu2 %v1417_v43 }
 0x298   : > { %1421 = vadd.xlane.f32.xlu2 %v1420_v45 }
 0x2f3   : > { %v1413_v51 = vpop.xlane.xlu2 %1412 }
 0x2f4   : > { %v1430_v52 = vmul.f32 %v1429_v50, %v1413_v51 }
 0x2f6   : > { %v1434_v53 = vsub.f32 %v1405_v23, %v1430_v52 }
 0x2f8   : > { %v1438_v54 = vmul.f32 %v1434_v53, %v1434_v53 }
 0x2fa   : > { %v1442_v55 = vsel %vm1254_vm4, %v1438_v54, 0.0 }
 0x2fb   : > { %1443 = vadd.xlane.f32.xlu2 %v1442_v55  ;;  %v1416_v57 = vpop.xlane.xlu2 %1415 }
 0x2fc   : > { %v1431_v58 = vmul.f32 %v1429_v50, %v1416_v57 }
 0x2fe   : > { %v1435_v59 = vsub.f32 %v1406_v33, %v1431_v58 }
 0x300   : > { %v1439_v60 = vmul.f32 %v1435_v59, %v1435_v59 }
 0x302   : > { %v1445_v61 = vsel %vm1254_vm4, %v1439_v60, 0.0 }
 0x303   : > { %1446 = vadd.xlane.f32.xlu2 %v1445_v61  ;;  %v1419_v62 = vpop.xlane.xlu2 %1418 }
 0x304   : > { %v1432_v63 = vmul.f32 %v1429_v50, %v1419_v62 }
 0x306   : > { %v8795_v0 = vsub.f32 %v1407_v40, %v1432_v63 }
 0x308   : > { %v1440_v1 = vmul.f32 %v8795_v0, %v8795_v0 }
 0x30a   : > { %v1448_v3 = vsel %vm1254_vm4, %v1440_v1, 0.0 }
 0x30b   : > { %1449 = vadd.xlane.f32.xlu1 %v1448_v3  ;;  %v1422_v4 = vpop.xlane.xlu2 %1421 }
 0x30c   : > { %v1433_v5 = vmul.f32 %v1429_v50, %v1422_v4 }
 0x30e   : > { %v8800_v6 = vsub.f32 %v1408_v44, %v1433_v5 }
 0x310   : > { %v1441_v7 = vmul.f32 %v8800_v6, %v8800_v6 }
 0x312   : > { %v1451_v8 = vsel %vm1254_vm4, %v1441_v7, 0.0 }
 0x313   : > { %1452 = vadd.xlane.f32.xlu2 %v1451_v8 }
 0x36e   : > { %v1444_v9 = vpop.xlane.xlu2 %1443 }
 0x36f   : > { %v1454_v10 = vmul.f32 %v1444_v9, %v1429_v50 }
 0x371   : > { %v1458_v11 = vadd.f32 1e-05, %v1454_v10 }
 0x373   : > { %8134 = vrsqrt.f32 %v1458_v11  ;;  %vm1468_vm11 = vweird.f32 %v1458_v11 }
 0x376   : > { %v1447_v12 = vpop.xlane.xlu2 %1446 }
 0x377   : > { %v1455_v2 = vmul.f32 %v1447_v12, %v1429_v50 }
 0x379   : > { %v8135_v13 = vpop.eup %8134  ;;  %v1459_v14 = vadd.f32 1e-05, %v1455_v2 }
 0x37a   : > { %v1463_v56 = vmul.f32 %v8135_v13, %v1458_v11  ;;  %vm1469_vm10 = vweird.f32 %v8135_v13 }
 0x37b   : > { %8136 = vrsqrt.f32 %v1459_v14  ;;  %vm1470_vm12 = vmor %vm1468_vm11, %vm1469_vm10  ;;  %vm1478_vm14 = vweird.f32 %v1459_v14 }
 0x37c   : > { %v1464_v15 = vmul.f32 %v8135_v13, %v1463_v56 }
 0x37e   : > { %v1465_v16 = vmul.f32 0.5, %v1464_v15  ;;  %v1450_v17 = vpop.xlane.xlu1 %1449 }
 0x37f   : > { %v1456_v37 = vmul.f32 %v1450_v17, %v1429_v50 }
 0x380   : > { %v1466_v30 = vsub.f32 1.5, %v1465_v16 }
 0x381   : > { %v8137_v18 = vpop.eup %8136  ;;  %v1460_v19 = vadd.f32 1e-05, %v1456_v37 }
 0x382   : > { %v1467_v20 = vmul.f32 %v8135_v13, %v1466_v30  ;;  %v1473_v21 = vmul.f32 %v8137_v18, %v1459_v14  ;;  %vm1479_vm13 = vweird.f32 %v8137_v18 }
 0x383   : > { %8138 = vrsqrt.f32 %v1460_v19  ;;  %vm1480_vm15 = vmor %vm1478_vm14, %vm1479_vm13  ;;  %vm1488_vm1 = vweird.f32 %v1460_v19 }
 0x384   : > { %v1471_v23 = vsel %vm1470_vm12, %v8135_v13, %v1467_v20  ;;  %v1474_v24 = vmul.f32 %v8137_v18, %v1473_v21 }
 0x385   : > { %v1502_v26 = vmul.f32 %v1471_v23, %v1434_v53 }
 0x386   : > { %v1475_v27 = vmul.f32 0.5, %v1474_v24  ;;  %v1453_v28 = vpop.xlane.xlu2 %1452 }
 0x387   : > { %v1509_v29 = vmul.f32 %v8130_v22, %v1502_v26  ;;  %v1457_v32 = vmul.f32 %v1453_v28, %v1429_v50 }
 0x388   : > { %v1476_v33 = vsub.f32 1.5, %v1475_v27 }
 0x389   : > { %v8139_v34 = vpop.eup %8138  ;;  %v1516_v35 = vadd.f32 %v8131_v25, %v1509_v29  ;;  %v1461_v36 = vadd.f32 1e-05, %v1457_v32 }
 0x38a   : > { %v1477_v39 = vmul.f32 %v8137_v18, %v1476_v33  ;;  %v1483_v40 = vmul.f32 %v8139_v34, %v1460_v19  ;;  %vm1489_vm0 = vweird.f32 %v8139_v34 }
 0x38b   : > { %1520 = vst.msk [vmem:[#allocation2] sm:$0xff] %vm1254_vm4, %v1516_v35  ;;  %8140 = vrsqrt.f32 %v1461_v36  ;;  %vm1490_vm2 = vmor %vm1488_vm1, %vm1489_vm0  ;;  %vm1498_vm5 = vweird.f32 %v1461_v36 }
 0x38c   : > { %v1481_v41 = vsel %vm1480_vm15, %v8137_v18, %v1477_v39  ;;  %v1484_v42 = vmul.f32 %v8139_v34, %v1483_v40 }
 0x38d   : > { %v1503_v43 = vmul.f32 %v1481_v41, %v1435_v59 }
 0x38e   : > { %v1485_v44 = vmul.f32 0.5, %v1484_v42 }
 0x38f   : > { %v1510_v45 = vmul.f32 %v8130_v22, %v1503_v43 }
 0x390   : > { %v1486_v38 = vsub.f32 1.5, %v1485_v44 }
 0x391   : > { %v8141_v31 = vpop.eup %8140  ;;  %v1517_v46 = vadd.f32 %v8131_v25, %v1510_v45 }
 0x392   : > { %v1487_v47 = vmul.f32 %v8139_v34, %v1486_v38  ;;  %v1493_v48 = vmul.f32 %v8141_v31, %v1461_v36  ;;  %vm1499_vm3 = vweird.f32 %v8141_v31 }
 0x393   : > { %1521 = vst.msk [vmem:[#allocation2 + $0x8] sm:$0xff] %vm1254_vm4, %v1517_v46  ;;  %vm1500_vm6 = vmor %vm1498_vm5, %vm1499_vm3 }
 0x394   : > { %v1491_v49 = vsel %vm1490_vm2, %v8139_v34, %v1487_v47  ;;  %v1494_v50 = vmul.f32 %v8141_v31, %v1493_v48 }
 0x395   : > { %v1504_v51 = vmul.f32 %v1491_v49, %v8795_v0 }
 0x396   : > { %v1495_v52 = vmul.f32 0.5, %v1494_v50 }
 0x397   : > { %v1511_v53 = vmul.f32 %v8130_v22, %v1504_v51 }
 0x398   : > { %v1496_v54 = vsub.f32 1.5, %v1495_v52 }
 0x399   : > { %v1518_v55 = vadd.f32 %v8131_v25, %v1511_v53 }
 0x39a   : > { %v1497_v57 = vmul.f32 %v8141_v31, %v1496_v54 }
 0x39b   : > { %1522 = vst.msk [vmem:[#allocation2 + $0x10] sm:$0xff] %vm1254_vm4, %v1518_v55 }
 0x39c   : > { %v1501_v58 = vsel %vm1500_vm6, %v8141_v31, %v1497_v57 }
 0x39d   : > { %v1505_v59 = vmul.f32 %v1501_v58, %v8800_v6 }
 0x39f   : > { %v1512_v60 = vmul.f32 %v8130_v22, %v1505_v59 }
 0x3a1   : > { %v1519_v61 = vadd.f32 %v8131_v25, %v1512_v60 }
 0x3a3   : > { %1523 = vst.msk [vmem:[#allocation2 + $0x18] sm:$0xff] %vm1254_vm4, %v1519_v61 }
 0x3a4 PF: > { %s11060_s26 = sld [smem:[#allocation9_spill]]  ;;  %v1524_v0 = vld [vmem:[#allocation2] sm:$0xff]  ;;  %v1525_v1 = vld [vmem:[#allocation2 + $0x8] sm:$0xff]  ;;  %vm1550_vm7 = vcmask 261120   ;;  %v1526_v4 = vld [vmem:[#allocation2 + $0x10] sm:$0xff]  ;;  %s8435_s2 = smov 104  }
 0x3a5   : > { %v1528_v3 = vpack.c.bf16 %v1525_v1, %v1524_v0  ;;  %s11061_s9 = sld [smem:[#allocation23_spill]]  ;;  %s8436_s27 = smov 120   ;;  %vm1621_vm4 = vcmask 1047556   ;;  %vm3097_vm8 = vcmask 64512   ;;  %vm3613_vm9 = vcmask 1043456  }
 0x3a6   : > { %s8437_s23 = smov 112   ;;  %s8438_s30 = smov 96   ;;  %vm4407_vm10 = vcmask 130048   ;;  %vm4412_vm11 = vcmask 195584  }
 0x3a7   : > { %s8439_s22 = smov 64   ;;  %s8442_s8 = smov 16  }
 0x3a8   : > { %s8443_s10 = smov 24   ;;  %s8444_s24 = smov 8  }
 0x3a9   : > { %s11099_s21 = scalar_lea.vmem %s10997_s11, %s8609_s7 }
 0x3aa   : > { %v7850_v62 = vld [vmem:[%s11060_s26 + $0x8] sm:$0xff]  ;;  %v7849_v63 = vld [vmem:[%s11060_s26] sm:$0xff]  ;;  %v1527_v5 = vld [vmem:[#allocation2 + $0x18] sm:$0xff] }
 0x3ab   : > { %1563 = vmatpush.bf16.msra.mxu0 %v7850_v62  ;;  %v1529_v6 = vpack.c.bf16 %v1527_v5, %v1526_v4  ;;  %s11062_s0 = scalar_lea.vmem %s11061_s9, %s8609_s7  ;;  %v8441_v5 = vmov 1934713408  }
 0x3ac   : > { %v8287_v9 = vld [vmem:[%s11062_s0] ss:$0 sm:$0xff]  ;;  %s11100_s0 = scalar_lea.vmem %s10998_s12, %s8609_s7 }
 0x3af   : > { %1564 = vmatpush.bf16.msra.mxu0 %v7849_v63  ;;  %v8440_v63 = vmov 1983009808  }
 0x3b0   : > { %v1626_v0 = vunpack.c.l.s4 %v8440_v63 }
 0x3b2   : > { %7105 = vmatmul.msk.bf16.vlgmr.msra.gmra.mxu0 %vm1550_vm7, %v1528_v3 }
 0x3c2   : > { %7106 = vmatmul.msk.bf16.gmra.mxu0 %vm1550_vm7, %v1529_v6  ;;  %v1650_v6 = vunpack.c.l.s4 %v8441_v5 }
 0x42f   : > { %v1566_v7 = vpop.f32.mrf.mxu0 }
 0x430   : > { %v8834_v14 = vadd.f32 %v8287_v9, %v1566_v7 }
 0x432   : > { %v8872_v38 = vmul.f32 0.35355338, %v8834_v14 }
 0x434   : > { %v1623_v7 = vrot.slane %v8872_v38, 4 }
 0x437   : > { %v1568_v8 = vpop.f32.mrf.mxu0 }
 0x438   : > { %v8826_v11 = vadd.f32 %v8287_v9, %v1568_v8 }
 0x43a   : > { %v8845_v16 = vmul.f32 0.35355338, %v8826_v11  ;;  %v8217_v52 = vpack.i.bf16 %v8826_v11, %v8834_v14 }
 0x43f   : > { %v1571_v10 = vpop.f32.mrf.mxu0 }
 0x440   : > { %v8828_v12 = vadd.f32 %v8287_v9, %v1571_v10  ;;  %v1679_v10 = vrot.slane %v8845_v16, 4 }
 0x442   : > { %v8152_v2 = vpack.i.bf16 %v8828_v12, %v8826_v11  ;;  %v8864_v44 = vmul.f32 0.35355338, %v8828_v12 }
 0x444   : > { %8153 = vrot.lane.b32.xlu1 %v8152_v2, %s8435_s2  ;;  %8143 = vrot.lane.b32.xlu0 %v8152_v2, %s8436_s27  ;;  %v8202_v46 = vpack.i.bf16 %v8872_v38, %v8864_v44 }
 0x447   : > { %v1573_v13 = vpop.f32.mrf.mxu0 }
 0x448   : > { %v8836_v56 = vadd.f32 %v8287_v9, %v1573_v13 }
 0x44a   : > { %v8162_v15 = vpack.i.bf16 %v8836_v56, %v8834_v14  ;;  %v8882_v48 = vmul.f32 0.35355338, %v8836_v56  ;;  %v8237_v51 = vpack.i.bf16 %v8836_v56, %v8828_v12 }
 0x44c   : > { %8148 = vrot.lane.b32.xlu0 %v8152_v2, %s8437_s23  ;;  %8163 = vrot.lane.b32.xlu2 %v8162_v15, %s8437_s23 }
 0x44d   : > { %8158 = vrot.lane.b32.xlu1 %v8162_v15, %s8436_s27 }
 0x454   : > { %8168 = vrot.lane.b32.xlu2 %v8162_v15, %s8435_s2 }
 0x45c   : > { %1586 = vrot.lane.b32.xlu2 %v8845_v16, %s8436_s27 }
 0x4a6   : > { %v8164_v17 = vpop.permute.xlu2 %8163 }
 0x4a7   : > { %v8166_v27 = vunpack.i.h.bf16 %v8164_v17  ;;  %v8165_v29 = vunpack.i.l.bf16 %v8164_v17 }
 0x4ae   : > { %v8169_v37 = vpop.permute.xlu2 %8168 }
 0x4af   : > { %v8171_v19 = vunpack.i.h.bf16 %v8169_v37  ;;  %v8170_v26 = vunpack.i.l.bf16 %v8169_v37 }
 0x4b1   : > { %v8192_v39 = vpack.i.bf16 %v8170_v26, %v8165_v29  ;;  %v8212_v49 = vpack.i.bf16 %v8171_v19, %v8166_v27 }
 0x4b6   : > { %v8154_v30 = vpop.permute.xlu1 %8153  ;;  %v8144_v18 = vpop.permute.xlu0 %8143 }
 0x4b7   : > { %v8156_v20 = vunpack.i.h.bf16 %v8154_v30  ;;  %v8146_v21 = vunpack.i.h.bf16 %v8144_v18  ;;  %v8145_v22 = vunpack.i.l.bf16 %v8144_v18  ;;  %v8155_v32 = vunpack.i.l.bf16 %v8154_v30  ;;  %v8906_v55 = vpop.permute.xlu2 %1586 }
 0x4b8   : > { %v1691_v2 = vrot.slane %v8906_v55, 4 }
 0x4b9   : > { %v8849_v23 = vpack.i.bf16 %v8171_v19, %v8156_v20  ;;  %v8187_v24 = vpack.i.bf16 %v8146_v21, %v8828_v12  ;;  %v8172_v25 = vpack.i.bf16 %v8145_v22, %v8826_v11  ;;  %v8232_v54 = vpack.i.bf16 %v8155_v32, %v8170_v26 }
 0x4ba   : > { %v1791_v11 = vrot.slane %v8882_v48, 4  ;;  %v1735_v12 = vrot.slane %v8864_v44, 4 }
 0x4bb   : > { %11063 = vst [vmem:[#allocation10_spill] sm:$0xff] %v8849_v23  ;;  %8173 = vrot.lane.b32.xlu0 %v8172_v25, %s8438_s30  ;;  %8188 = vrot.lane.b32.xlu2 %v8187_v24, %s8438_s30 }
 0x4be   : > { %v8149_v28 = vpop.permute.xlu0 %8148 }
 0x4bf   : > { %v8151_v33 = vunpack.i.h.bf16 %v8149_v28  ;;  %v8150_v34 = vunpack.i.l.bf16 %v8149_v28  ;;  %v8159_v35 = vpop.permute.xlu1 %8158 }
 0x4c0   : > { %v8161_v36 = vunpack.i.h.bf16 %v8159_v35  ;;  %v8160_v45 = vunpack.i.l.bf16 %v8159_v35 }
 0x4c1   : > { %v8177_v40 = vpack.i.bf16 %v8155_v32, %v8150_v34  ;;  %v8855_v41 = vpack.i.bf16 %v8166_v27, %v8151_v33  ;;  %v8197_v43 = vpack.i.bf16 %v8156_v20, %v8151_v33  ;;  %v8227_v50 = vpack.i.bf16 %v8150_v34, %v8165_v29 }
 0x4c2   : > { %v8857_v42 = vpack.i.bf16 %v8161_v36, %v8146_v21  ;;  %v8207_v31 = vpack.i.bf16 %v8161_v36, %v8836_v56  ;;  %v8182_v47 = vpack.i.bf16 %v8160_v45, %v8834_v14  ;;  %v8222_v53 = vpack.i.bf16 %v8145_v22, %v8160_v45 }
 0x4c3   : > { %11064 = vst [vmem:[#allocation11_spill] sm:$0xff] %v8855_v41  ;;  %1598 = vrot.lane.b32.xlu0 %v8845_v16, %s8437_s23  ;;  %8193 = vrot.lane.b32.xlu2 %v8192_v39, %s8438_s30  ;;  %v8926_v14 = vunpack.c.0.s8 %v1626_v0  ;;  %v8931_v22 = vunpack.c.0.s8 %v1650_v6 }
 0x4c4   : > { %11065 = vst [vmem:[#allocation12_spill] sm:$0xff] %v8857_v42  ;;  %8178 = vrot.lane.b32.xlu1 %v8177_v40, %s8438_s30 }
 0x4cb   : > { %8198 = vrot.lane.b32.xlu0 %v8197_v43, %s8438_s30  ;;  %1612 = vrot.lane.b32.xlu2 %v8864_v44, %s8435_s2 }
 0x4cc   : > { %1610 = vrot.lane.b32.xlu1 %v8845_v16, %s8435_s2 }
 0x4d3   : > { %8208 = vrot.lane.b32.xlu2 %v8207_v31, %s8438_s30  ;;  %8203 = vrot.lane.b32.xlu0 %v8202_v46, %s8436_s27 }
 0x4d4   : > { %8183 = vrot.lane.b32.xlu1 %v8182_v47, %s8438_s30 }
 0x4db   : > { %1602 = vrot.lane.b32.xlu2 %v8882_v48, %s8437_s23  ;;  %1596 = vrot.lane.b32.xlu0 %v8872_v38, %s8437_s23 }
 0x4dc   : > { %1600 = vrot.lane.b32.xlu1 %v8864_v44, %s8437_s23  ;;  %s11101_s23 = scalar_lea.vmem %s10999_s13, %s8609_s7 }
 0x4e3   : > { %8228 = vrot.lane.b32.xlu2 %v8227_v50, %s8439_s22  ;;  %8213 = vrot.lane.b32.xlu0 %v8212_v49, %s8438_s30 }
 0x4e4   : > { %1608 = vrot.lane.b32.xlu1 %v8872_v38, %s8435_s2 }
 0x4eb   : > { %8238 = vrot.lane.b32.xlu2 %v8237_v51, %s8439_s22  ;;  %1614 = vrot.lane.b32.xlu0 %v8882_v48, %s8435_s2 }
 0x4ec   : > { %1590 = vrot.lane.b32.xlu1 %v8882_v48, %s8436_s27 }
 0x4f3   : > { %8218 = vrot.lane.b32.xlu0 %v8217_v52, %s8439_s22 }
 0x4f4   : > { %8223 = vrot.lane.b32.xlu1 %v8222_v53, %s8439_s22 }
 0x4fb   : > { %8233 = vrot.lane.b32.xlu0 %v8232_v54, %s8439_s22 }
 0x515   : > { %v8908_v57 = vpop.permute.xlu2 %8188 }
 0x516   : > { %v8191_v62 = vunpack.i.h.bf16 %v8908_v57  ;;  %v8190_v3 = vunpack.i.l.bf16 %v8908_v57 }
 0x518   : > { %v2263_v13 = vrot.slane %v8191_v62, 4  ;;  %v2251_v19 = vrot.slane %v8190_v3, 4 }
 0x51d   : > { %v8910_v58 = vpop.permute.xlu2 %8193 }
 0x51e   : > { %v8196_v8 = vunpack.i.h.bf16 %v8910_v58  ;;  %v8195_v15 = vunpack.i.l.bf16 %v8910_v58 }
 0x520   : > { %v8935_v24 = vrot.slane %v8196_v8, 4  ;;  %v8943_v34 = vrot.slane %v8195_v15, 4 }
 0x525   : > { %v8912_v59 = vpop.permute.xlu2 %1612 }
 0x526   : > { %v1745_v35 = vrot.slane %v8912_v59, 4 }
 0x52d   : > { %v8174_v60 = vpop.permute.xlu0 %8173  ;;  %v8914_v61 = vpop.permute.xlu2 %8208 }
 0x52e   : > { %v8176_v1 = vunpack.i.h.bf16 %v8174_v60  ;;  %v8175_v4 = vunpack.i.l.bf16 %v8174_v60  ;;  %v11021_v25 = vunpack.i.h.bf16 %v8914_v61  ;;  %v11020_v36 = vunpack.i.l.bf16 %v8914_v61 }
 0x530   : > { %v2207_v17 = vrot.slane %v8176_v1, 4  ;;  %v2195_v20 = vrot.slane %v8175_v4, 4  ;;  %v8960_v52 = vrot.slane %v11021_v25, 4  ;;  %v8966_v60 = vrot.slane %v11020_v36, 4 }
 0x535   : > { %v1599_v9 = vpop.permute.xlu0 %1598  ;;  %v1603_v18 = vpop.permute.xlu2 %1602 }
 0x536   : > { %v8179_v56 = vpop.permute.xlu1 %8178  ;;  %v1677_v21 = vrot.slane %v1599_v9, 4  ;;  %v1680_v28 = vsel %vm1621_vm4, %v1599_v9, %v1679_v10  ;;  %v1789_v33 = vrot.slane %v1603_v18, 4  ;;  %v1792_v50 = vsel %vm1621_vm4, %v1603_v18, %v1791_v11 }
 0x537   : > { %v8181_v37 = vunpack.i.h.bf16 %v8179_v56  ;;  %v8180_v30 = vunpack.i.l.bf16 %v8179_v56  ;;  %v8954_v46 = vperm.slane %v1680_v28, %v8926_v14  ;;  %v8971_v6 = vperm.slane %v1792_v50, %v8926_v14 }
 0x538   : > { %v1678_v40 = vsel %vm1621_vm4, %v1677_v21, %v8845_v16  ;;  %v1790_v16 = vsel %vm1621_vm4, %v1789_v33, %v8882_v48 }
 0x539   : > { %v2205_v26 = vrot.slane %v8181_v37, 4  ;;  %v2208_v27 = vsel %vm1621_vm4, %v8181_v37, %v2207_v17  ;;  %v2193_v29 = vrot.slane %v8180_v30, 4  ;;  %v2196_v32 = vsel %vm1621_vm4, %v8180_v30, %v2195_v20 }
 0x53a   : > { %v2204_v39 = vperm.slane %v2196_v32, %v8926_v14  ;;  %v2216_v45 = vperm.slane %v2208_v27, %v8926_v14  ;;  %v1684_v63 = vperm.slane %v1678_v40, %v8926_v14  ;;  %v1715_v48 = vrot.slane %v8954_v46, 4 }
 0x53b   : > { %v2206_v43 = vsel %vm1621_vm4, %v2205_v26, %v8176_v1  ;;  %v2194_v31 = vsel %vm1621_vm4, %v2193_v29, %v8175_v4  ;;  %v8976_v56 = vperm.slane %v1790_v16, %v8926_v14 }
 0x53c   : > { %v2200_v47 = vperm.slane %v2194_v31, %v8926_v14  ;;  %v2231_v49 = vrot.slane %v2204_v39, 4  ;;  %v2212_v0 = vperm.slane %v2206_v43, %v8926_v14  ;;  %v2229_v5 = vrot.slane %v2216_v45, 4 }
 0x53d   : > { %v8199_v51 = vpop.permute.xlu0 %8198  ;;  %v1703_v21 = vrot.slane %v1684_v63, 4 }
 0x53e   : > { %v8201_v53 = vunpack.i.h.bf16 %v8199_v51  ;;  %v8200_v54 = vunpack.i.l.bf16 %v8199_v51  ;;  %v2219_v1 = vrot.slane %v2200_v47, 4  ;;  %v1611_v4 = vpop.permute.xlu1 %1610  ;;  %v2232_v11 = vsel %vm1621_vm4, %v2216_v45, %v2231_v49 }
 0x53f   : > { %v1689_v20 = vrot.slane %v1611_v4, 4  ;;  %v2217_v26 = vrot.slane %v2212_v0, 4  ;;  %v2230_v29 = vsel %vm1621_vm4, %v2229_v5, %v2204_v39 }
 0x540   : > { %v2261_v9 = vrot.slane %v8201_v53, 4  ;;  %v2249_v10 = vrot.slane %v8200_v54, 4  ;;  %v2252_v17 = vsel %vm1621_vm4, %v8200_v54, %v2251_v19  ;;  %v2220_v37 = vsel %vm1621_vm4, %v2212_v0, %v2219_v1 }
 0x541   : > { %v2260_v18 = vperm.slane %v2252_v17, %v8926_v14  ;;  %v2240_v19 = vperm.slane %v2232_v11, %v8931_v22  ;;  %v2264_v32 = vsel %vm1621_vm4, %v8201_v53, %v2263_v13  ;;  %v1690_v57 = vsel %vm1621_vm4, %v1689_v20, %v8906_v55  ;;  %v9025_v20 = vpop.permute.xlu2 %8228 }
 0x542   : > { %v2250_v30 = vsel %vm1621_vm4, %v2249_v10, %v8190_v3  ;;  %v2262_v28 = vsel %vm1621_vm4, %v2261_v9, %v8191_v62  ;;  %v2228_v3 = vperm.slane %v2220_v37, %v8931_v22  ;;  %v2272_v40 = vperm.slane %v2264_v32, %v8926_v14 }
 0x543   : > { %v2256_v27 = vperm.slane %v2250_v30, %v8926_v14  ;;  %v2268_v33 = vperm.slane %v2262_v28, %v8926_v14  ;;  %v2287_v45 = vrot.slane %v2260_v18, 4  ;;  %v1692_v62 = vsel %vm1621_vm4, %v1611_v4, %v1691_v2 }
 0x544   : > { %v9001_v13 = vperm.slane %v2230_v29, %v8931_v22  ;;  %v2285_v50 = vrot.slane %v2272_v40, 4  ;;  %v9005_v16 = vrot.slane %v2240_v19, 4  ;;  %v1696_v0 = vperm.slane %v1690_v57, %v8926_v14 }
 0x545   : > { %v2275_v43 = vrot.slane %v2256_v27, 4  ;;  %v2273_v49 = vrot.slane %v2268_v33, 4  ;;  %v2288_v51 = vsel %vm1621_vm4, %v2272_v40, %v2287_v45  ;;  %v2218_v55 = vsel %vm1621_vm4, %v2217_v26, %v2200_v47 }
 0x546   : > { %v2296_v54 = vperm.slane %v2288_v51, %v8931_v22  ;;  %v9011_v1 = vrot.slane %v2228_v3, 4  ;;  %v2286_v2 = vsel %vm1621_vm4, %v2285_v50, %v2260_v18  ;;  %v1700_v4 = vperm.slane %v1692_v62, %v8926_v14  ;;  %v8184_v18 = vpop.permute.xlu1 %8183 }
 0x547   : > { %v2276_v39 = vsel %vm1621_vm4, %v2268_v33, %v2275_v43  ;;  %v2274_v5 = vsel %vm1621_vm4, %v2273_v49, %v2256_v27  ;;  %v9017_v9 = vperm.slane %v2286_v2, %v8931_v22  ;;  %v1701_v11 = vrot.slane %v1696_v0, 4 }
 0x548   : > { %v2284_v53 = vperm.slane %v2276_v39, %v8931_v22  ;;  %v9021_v17 = vrot.slane %v2296_v54, 4  ;;  %v1704_v37 = vsel %vm1621_vm4, %v1696_v0, %v1703_v21  ;;  %v1713_v30 = vrot.slane %v1700_v4, 4 }
 0x549   : > { %v1716_v47 = vsel %vm1621_vm4, %v1700_v4, %v1715_v48  ;;  %v9028_v26 = vperm.slane %v2218_v55, %v8931_v22  ;;  %v2245_v27 = vrot.slane %v9001_v13, 4  ;;  %v9033_v28 = vsel %vm1621_vm4, 0.0, %v9005_v16 }
 0x54a   : > { %v9019_v10 = vrot.slane %v2284_v53, 4  ;;  %v1702_v29 = vsel %vm1621_vm4, %v1701_v11, %v1684_v63  ;;  %v9038_v21 = vsel %vm1621_vm4, 0.0, %v9011_v1  ;;  %v9041_v48 = vperm.slane %v2274_v5, %v8931_v22  ;;  %v9075_v11 = vpop.permute.xlu0 %8203 }
 0x54b   : > { %v9044_v19 = vperm.slane %v1702_v29, %v8931_v22  ;;  %v1712_v32 = vperm.slane %v1704_v37, %v8931_v22  ;;  %v1714_v3 = vsel %vm1621_vm4, %v1713_v30, %v8954_v46  ;;  %v1724_v63 = vperm.slane %v1716_v47, %v8931_v22 }
 0x54c   : > { %v9049_v33 = vsel %vm1621_vm4, 0.0, %v9019_v10  ;;  %v11018_v40 = vunpack.i.h.bf16 %v9025_v20  ;;  %v2301_v43 = vrot.slane %v9017_v9, 4  ;;  %v9058_v45 = vsel %vm1621_vm4, 0.0, %v9021_v17 }
 0x54d   : > { %v1725_v49 = vrot.slane %v9044_v19, 4  ;;  %v9061_v57 = vrot.slane %v1712_v32, 4  ;;  %v2241_v62 = vrot.slane %v9028_v26, 4  ;;  %v1720_v46 = vperm.slane %v1714_v3, %v8931_v22 }
 0x54e   : > { %v8186_v50 = vunpack.i.h.bf16 %v8184_v18  ;;  %v9067_v51 = vsel %vm1621_vm4, 0.0, %v2245_v27  ;;  %v2431_v53 = vrot.slane %v9033_v28, 4  ;;  %v1731_v54 = vrot.slane %v1724_v63, 4  ;;  %v1601_v5 = vpop.permute.xlu1 %1600 }
 0x54f   : > { %v11019_v0 = vunpack.i.l.bf16 %v9025_v20  ;;  %v2420_v55 = vrot.slane %v9038_v21, 4  ;;  %v9078_v37 = vsel %vm1621_vm4, 0.0, %v2301_v43  ;;  %v9081_v30 = vsel %vm1621_vm4, 0.0, %v1725_v49 }
 0x550   : > { %v9085_v47 = vsel %vm1621_vm4, 0.0, %v9061_v57  ;;  %v9089_v27 = vrot.slane %v11018_v40, 4  ;;  %v1729_v29 = vrot.slane %v1720_v46, 4  ;;  %v2150_v32 = vsel %vm1621_vm4, %v8935_v24, %v8186_v50 }
 0x551   : > { %v2151_v3 = vrot.slane %v8186_v50, 4  ;;  %v8185_v63 = vunpack.i.l.bf16 %v8184_v18  ;;  %v1732_v43 = vsel %vm1621_vm4, 0.0, %v1731_v54  ;;  %v9096_v49 = vrot.slane %v11019_v0, 4 }
 0x552   : > { %v2156_v31 = vperm.slane %v2150_v32, %v8926_v14  ;;  %v8205_v39 = vunpack.i.l.bf16 %v9075_v11  ;;  %v1910_v50 = vsel %vm1621_vm4, %v1731_v54, %v1720_v46  ;;  %v1915_v25 = vrot.slane %v1732_v43, 4 }
 0x553   : > { %v2152_v4 = vsel %vm1621_vm4, %v8196_v8, %v2151_v3  ;;  %v2138_v24 = vsel %vm1621_vm4, %v8943_v34, %v8185_v63  ;;  %v2139_v18 = vrot.slane %v8185_v63, 4  ;;  %v1733_v3 = vrot.slane %v1601_v5, 4 }
 0x554   : > { %v2160_v0 = vperm.slane %v2152_v4, %v8926_v14  ;;  %v2161_v2 = vrot.slane %v2156_v31, 4  ;;  %v2144_v32 = vperm.slane %v2138_v24, %v8926_v14  ;;  %v1746_v40 = vsel %vm1621_vm4, %v1745_v35, %v8205_v39 }
 0x555   : > { %v2140_v36 = vsel %vm1621_vm4, %v8195_v15, %v2139_v18  ;;  %v1747_v8 = vrot.slane %v8205_v39, 4  ;;  %v1752_v58 = vperm.slane %v1746_v40, %v8926_v14  ;;  %v1734_v15 = vsel %vm1621_vm4, %v1733_v3, %v8864_v44 }
 0x556   : > { %v2148_v34 = vperm.slane %v2140_v36, %v8926_v14  ;;  %v2162_v46 = vsel %vm1621_vm4, %v2161_v2, %v2144_v32  ;;  %v2163_v54 = vrot.slane %v2144_v32, 4  ;;  %v2173_v4 = vrot.slane %v2160_v0, 4 }
 0x557   : > { %v1748_v63 = vsel %vm1621_vm4, %v8912_v59, %v1747_v8  ;;  %v1730_v24 = vsel %vm1621_vm4, 0.0, %v1729_v29  ;;  %v9126_v36 = vperm.slane %v1910_v50, %v8926_v14  ;;  %v9129_v2 = vperm.slane %v2162_v46, %v8931_v22  ;;  %v1597_v8 = vpop.permute.xlu0 %1596 }
 0x558   : > { %v2164_v35 = vsel %vm1621_vm4, %v2156_v31, %v2163_v54  ;;  %v2175_v39 = vrot.slane %v2148_v34, 4  ;;  %v1756_v43 = vperm.slane %v1748_v63, %v8926_v14  ;;  %v8206_v40 = vunpack.i.h.bf16 %v9075_v11 }
 0x559   : > { %v2172_v59 = vperm.slane %v2164_v35, %v8931_v22  ;;  %v1757_v32 = vrot.slane %v1752_v58, 4  ;;  %v1736_v31 = vsel %vm1621_vm4, %v1601_v5, %v1735_v12  ;;  %v1740_v29 = vperm.slane %v1734_v15, %v8926_v14 }
 0x55a   : > { %v2176_v18 = vsel %vm1621_vm4, %v2160_v0, %v2175_v39  ;;  %v1916_v50 = vsel %vm1621_vm4, %v1915_v25, %v1730_v24  ;;  %v2174_v3 = vsel %vm1621_vm4, %v2173_v4, %v2148_v34  ;;  %v1769_v54 = vrot.slane %v1756_v43, 4 }
 0x55b   : > { %v2184_v46 = vperm.slane %v2176_v18, %v8931_v22  ;;  %v9141_v63 = vrot.slane %v2172_v59, 4  ;;  %v1744_v35 = vperm.slane %v1736_v31, %v8926_v14  ;;  %v1758_v0 = vsel %vm1621_vm4, %v1757_v32, %v1740_v29 }
 0x55c   : > { %v1759_v39 = vrot.slane %v1740_v29, 4  ;;  %v2185_v12 = vrot.slane %v9129_v2, 4  ;;  %v1764_v5 = vperm.slane %v1758_v0, %v8931_v22  ;;  %v1620_v15 = vrot.slane %v1597_v8, 4 }
 0x55d   : > { %v9148_v25 = vrot.slane %v2184_v46, 4  ;;  %v1770_v4 = vsel %vm1621_vm4, %v1769_v54, %v1744_v35  ;;  %v1771_v24 = vrot.slane %v1744_v35, 4  ;;  %v9153_v59 = vperm.slane %v2174_v3, %v8931_v22 }
 0x55e   : > { %v1760_v34 = vsel %vm1621_vm4, %v1752_v58, %v1759_v39  ;;  %v1776_v32 = vperm.slane %v1770_v4, %v8931_v22  ;;  %v1624_v31 = vsel %vm1621_vm4, %v1597_v8, %v1623_v7  ;;  %v9161_v29 = vperm.slane %v1916_v50, %v8926_v14 }
 0x55f   : > { %v1768_v18 = vperm.slane %v1760_v34, %v8931_v22  ;;  %v9165_v58 = vsel %vm1621_vm4, 0.0, %v9141_v63  ;;  %v1635_v46 = vrot.slane %v8206_v40, 4  ;;  %v1772_v3 = vsel %vm1621_vm4, %v1756_v43, %v1771_v24 }
 0x560   : > { %11066 = vst [vmem:[#allocation13_spill] sm:$0xff] %v9161_v29  ;;  %v1780_v54 = vperm.slane %v1772_v3, %v8931_v22  ;;  %v1781_v35 = vrot.slane %v1764_v5, 4  ;;  %v1622_v39 = vsel %vm1621_vm4, %v1620_v15, %v8872_v38  ;;  %v9174_v7 = vsel %vm1621_vm4, 0.0, %v2185_v12 }
 0x561   : > { %v1783_v0 = vrot.slane %v1768_v18, 4  ;;  %v9178_v8 = vsel %vm1621_vm4, 0.0, %v9148_v25  ;;  %v1785_v50 = vrot.slane %v1776_v32, 4  ;;  %v1632_v34 = vperm.slane %v1624_v31, %v8926_v14 }
 0x562   : > { %v1787_v24 = vrot.slane %v1780_v54, 4  ;;  %v2242_v18 = vsel %vm1621_vm4, 0.0, %v2241_v62  ;;  %v1628_v12 = vperm.slane %v1622_v39, %v8926_v14  ;;  %v2415_v15 = vsel %vm1621_vm4, %v9011_v1, %v9028_v26  ;;  %v1609_v26 = vpop.permute.xlu1 %1608 }
 0x563   : > { %v1784_v38 = vsel %vm1621_vm4, 0.0, %v1783_v0  ;;  %v2421_v31 = vsel %vm1621_vm4, %v2420_v55, %v2242_v18  ;;  %v1782_v54 = vsel %vm1621_vm4, 0.0, %v1781_v35  ;;  %v1786_v43 = vsel %vm1621_vm4, 0.0, %v1785_v50 }
 0x564   : > { %v1788_v44 = vsel %vm1621_vm4, 0.0, %v1787_v24  ;;  %v9198_v62 = vperm.slane %v2421_v31, %v8926_v14  ;;  %v1659_v4 = vrot.slane %v1632_v34, 4  ;;  %v2426_v1 = vsel %vm1621_vm4, %v9005_v16, %v9001_v13  ;;  %v8214_v31 = vpop.permute.xlu0 %8213 }
 0x565   : > { %v1969_v39 = vrot.slane %v1788_v44, 4  ;;  %v1958_v21 = vrot.slane %v1784_v38, 4  ;;  %v9205_v55 = vperm.slane %v2415_v15, %v8926_v14  ;;  %v2432_v35 = vsel %vm1621_vm4, %v2431_v53, %v9067_v51 }
 0x566   : > { %v2437_v18 = vrot.slane %v9198_v62, 4  ;;  %v9213_v44 = vsel %vm1621_vm4, %v1783_v0, %v1764_v5  ;;  %v1964_v50 = vsel %vm1621_vm4, %v1787_v24, %v1776_v32  ;;  %v1647_v3 = vrot.slane %v1628_v12, 4 }
 0x567   : > { %v9217_v13 = vperm.slane %v2432_v35, %v8926_v14  ;;  %v1970_v16 = vsel %vm1621_vm4, %v1969_v39, %v1786_v43  ;;  %v9221_v38 = vperm.slane %v2426_v1, %v8926_v14  ;;  %v1633_v28 = vrot.slane %v1609_v26, 4 }
 0x568   : > { %v1636_v51 = vsel %vm1621_vm4, %v1609_v26, %v1635_v46  ;;  %v2438_v53 = vsel %vm1621_vm4, %v2437_v18, %v9205_v55  ;;  %v8216_v32 = vunpack.i.h.bf16 %v8214_v31  ;;  %v9229_v24 = vsel %vm1621_vm4, %v1958_v21, %v1782_v54 }
 0x569   : > { %v2449_v5 = vrot.slane %v9217_v13, 4  ;;  %v1644_v0 = vperm.slane %v1636_v51, %v8926_v14  ;;  %v9232_v15 = vperm.slane %v1964_v50, %v8926_v14  ;;  %v1634_v46 = vsel %vm1621_vm4, %v1633_v28, %v8206_v40 }
 0x56a   : > { %v9239_v39 = vperm.slane %v1970_v16, %v8926_v14  ;;  %v1640_v26 = vperm.slane %v1634_v46, %v8926_v14  ;;  %v9245_v54 = vperm.slane %v2438_v53, %v8931_v22  ;;  %v2317_v11 = vrot.slane %v8216_v32, 4 }
 0x56b   : > { %v2450_v1 = vsel %vm1621_vm4, %v2449_v5, %v9221_v38  ;;  %v1657_v35 = vrot.slane %v1644_v0, 4  ;;  %v1660_v18 = vsel %vm1621_vm4, %v1644_v0, %v1659_v4  ;;  %v11067_v53 = vunpack.i.h.bf16 %v8914_v61 }
 0x56c   : > { %v9248_v21 = vperm.slane %v2450_v1, %v8931_v22  ;;  %v1645_v50 = vrot.slane %v1640_v26, 4  ;;  %v1648_v40 = vsel %vm1621_vm4, %v1640_v26, %v1647_v3  ;;  %v1668_v28 = vperm.slane %v1660_v18, %v8931_v22 }
 0x56d   : > { %v1658_v16 = vsel %vm1621_vm4, %v1657_v35, %v1632_v34  ;;  %v1656_v5 = vperm.slane %v1648_v40, %v8931_v22  ;;  %v2318_v46 = vsel %vm1621_vm4, %v2317_v11, %v11067_v53  ;;  %v2320_v1 = vsel %vm1621_vm4, %v8216_v32, %v8960_v52 }
 0x56e   : > { %v2461_v51 = vrot.slane %v9248_v21, 4  ;;  %v1646_v4 = vsel %vm1621_vm4, %v1645_v50, %v1628_v12  ;;  %v1664_v3 = vperm.slane %v1658_v16, %v8931_v22  ;;  %v1675_v0 = vrot.slane %v1668_v28, 4 }
 0x56f   : > { %v9265_v26 = vrot.slane %v1656_v5, 4  ;;  %v2324_v35 = vperm.slane %v2318_v46, %v8926_v14  ;;  %v8215_v18 = vunpack.i.l.bf16 %v8214_v31  ;;  %v9270_v53 = vperm.slane %v1646_v4, %v8931_v22 }
 0x570   : > { %v2462_v34 = vsel %vm1621_vm4, %v2461_v51, %v9245_v54  ;;  %v2328_v52 = vperm.slane %v2320_v1, %v8926_v14  ;;  %v1899_v16 = vsel %vm1621_vm4, %v9061_v57, %v9044_v19  ;;  %v1673_v28 = vrot.slane %v1664_v3, 4 }
 0x571   : > { %v3082_v11 = vpack.c.bf16 %v2462_v34, %v2462_v34  ;;  %v1676_v51 = vsel %vm1621_vm4, 0.0, %v1675_v0  ;;  %v1856_v5 = vsel %vm1621_vm4, %v1675_v0, %v1664_v3  ;;  %v9284_v46 = vsel %vm1621_vm4, 0.0, %v9265_v26 }
 0x572   : > { %v2329_v1 = vrot.slane %v2324_v35, 4  ;;  %v2305_v4 = vrot.slane %v8215_v18, 4  ;;  %v2308_v34 = vsel %vm1621_vm4, %v8215_v18, %v8966_v60  ;;  %v1669_v40 = vrot.slane %v9270_v53, 4 }
 0x573   : > { %v3121_v31 = vsel %vm3097_vm8, %v3082_v11, 0  ;;  %v2341_v19 = vrot.slane %v2328_v52, 4  ;;  %v2316_v57 = vperm.slane %v2308_v34, %v8926_v14  ;;  %v11068_v11 = vrot.slane %v9085_v47, 4 }
 0x574   : > { %3130 = vmatpush.bf16.xpose.msra.mxu3 %v3121_v31  ;;  %v9295_v0 = vperm.slane %v1856_v5, %v8926_v14  ;;  %v11069_v31 = vunpack.i.l.bf16 %v8914_v61  ;;  %v1933_v60 = vrot.slane %v9161_v29, 4  ;;  %v1674_v18 = vsel %vm1621_vm4, 0.0, %v1673_v28 }
 0x575   : > { %v1905_v3 = vsel %vm1621_vm4, %v11068_v11, %v9081_v30  ;;  %v2343_v12 = vrot.slane %v2316_v57, 4  ;;  %v1861_v30 = vrot.slane %v1676_v51, 4  ;;  %v9308_v5 = vperm.slane %v1899_v16, %v8926_v14 }
 0x576   : > { %v2306_v32 = vsel %vm1621_vm4, %v2305_v4, %v11069_v31  ;;  %v9301_v43 = vperm.slane %v1905_v3, %v8926_v14  ;;  %v1934_v4 = vsel %vm1621_vm4, %v1933_v60, %v9126_v36  ;;  %v2342_v3 = vsel %vm1621_vm4, %v2341_v19, %v2316_v57 }
 0x577   : > { %v2312_v47 = vperm.slane %v2306_v32, %v8926_v14  ;;  %v2344_v31 = vsel %vm1621_vm4, %v2328_v52, %v2343_v12  ;;  %v9316_v28 = vperm.slane %v1934_v4, %v8931_v22  ;;  %v9319_v32 = vsel %vm1621_vm4, 0.0, %v1669_v40 }
 0x578   : > { %v1921_v61 = vrot.slane %v9301_v43, 4  ;;  %v2352_v16 = vperm.slane %v2344_v31, %v8931_v22  ;;  %v2469_v12 = vsel %vm1621_vm4, %v9019_v10, %v9041_v48  ;;  %v9336_v57 = vperm.slane %v2342_v3, %v8931_v22 }
 0x579   : > { %v2331_v11 = vrot.slane %v2312_v47, 4  ;;  %v1945_v52 = vrot.slane %v9316_v28, 4  ;;  %v2330_v40 = vsel %vm1621_vm4, %v2329_v1, %v2312_v47  ;;  %v11071_v10 = vrot.slane %v9049_v33, 4 }
 0x57a   : > { %v1922_v34 = vsel %vm1621_vm4, %v1921_v61, %v9308_v5  ;;  %v11070_v61 = vrot.slane %v9041_v48, 4  ;;  %v9341_v4 = vrot.slane %v2352_v16, 4  ;;  %v1862_v47 = vsel %vm1621_vm4, %v1861_v30, %v1674_v18 }
 0x57b   : > { %v2332_v60 = vsel %vm1621_vm4, %v2324_v35, %v2331_v11  ;;  %v9327_v50 = vperm.slane %v1922_v34, %v8931_v22  ;;  %v2473_v11 = vperm.slane %v2469_v12, %v8926_v14  ;;  %v9354_v16 = vperm.slane %v2330_v40, %v8931_v22 }
 0x57c   : > { %v2340_v19 = vperm.slane %v2332_v60, %v8931_v22  ;;  %v2298_v35 = vsel %vm1621_vm4, 0.0, %v11070_v61  ;;  %v1591_v60 = vpop.permute.xlu1 %1590  ;;  %v1615_v61 = vpop.permute.xlu0 %1614  ;;  %v11072_v33 = vrot.slane %v9058_v45, 4  ;;  %v2357_v30 = vrot.slane %v9336_v57, 4 }
 0x57d   : > { %v1946_v34 = vsel %vm1621_vm4, %v1945_v52, %v9327_v50  ;;  %v2475_v1 = vsel %vm1621_vm4, %v11071_v10, %v2298_v35  ;;  %v2480_v52 = vsel %vm1621_vm4, %v9021_v17, %v9017_v9  ;;  %v2493_v18 = vrot.slane %v2473_v11, 4 }
 0x57e   : > { %v9350_v31 = vrot.slane %v2340_v19, 4  ;;  %v3066_v3 = vpack.c.bf16 %v1946_v34, %v1946_v34  ;;  %v2479_v48 = vperm.slane %v2475_v1, %v8926_v14  ;;  %v2486_v12 = vsel %vm1621_vm4, %v11072_v33, %v9078_v37 }
 0x57f   : > { %v2484_v19 = vperm.slane %v2480_v52, %v8926_v14  ;;  %v2490_v35 = vperm.slane %v2486_v12, %v8926_v14  ;;  %v9369_v34 = vsel %vm1621_vm4, 0.0, %v9341_v4  ;;  %v11073_v9 = vrot.slane %v9245_v54, 4 }
 0x580   : > { %7108 = vmatmul.msk.bf16.vlgmr.msra.gmra.mxu3 %vm3097_vm8, %v3066_v3  ;;  %v2491_v40 = vrot.slane %v2479_v48, 4  ;;  %v1803_v45 = vrot.slane %v1591_v60, 4  ;;  %v1801_v37 = vrot.slane %v1615_v61, 4  ;;  %v9377_v10 = vsel %vm1621_vm4, 0.0, %v9350_v31 }
 0x581   : > { %v2464_v17 = vsel %vm1621_vm4, %v9248_v21, %v11073_v9  ;;  %v2503_v3 = vrot.slane %v2490_v35, 4  ;;  %v2505_v52 = vrot.slane %v2484_v19, 4  ;;  %v2494_v54 = vsel %vm1621_vm4, %v2479_v48, %v2493_v18 }
 0x582   : > { %v2492_v1 = vsel %vm1621_vm4, %v2491_v40, %v2473_v11  ;;  %v1802_v12 = vsel %vm1621_vm4, %v1801_v37, %v1591_v60  ;;  %v1804_v51 = vsel %vm1621_vm4, %v1615_v61, %v1803_v45  ;;  %v3086_v9 = vpack.c.bf16 %v2464_v17, %v2464_v17 }
 0x583   : > { %v2498_v33 = vperm.slane %v2492_v1, %v8931_v22  ;;  %v2504_v21 = vsel %vm1621_vm4, %v2503_v3, %v2484_v19  ;;  %v1808_v42 = vperm.slane %v1802_v12, %v8926_v14  ;;  %v1812_v41 = vperm.slane %v1804_v51, %v8926_v14 }
 0x584   : > { %v2510_v23 = vperm.slane %v2504_v21, %v8931_v22  ;;  %v9389_v40 = vperm.slane %v2494_v54, %v8931_v22  ;;  %v2506_v1 = vsel %vm1621_vm4, %v2490_v35, %v2505_v52  ;;  %v11074_v61 = vrot.slane %v8976_v56, 4 }
 0x585   : > { %v2517_v11 = vrot.slane %v2498_v33, 4  ;;  %v1813_v60 = vrot.slane %v1808_v42, 4  ;;  %v1825_v18 = vrot.slane %v1812_v41, 4  ;;  %v11075_v19 = vrot.slane %v8971_v6, 4 }
 0x586   : > { %v1816_v48 = vsel %vm1621_vm4, %v1808_v42, %v11074_v61  ;;  %v2515_v45 = vrot.slane %v2510_v23, 4  ;;  %v9406_v42 = vperm.slane %v2506_v1, %v8931_v22 }
 0x587   : > { %v1828_v17 = vsel %vm1621_vm4, %v1812_v41, %v11075_v19  ;;  %v2518_v51 = vsel %vm1621_vm4, %v2510_v23, %v2517_v11  ;;  %v1824_v37 = vperm.slane %v1816_v48, %v8931_v22  ;;  %v1814_v35 = vsel %vm1621_vm4, %v1813_v60, %v8976_v56 }
 0x588   : > { %v1836_v3 = vperm.slane %v1828_v17, %v8931_v22  ;;  %v3087_v12 = vpack.c.bf16 %v2518_v51, %v2518_v51  ;;  %v1826_v52 = vsel %vm1621_vm4, %v1825_v18, %v8971_v6  ;;  %v2516_v54 = vsel %vm1621_vm4, %v2515_v45, %v2498_v33 }
 0x589   : > { %v1820_v41 = vperm.slane %v1814_v35, %v8931_v22  ;;  %v1832_v23 = vperm.slane %v1826_v52, %v8931_v22  ;;  %v1839_v21 = vrot.slane %v1824_v37, 4  ;;  %v3083_v11 = vpack.c.bf16 %v2516_v54, %v2516_v54 }
 0x58a   : > { %v3216_v61 = vsel %vm3097_vm8, %v3087_v12, 0  ;;  %v1843_v48 = vrot.slane %v1836_v3, 4  ;;  %v2519_v19 = vrot.slane %v9406_v42, 4  ;;  %v9414_v56 = vperm.slane %v1862_v47, %v8926_v14 }
 0x58b   : > { %3225 = vmatpush.bf16.xpose.msrb.mxu0 %v3216_v61  ;;  %v1841_v33 = vrot.slane %v1832_v23, 4  ;;  %v9419_v60 = vsel %vm1621_vm4, 0.0, %v2357_v30  ;;  %v3140_v45 = vsel %vm3097_vm8, %v3083_v11, 0  ;;  %v3197_v47 = vsel %vm3097_vm8, %v3086_v9, 0 }
 0x58c   : > { %3149 = vmatpush.bf16.xpose.msrb.mxu3 %v3140_v45  ;;  %v1837_v37 = vrot.slane %v1820_v41, 4  ;;  %v1844_v3 = vsel %vm1621_vm4, 0.0, %v1843_v48  ;;  %v9428_v12 = vsel %vm1621_vm4, 0.0, %v1839_v21  ;;  %v9431_v30 = vsel %vm1621_vm4, %v1839_v21, %v1820_v41 }
 0x58d   : > { %v2520_v35 = vsel %vm1621_vm4, %v2519_v19, %v9389_v40  ;;  %v2361_v52 = vsel %vm1621_vm4, %v9141_v63, %v9129_v2  ;;  %v1842_v54 = vsel %vm1621_vm4, 0.0, %v1841_v33  ;;  %v11076_v11 = vrot.slane %v9153_v59, 4  ;;  %v8219_v33 = vpop.permute.xlu0 %8218 }
 0x58e   : > { %v3091_v9 = vpack.c.bf16 %v2520_v35, %v2520_v35  ;;  %v2365_v45 = vperm.slane %v2361_v52, %v8926_v14  ;;  %v11077_v41 = vrot.slane %v9165_v58, 4  ;;  %v2372_v19 = vsel %vm1621_vm4, %v9148_v25, %v9153_v59  ;;  %v9457_v58 = vpop.permute.xlu1 %8223 }
 0x58f   : > { %v2190_v61 = vsel %vm1621_vm4, 0.0, %v11076_v11  ;;  %v11078_v2 = vrot.slane %v9178_v8, 4  ;;  %v9464_v59 = vsel %vm1621_vm4, %v1843_v48, %v1832_v23  ;;  %v8220_v1 = vunpack.i.l.bf16 %v8219_v33 }
 0x590   : > { %v2367_v21 = vsel %vm1621_vm4, %v11077_v41, %v9174_v7  ;;  %v3292_v35 = vsel %vm3097_vm8, %v3091_v9, 0  ;;  %v9460_v7 = vsel %vm1621_vm4, 0.0, %v1837_v37  ;;  %v2385_v8 = vrot.slane %v2365_v45, 4 }
 0x591   : > { %v2378_v63 = vsel %vm1621_vm4, %v11078_v2, %v2190_v61  ;;  %v2371_v11 = vperm.slane %v2367_v21, %v8926_v14  ;;  %v8221_v21 = vunpack.i.h.bf16 %v8219_v33  ;;  %v11022_v48 = vunpack.i.l.bf16 %v9457_v58 }
 0x592   : > { %v2382_v52 = vperm.slane %v2378_v63, %v8926_v14  ;;  %v8226_v63 = vunpack.i.h.bf16 %v9457_v58 }
 0x593   : > { %3301 = vmatpush.bf16.xpose.msra.mxu0 %v3292_v35  ;;  %v2383_v61 = vrot.slane %v2371_v11, 4  ;;  %v2386_v2 = vsel %vm1621_vm4, %v2371_v11, %v2385_v8  ;;  %v2683_v33 = vrot.slane %v8221_v21, 4  ;;  %v2627_v8 = vrot.slane %v8220_v1, 4 }
 0x594   : > { %3206 = vmatpush.bf16.xpose.msra.mxu3 %v3197_v47  ;;  %v2023_v47 = vrot.slane %v1844_v3, 4  ;;  %v2376_v3 = vperm.slane %v2372_v19, %v8926_v14  ;;  %v2395_v9 = vrot.slane %v2382_v52, 4 }
 0x595   : > { %v2384_v37 = vsel %vm1621_vm4, %v2383_v61, %v2365_v45  ;;  %v9484_v45 = vperm.slane %v2386_v2, %v8931_v22  ;;  %v2695_v61 = vrot.slane %v8226_v63, 4 }
 0x596   : > { %v2397_v41 = vrot.slane %v2376_v3, 4  ;;  %v2024_v19 = vsel %vm1621_vm4, %v2023_v47, %v1842_v54  ;;  %v2396_v17 = vsel %vm1621_vm4, %v2395_v9, %v2376_v3  ;;  %v2390_v35 = vperm.slane %v2384_v37, %v8931_v22 }
 0x597   : > { %v2402_v18 = vperm.slane %v2396_v17, %v8931_v22  ;;  %v2682_v54 = vsel %vm1621_vm4, %v9089_v27, %v8221_v21  ;;  %v9481_v47 = vperm.slane %v2024_v19, %v8926_v14  ;;  %v2639_v27 = vrot.slane %v11022_v48, 4 }
 0x598   : > { %v2398_v23 = vsel %vm1621_vm4, %v2382_v52, %v2397_v41  ;;  %v9487_v11 = vperm.slane %v2682_v54, %v8926_v14  ;;  %v2409_v3 = vrot.slane %v2390_v35, 4  ;;  %v11079_v9 = vunpack.i.h.bf16 %v9025_v20 }
 0x599   : > { %v9476_v51 = vperm.slane %v2398_v23, %v8931_v22  ;;  %v2407_v17 = vrot.slane %v2402_v18, 4  ;;  %v2626_v21 = vsel %vm1621_vm4, %v9096_v49, %v8220_v1  ;;  %v11080_v48 = vunpack.i.l.bf16 %v9025_v20 }
 0x59a   : > { %v2684_v41 = vsel %vm1621_vm4, %v11079_v9, %v2683_v33  ;;  %v2410_v19 = vsel %vm1621_vm4, %v2402_v18, %v2409_v3  ;;  %v2707_v9 = vrot.slane %v9487_v11, 4  ;;  %v9511_v49 = vperm.slane %v2626_v21, %v8926_v14 }
 0x59b   : > { %v2411_v52 = vrot.slane %v9476_v51, 4  ;;  %v2408_v37 = vsel %vm1621_vm4, %v2407_v17, %v2390_v35  ;;  %v9504_v23 = vperm.slane %v2684_v41, %v8926_v14  ;;  %v3085_v54 = vpack.c.bf16 %v2410_v19, %v2410_v19 }
 0x59c   : > { %v3081_v25 = vpack.c.bf16 %v2408_v37, %v2408_v37  ;;  %v2628_v33 = vsel %vm1621_vm4, %v11080_v48, %v2627_v8  ;;  %v9515_v1 = vperm.slane %v9213_v44, %v8926_v14  ;;  %v9519_v18 = vperm.slane %v9229_v24, %v8926_v14 }
 0x59d   : > { %v2412_v2 = vsel %vm1621_vm4, %v2411_v52, %v9484_v45  ;;  %v3178_v35 = vsel %vm3097_vm8, %v3085_v54, 0  ;;  %v2719_v48 = vrot.slane %v9504_v23, 4  ;;  %v8234_v52 = vpop.permute.xlu0 %8233  ;;  %v2636_v17 = vperm.slane %v2628_v33, %v8926_v14 }
 0x59e   : > { %v3089_v6 = vpack.c.bf16 %v2412_v2, %v2412_v2  ;;  %v3102_v20 = vsel %vm3097_vm8, %v3081_v25, 0  ;;  %3187 = vmatpush.bf16.xpose.msra.mxu2 %v3178_v35  ;;  %v1975_v44 = vrot.slane %v9519_v18, 4  ;;  %v11081_v8 = vrot.slane %v9239_v39, 4 }
 0x59f   : > { %3111 = vmatpush.bf16.xpose.msra.mxu1 %v3102_v20  ;;  %v11082_v41 = vrot.slane %v9205_v55, 4  ;;  %v11083_v19 = vrot.slane %v9221_v38, 4  ;;  %v2521_v37 = vrot.slane %v9389_v40, 4  ;;  %v8235_v33 = vunpack.i.l.bf16 %v8234_v52 }
 0x5a0   : > { %v3254_v3 = vsel %vm3097_vm8, %v3089_v6, 0  ;;  %v1988_v24 = vsel %vm1621_vm4, %v11081_v8, %v9232_v15  ;;  %v1976_v54 = vsel %vm1621_vm4, %v1975_v44, %v9515_v1  ;;  %v2651_v35 = vrot.slane %v9511_v49, 4 }
 0x5a1   : > { %v2440_v6 = vsel %vm1621_vm4, %v9198_v62, %v11082_v41  ;;  %v1994_v25 = vperm.slane %v1988_v24, %v8931_v22  ;;  %v2452_v2 = vsel %vm1621_vm4, %v9217_v13, %v11083_v19  ;;  %v8236_v62 = vunpack.i.h.bf16 %v8234_v52 }
 0x5a2   : > { %v9537_v21 = vperm.slane %v2440_v6, %v8931_v22  ;;  %v9547_v55 = vperm.slane %v2452_v2, %v8931_v22  ;;  %v2522_v38 = vsel %vm1621_vm4, %v9406_v42, %v2521_v37  ;;  %v2663_v8 = vrot.slane %v2636_v17, 4 }
 0x5a3   : > { %v1999_v20 = vrot.slane %v1994_v25, 4  ;;  %v2693_v40 = vrot.slane %v8236_v62, 4  ;;  %v2696_v24 = vsel %vm1621_vm4, %v8236_v62, %v2695_v61  ;;  %v2637_v52 = vrot.slane %v8235_v33, 4 }
 0x5a4   : > { %v2465_v13 = vrot.slane %v9547_v55, 4  ;;  %v2704_v6 = vperm.slane %v2696_v24, %v8926_v14 }
 0x5a5   : > { %v2694_v42 = vsel %vm1621_vm4, %v2693_v40, %v8226_v63 }
 0x5a6   : > { %3263 = vmatpush.bf16.xpose.msrb.mxu2 %v3254_v3  ;;  %v1982_v3 = vperm.slane %v1976_v54, %v8931_v22  ;;  %v2466_v2 = vsel %vm1621_vm4, %v2465_v13, %v9537_v21  ;;  %v3095_v54 = vpack.c.bf16 %v2522_v38, %v2522_v38  ;;  %v2700_v61 = vperm.slane %v2694_v42, %v8926_v14 }
 0x5a7   : > { %v3090_v29 = vpack.c.bf16 %v2466_v2, %v2466_v2  ;;  %v2717_v62 = vrot.slane %v2704_v6, 4  ;;  %v2640_v13 = vsel %vm1621_vm4, %v8235_v33, %v2639_v27  ;;  %v2720_v38 = vsel %vm1621_vm4, %v2704_v6, %v2719_v48 }
 0x5a8   : > { %v2000_v44 = vsel %vm1621_vm4, %v1999_v20, %v1982_v3  ;;  %v2001_v41 = vrot.slane %v1982_v3, 4  ;;  %v11084_v20 = vunpack.i.l.bf16 %v9457_v58  ;;  %v2705_v63 = vrot.slane %v2700_v61, 4 }
 0x5a9   : > { %v3067_v19 = vpack.c.bf16 %v2000_v44, %v2000_v44  ;;  %v3273_v44 = vsel %vm3097_vm8, %v3090_v29, 0  ;;  %v2648_v40 = vperm.slane %v2640_v13, %v8926_v14  ;;  %v2708_v58 = vsel %vm1621_vm4, %v2700_v61, %v2707_v9 }
 0x5aa   : > { %v2002_v37 = vsel %vm1621_vm4, %v1994_v25, %v2001_v41  ;;  %v2638_v24 = vsel %vm1621_vm4, %v2637_v52, %v11084_v20  ;;  %v3368_v41 = vsel %vm3097_vm8, %v3095_v54, 0  ;;  %v2718_v52 = vsel %vm1621_vm4, %v2717_v62, %v9504_v23 }
 0x5ab   : > { %7109 = vmatmul.msk.bf16.vlgmr.msrb.gmra.mxu3 %vm3097_vm8, %v3067_v19  ;;  %v3071_v3 = vpack.c.bf16 %v2002_v37, %v2002_v37  ;;  %v2644_v25 = vperm.slane %v2638_v24, %v8926_v14  ;;  %v2728_v27 = vperm.slane %v2720_v38, %v8931_v22  ;;  %v2661_v33 = vrot.slane %v2648_v40, 4 }
 0x5ac   : > { %3282 = vmatpush.bf16.xpose.msrb.mxu3 %v3273_v44  ;;  %v2664_v6 = vsel %vm1621_vm4, %v2648_v40, %v2663_v8  ;;  %v2706_v54 = vsel %vm1621_vm4, %v2705_v63, %v9487_v11  ;;  %v2716_v9 = vperm.slane %v2708_v58, %v8931_v22  ;;  %v9613_v24 = vperm.slane %v9464_v59, %v8926_v14 }
 0x5ad   : > { %7113 = vmatmul.msk.bf16.vlgmr.msrb.gmra.mxu0 %vm3097_vm8, %v3071_v3  ;;  %v2649_v48 = vrot.slane %v2644_v25, 4  ;;  %v2652_v29 = vsel %vm1621_vm4, %v2644_v25, %v2651_v35  ;;  %v2672_v2 = vperm.slane %v2664_v6, %v8931_v22  ;;  %v2662_v42 = vsel %vm1621_vm4, %v2661_v33, %v2636_v17 }
 0x5ae   : > { %3377 = vmatpush.bf16.xpose.msrb.mxu0 %v3368_v41  ;;  %v2660_v19 = vperm.slane %v2652_v29, %v8931_v22  ;;  %v9590_v37 = vperm.slane %v2706_v54, %v8931_v22  ;;  %v9593_v35 = vperm.slane %v2718_v52, %v8931_v22  ;;  %v9599_v61 = vperm.slane %v2662_v42, %v8931_v22 }
 0x5af   : > { %v2650_v23 = vsel %vm1621_vm4, %v2649_v48, %v9511_v49  ;;  %v9603_v62 = vrot.slane %v2672_v2, 4  ;;  %v9606_v3 = vrot.slane %v2716_v9, 4  ;;  %v9609_v20 = vrot.slane %v2728_v27, 4 }
 0x5b0   : > { %v9596_v8 = vperm.slane %v2650_v23, %v8931_v22  ;;  %v9601_v11 = vrot.slane %v2660_v19, 4  ;;  %v2729_v49 = vrot.slane %v9590_v37, 4  ;;  %v2733_v17 = vrot.slane %v9593_v35, 4 }
 0x5b1   : > { %v2413_v13 = vrot.slane %v9484_v45, 4  ;;  %v1879_v44 = vrot.slane %v9414_v56, 4  ;;  %v11085_v63 = vrot.slane %v9428_v12, 4  ;;  %v2041_v40 = vrot.slane %v9481_v47, 4 }
 0x5b2   : > { %v2673_v38 = vrot.slane %v9596_v8, 4  ;;  %v2677_v41 = vrot.slane %v9599_v61, 4  ;;  %v1845_v59 = vsel %vm1621_vm4, %v9265_v26, %v9270_v53  ;;  %v1977_v58 = vrot.slane %v9515_v1, 4 }
 0x5b3   : > { %v2013_v25 = vsel %vm1621_vm4, %v11085_v63, %v9460_v7  ;;  %v9630_v45 = vsel %vm1621_vm4, 0.0, %v9601_v11  ;;  %v9634_v52 = vsel %vm1621_vm4, 0.0, %v9603_v62  ;;  %v9637_v12 = vsel %vm1621_vm4, 0.0, %v2729_v49 }
 0x5b4   : > { %v9640_v7 = vsel %vm1621_vm4, 0.0, %v2673_v38  ;;  %v9644_v27 = vsel %vm1621_vm4, 0.0, %v9606_v3  ;;  %v9647_v26 = vsel %vm1621_vm4, 0.0, %v2733_v17  ;;  %v9651_v53 = vsel %vm1621_vm4, 0.0, %v9609_v20 }
 0x5b5   : > { %v9654_v1 = vperm.slane %v1845_v59, %v8926_v14  ;;  %v11086_v48 = vrot.slane %v9284_v46, 4  ;;  %v1880_v33 = vsel %vm1621_vm4, %v1879_v44, %v9295_v0  ;;  %v2414_v6 = vsel %vm1621_vm4, %v9476_v51, %v2413_v13 }
 0x5b6   : > { %v9665_v19 = vsel %vm1621_vm4, 0.0, %v2677_v41  ;;  %v2854_v2 = vrot.slane %v9630_v45, 4  ;;  %v1886_v9 = vperm.slane %v1880_v33, %v8931_v22  ;;  %v2865_v46 = vrot.slane %v9634_v52, 4 }
 0x5b7   : > { %v1851_v29 = vsel %vm1621_vm4, %v11086_v48, %v9319_v32  ;;  %v3093_v23 = vpack.c.bf16 %v2414_v6, %v2414_v6  ;;  %v11087_v32 = vrot.slane %v9354_v16, 4  ;;  %v2523_v51 = vsel %vm1621_vm4, %v9350_v31, %v9354_v16 }
 0x5b8   : > { %v9669_v54 = vperm.slane %v1851_v29, %v8926_v14  ;;  %v1869_v17 = vrot.slane %v9654_v1, 4  ;;  %v2527_v13 = vperm.slane %v2523_v51, %v8926_v14  ;;  %v11088_v38 = vrot.slane %v9377_v10, 4 }
 0x5b9   : > { %v2354_v42 = vsel %vm1621_vm4, 0.0, %v11087_v32  ;;  %v1891_v63 = vrot.slane %v1886_v9, 4  ;;  %v2534_v59 = vsel %vm1621_vm4, %v9341_v4, %v9336_v57  ;;  %v11089_v31 = vrot.slane %v9369_v34, 4 }
 0x5ba   : > { %v1867_v49 = vrot.slane %v9669_v54, 4  ;;  %v2529_v44 = vsel %vm1621_vm4, %v11088_v38, %v2354_v42  ;;  %v3330_v29 = vsel %vm3097_vm8, %v3093_v23, 0  ;;  %v2538_v10 = vperm.slane %v2534_v59, %v8926_v14 }
 0x5bb   : > { %v2533_v41 = vperm.slane %v2529_v44, %v8926_v14  ;;  %v2540_v16 = vsel %vm1621_vm4, %v11089_v31, %v9419_v60  ;;  %v11090_v42 = vrot.slane %v9327_v50, 4  ;;  %v1978_v4 = vsel %vm1621_vm4, %v9519_v18, %v1977_v58 }
 0x5bc   : > { %v1868_v48 = vsel %vm1621_vm4, %v1867_v49, %v9654_v1  ;;  %v2544_v33 = vperm.slane %v2540_v16, %v8926_v14  ;;  %v2547_v34 = vrot.slane %v2527_v13, 4  ;;  %v9706_v23 = vperm.slane %v1978_v4, %v8931_v22 }
 0x5bd   : > { %v1874_v6 = vperm.slane %v1868_v48, %v8931_v22  ;;  %v2545_v32 = vrot.slane %v2533_v41, 4  ;;  %v1948_v57 = vsel %vm1621_vm4, %v9316_v28, %v11090_v42  ;;  %v11091_v59 = vrot.slane %v9232_v15, 4 }
 0x5be   : > { %v2557_v60 = vrot.slane %v2544_v33, 4  ;;  %v3070_v51 = vpack.c.bf16 %v1948_v57, %v1948_v57  ;;  %v2559_v16 = vrot.slane %v2538_v10, 4  ;;  %v2467_v15 = vrot.slane %v9537_v21, 4 }
 0x5bf   : > { %v1892_v49 = vsel %vm1621_vm4, %v1891_v63, %v1874_v6  ;;  %v1893_v38 = vrot.slane %v1874_v6, 4  ;;  %v2546_v44 = vsel %vm1621_vm4, %v2545_v32, %v2527_v13  ;;  %v1990_v50 = vsel %vm1621_vm4, %v9239_v39, %v11091_v59 }
 0x5c0   : > { %v3065_v28 = vpack.c.bf16 %v1892_v49, %v1892_v49  ;;  %v2552_v31 = vperm.slane %v2546_v44, %v8931_v22  ;;  %v2558_v18 = vsel %vm1621_vm4, %v2557_v60, %v2538_v10  ;;  %7112 = vmatmul.msk.bf16.vlgmr.msra.gmra.mxu3 %vm3097_vm8, %v3070_v51  ;;  %v9718_v58 = vperm.slane %v1990_v50, %v8931_v22 }
 0x5c1   : > { %v1894_v63 = vsel %vm1621_vm4, %v1886_v9, %v1893_v38  ;;  %v2564_v13 = vperm.slane %v2558_v18, %v8931_v22  ;;  %v9726_v32 = vperm.slane %v2013_v25, %v8926_v14  ;;  %v2468_v57 = vsel %vm1621_vm4, %v9547_v55, %v2467_v15 }
 0x5c2   : > { %7107 = vmatmul.msk.bf16.vlgmr.msra.gmra.mxu1 %vm3097_vm8, %v3065_v28  ;;  %v3069_v39 = vpack.c.bf16 %v1894_v63, %v1894_v63  ;;  %v2571_v48 = vrot.slane %v2552_v31, 4  ;;  %v2003_v6 = vrot.slane %v9718_v58, 4  ;;  %v9732_v9 = vperm.slane %v9431_v30, %v8926_v14 }
 0x5c3   : > { %v2569_v42 = vrot.slane %v2564_v13, 4  ;;  %v2042_v21 = vsel %vm1621_vm4, %v2041_v40, %v9613_v24  ;;  %v3094_v4 = vpack.c.bf16 %v2468_v57, %v2468_v57  ;;  %v2029_v60 = vrot.slane %v9726_v32, 4 }
 0x5c4   : > { %7111 = vmatmul.msk.bf16.vlgmr.msra.gmra.mxu2 %vm3097_vm8, %v3069_v39  ;;  %v2572_v10 = vsel %vm1621_vm4, %v2564_v13, %v2571_v48  ;;  %v2004_v25 = vsel %vm1621_vm4, %v2003_v6, %v9706_v23  ;;  %v9745_v49 = vperm.slane %v2042_v21, %v8931_v22  ;;  %v2548_v59 = vsel %vm1621_vm4, %v2533_v41, %v2547_v34  ;;  %v11095_v39 = vld [vmem:[#allocation13_spill] sm:$0xff] }
 0x5c5   : > { %3339 = vmatpush.bf16.xpose.msra.mxu2 %v3330_v29  ;;  %v2570_v55 = vsel %vm1621_vm4, %v2569_v42, %v2552_v31  ;;  %v3088_v30 = vpack.c.bf16 %v2572_v10, %v2572_v10  ;;  %v3075_v51 = vpack.c.bf16 %v2004_v25, %v2004_v25  ;;  %v3349_v40 = vsel %vm3097_vm8, %v3094_v4, 0 }
 0x5c6   : > { %v3084_v38 = vpack.c.bf16 %v2570_v55, %v2570_v55  ;;  %v2030_v44 = vsel %vm1621_vm4, %v2029_v60, %v9732_v9  ;;  %v2860_v50 = vsel %vm1621_vm4, %v9603_v62, %v9599_v61  ;;  %v2919_v29 = vrot.slane %v9651_v53, 4  ;;  %3358 = vmatpush.bf16.xpose.msra.mxu3 %v3349_v40 }
 0x5c7   : > { %v3235_v28 = vsel %vm3097_vm8, %v3088_v30, 0  ;;  %7117 = vmatmul.msk.bf16.vlgmr.msra.gmra.mxu0 %vm3097_vm8, %v3075_v51  ;;  %v2053_v31 = vrot.slane %v9745_v49, 4  ;;  %v2560_v63 = vsel %vm1621_vm4, %v2544_v33, %v2559_v16  ;;  %v1870_v41 = vsel %vm1621_vm4, %v9669_v54, %v1869_v17 }
 0x5c8   : > { %v3159_v18 = vsel %vm3097_vm8, %v3084_v38, 0  ;;  %v11092_v61 = vrot.slane %v9295_v0, 4  ;;  %v2866_v53 = vsel %vm1621_vm4, %v2865_v46, %v9665_v19  ;;  %v9773_v34 = vperm.slane %v2030_v44, %v8931_v22 }
 0x5c9   : > { %3168 = vmatpush.bf16.xpose.msrb.mxu1 %v3159_v18  ;;  %v9776_v33 = vperm.slane %v2548_v59, %v8931_v22  ;;  %v9779_v1 = vperm.slane %v2560_v63, %v8931_v22  ;;  %v9782_v0 = vperm.slane %v1870_v41, %v8931_v22  ;;  %v2849_v52 = vsel %vm1621_vm4, %v9601_v11, %v9596_v8 }
 0x5ca   : > { %v1882_v62 = vsel %vm1621_vm4, %v9414_v56, %v11092_v61  ;;  %v2855_v19 = vsel %vm1621_vm4, %v2854_v2, %v9640_v7  ;;  %v2908_v54 = vrot.slane %v9644_v27, 4  ;;  %v2920_v46 = vsel %vm1621_vm4, %v2919_v29, %v9647_v26 }
 0x5cb   : > { %v9785_v56 = vperm.slane %v1882_v62, %v8931_v22  ;;  %v2573_v17 = vrot.slane %v9779_v1, 4  ;;  %v9799_v16 = vperm.slane %v2855_v19, %v8926_v14  ;;  %v2054_v13 = vsel %vm1621_vm4, %v2053_v31, %v9773_v34 }
 0x5cc   : > { %v9805_v11 = vperm.slane %v2849_v52, %v8926_v14  ;;  %v9808_v45 = vperm.slane %v2866_v53, %v8926_v14  ;;  %v11093_v26 = vrot.slane %v9308_v5, 4  ;;  %v11094_v15 = vrot.slane %v9126_v36, 4 }
 0x5cd   : > { %v1895_v8 = vrot.slane %v9785_v56, 4  ;;  %v2574_v7 = vsel %vm1621_vm4, %v2573_v17, %v9776_v33  ;;  %v2871_v27 = vrot.slane %v9799_v16, 4  ;;  %v9824_v57 = vperm.slane %v2860_v50, %v8926_v14 }
 0x5ce   : > { %v1924_v2 = vsel %vm1621_vm4, %v9301_v43, %v11093_v26  ;;  %v1936_v48 = vsel %vm1621_vm4, %v11095_v39, %v11094_v15  ;;  %v3092_v6 = vpack.c.bf16 %v2574_v7, %v2574_v7  ;;  %v2883_v21 = vrot.slane %v9808_v45, 4 }
 0x5cf   : > { %v1896_v42 = vsel %vm1621_vm4, %v1895_v8, %v9782_v0  ;;  %v2872_v5 = vsel %vm1621_vm4, %v2871_v27, %v9805_v11  ;;  %v1932_v10 = vperm.slane %v1924_v2, %v8931_v22  ;;  %v1944_v43 = vperm.slane %v1936_v48, %v8931_v22 }
 0x5d0   : > { %v2005_v36 = vrot.slane %v9706_v23, 4  ;;  %v2914_v25 = vsel %vm1621_vm4, %v9609_v20, %v9593_v35  ;;  %v3068_v4 = vpack.c.bf16 %v2054_v13, %v2054_v13  ;;  %v3073_v60 = vpack.c.bf16 %v1896_v42, %v1896_v42 }
 0x5d1   : > { %3244 = vmatpush.bf16.xpose.msra.mxu1 %v3235_v28  ;;  %v2884_v55 = vsel %vm1621_vm4, %v2883_v21, %v9824_v57  ;;  %v3311_v30 = vsel %vm3097_vm8, %v3092_v6, 0  ;;  %v2878_v51 = vperm.slane %v2872_v5, %v8931_v22  ;;  %v1949_v40 = vrot.slane %v1944_v43, 4 }
 0x5d2   : > { %v2890_v38 = vperm.slane %v2884_v55, %v8931_v22  ;;  %7110 = vmatmul.msk.bf16.vlgmr.msrb.gmra.mxu1 %vm3097_vm8, %v3068_v4  ;;  %v2006_v23 = vsel %vm1621_vm4, %v9718_v58, %v2005_v36  ;;  %v2903_v35 = vsel %vm1621_vm4, %v9606_v3, %v9590_v37  ;;  %v2909_v20 = vsel %vm1621_vm4, %v2908_v54, %v9637_v12 }
 0x5d3   : > { %v2924_v44 = vperm.slane %v2920_v46, %v8926_v14  ;;  %v1950_v50 = vsel %vm1621_vm4, %v1949_v40, %v1932_v10  ;;  %v9851_v29 = vperm.slane %v2909_v20, %v8926_v14  ;;  %v2918_v58 = vperm.slane %v2914_v25, %v8926_v14 }
 0x5d4   : > { %v2895_v59 = vrot.slane %v2890_v38, 4  ;;  %7115 = vmatmul.msk.bf16.vlgmr.msrb.gmra.mxu2 %vm3097_vm8, %v3073_v60  ;;  %v3074_v28 = vpack.c.bf16 %v1950_v50, %v1950_v50  ;;  %v3079_v3 = vpack.c.bf16 %v2006_v23, %v2006_v23  ;;  %v2907_v12 = vperm.slane %v2903_v35, %v8926_v14 }
 0x5d5   : > { %v2937_v31 = vrot.slane %v2924_v44, 4  ;;  %v2925_v18 = vrot.slane %v9851_v29, 4  ;;  %v2575_v61 = vrot.slane %v9776_v33, 4  ;;  %v1951_v54 = vrot.slane %v1932_v10, 4 }
 0x5d6   : > { %v2896_v37 = vsel %vm1621_vm4, %v2895_v59, %v2878_v51  ;;  %7116 = vmatmul.msk.bf16.vlgmr.msrb.gmra.mxu3 %vm3097_vm8, %v3074_v28  ;;  %v2055_v46 = vrot.slane %v9773_v34, 4  ;;  %v2897_v13 = vrot.slane %v2878_v51, 4  ;;  %v1897_v8 = vrot.slane %v9782_v0, 4 }
 0x5d7   : > { %v3594_v63 = vpack.c.bf16 %v2896_v37, %v2896_v37  ;;  %v2938_v41 = vsel %vm1621_vm4, %v2937_v31, %v2918_v58  ;;  %7121 = vmatmul.msk.bf16.vlgmr.msrb.gmra.mxu0 %vm3097_vm8, %v3079_v3  ;;  %v2926_v62 = vsel %vm1621_vm4, %v2925_v18, %v2907_v12  ;;  %v2576_v33 = vsel %vm1621_vm4, %v9779_v1, %v2575_v61 }
 0x5d8   : > { %v2944_v53 = vperm.slane %v2938_v41, %v8931_v22  ;;  %v2932_v19 = vperm.slane %v2926_v62, %v8931_v22  ;;  %v1952_v7 = vsel %vm1621_vm4, %v1944_v43, %v1951_v54  ;;  %v2056_v15 = vsel %vm1621_vm4, %v9745_v49, %v2055_v46 }
 0x5d9   : > { %3320 = vmatpush.bf16.xpose.msrb.mxu1 %v3311_v30  ;;  %v3615_v52 = vsel %vm3613_vm9, %v3594_v63, 0  ;;  %v3096_v39 = vpack.c.bf16 %v2576_v33, %v2576_v33  ;;  %v2898_v34 = vsel %vm1621_vm4, %v2890_v38, %v2897_v13  ;;  %v2043_v48 = vrot.slane %v9613_v24, 4 }
 0x5da   : > { %3624 = vmatpush.bf16.msrb.mxu2 %v3615_v52  ;;  %v2949_v17 = vrot.slane %v2944_v53, 4  ;;  %v2951_v26 = vrot.slane %v2932_v19, 4  ;;  %v1898_v0 = vsel %vm1621_vm4, %v9785_v56, %v1897_v8  ;;  %v3072_v42 = vpack.c.bf16 %v2056_v15, %v2056_v15 }
 0x5db   : > { %v3598_v21 = vpack.c.bf16 %v2898_v34, %v2898_v34  ;;  %v3387_v5 = vsel %vm3097_vm8, %v3096_v39, 0  ;;  %v3077_v10 = vpack.c.bf16 %v1898_v0, %v1898_v0  ;;  %v2044_v43 = vsel %vm1621_vm4, %v9481_v47, %v2043_v48 }
 0x5dc   : > { %v2950_v27 = vsel %vm1621_vm4, %v2949_v17, %v2932_v19  ;;  %v2952_v1 = vsel %vm1621_vm4, %v2944_v53, %v2951_v26  ;;  %v2939_v24 = vrot.slane %v2918_v58, 4  ;;  %v2885_v36 = vrot.slane %v9824_v57, 4 }
 0x5dd   : > { %v3595_v2 = vpack.c.bf16 %v2950_v27, %v2950_v27  ;;  %v3599_v49 = vpack.c.bf16 %v2952_v1, %v2952_v1  ;;  %v2031_v25 = vrot.slane %v9732_v9, 4  ;;  %v3691_v56 = vsel %vm3613_vm9, %v3598_v21, 0 }
 0x5de   : > { %v3078_v4 = vpack.c.bf16 %v1952_v7, %v1952_v7  ;;  %v2927_v60 = vrot.slane %v2907_v12, 4  ;;  %v2873_v55 = vrot.slane %v9805_v11, 4  ;;  %v2052_v30 = vperm.slane %v2044_v43, %v8931_v22 }
 0x5df   : > { %v3634_v6 = vsel %vm3613_vm9, %v3595_v2, 0  ;;  %v2940_v51 = vsel %vm1621_vm4, %v2924_v44, %v2939_v24  ;;  %v2886_v47 = vsel %vm1621_vm4, %v9808_v45, %v2885_v36  ;;  %v3710_v9 = vsel %vm3613_vm9, %v3599_v49, 0 }
 0x5e0   : > { %3643 = vmatpush.bf16.msrb.mxu3 %v3634_v6  ;;  %v2948_v57 = vperm.slane %v2940_v51, %v8931_v22  ;;  %v2894_v38 = vperm.slane %v2886_v47, %v8931_v22  ;;  %v2032_v11 = vsel %vm1621_vm4, %v9726_v32, %v2031_v25  ;;  %v2928_v40 = vsel %vm1621_vm4, %v9851_v29, %v2927_v60 }
 0x5e1   : > { %v2874_v23 = vsel %vm1621_vm4, %v9799_v16, %v2873_v55  ;;  %v2936_v45 = vperm.slane %v2928_v40, %v8931_v22  ;;  %v2057_v59 = vrot.slane %v2052_v30, 4  ;;  %v2040_v29 = vperm.slane %v2032_v11, %v8931_v22 }
 0x5e2   : > { %7114 = vmatmul.msk.bf16.vlgmr.msra.gmra.mxu1 %vm3097_vm8, %v3072_v42  ;;  %v2953_v35 = vrot.slane %v2948_v57, 4  ;;  %v2882_v20 = vperm.slane %v2874_v23, %v8931_v22  ;;  %v2899_v44 = vrot.slane %v2894_v38, 4 }
 0x5e3   : > { %3396 = vmatpush.bf16.xpose.msra.mxu1 %v3387_v5  ;;  %v2955_v58 = vrot.slane %v2936_v45, 4  ;;  %v2058_v37 = vsel %vm1621_vm4, %v2057_v59, %v2040_v29  ;;  %v2059_v12 = vrot.slane %v2040_v29, 4  ;;  %v11096_v29 = vld [vmem:[#allocation10_spill] sm:$0xff] }
 0x5e4   : > { %7119 = vmatmul.msk.bf16.vlgmr.msra.gmra.mxu2 %vm3097_vm8, %v3077_v10  ;;  %v9906_v50 = vsel %vm1621_vm4, %v2953_v35, %v2936_v45  ;;  %v9909_v28 = vsel %vm1621_vm4, %v2899_v44, %v2882_v20  ;;  %v2901_v32 = vrot.slane %v2882_v20, 4  ;;  %v3076_v3 = vpack.c.bf16 %v2058_v37, %v2058_v37  ;;  %v11097_v37 = vld [vmem:[#allocation11_spill] sm:$0xff] }
 0x5e5   : > { %3700 = vmatpush.bf16.msra.mxu2 %v3691_v56  ;;  %v9916_v16 = vsel %vm1621_vm4, %v2948_v57, %v2955_v58  ;;  %v2060_v18 = vsel %vm1621_vm4, %v2052_v30, %v2059_v12 }
 0x5e6   : > { %7120 = vmatmul.msk.bf16.vlgmr.msra.gmra.mxu3 %vm3097_vm8, %v3078_v4  ;;  %v9913_v31 = vsel %vm1621_vm4, %v2894_v38, %v2901_v32  ;;  %v3080_v63 = vpack.c.bf16 %v2060_v18, %v2060_v18  ;;  %v9970_v38 = vpop.permute.xlu2 %8238 }
 0x5e7   : > { %3719 = vmatpush.bf16.msra.mxu3 %v3710_v9 }
 0x5f2   : > { %7118 = vmatmul.msk.bf16.vlgmr.msrb.gmra.mxu1 %vm3097_vm8, %v3076_v3 }
 0x602   : > { %7122 = vmatmul.msk.bf16.vlgmr.msra.gmra.mxu1 %vm3097_vm8, %v3080_v63 }
 0x603   : > { %v3132_v41 = vpop.f32.mrf.mxu3 }
 0x604   : > { %v3405_v61 = vsel %vm3097_vm8, %v3132_v41, -inf }
 0x605   : > { %3406 = vmax.xlane.f32.xlu2 %v3405_v61 }
 0x60b   : > { %v3134_v62 = vpop.f32.mrf.mxu3 }
 0x62a   : > { %v9923_v53 = vpop.f32.mrf.mxu0 }
 0x62b   : > { %v3420_v34 = vsel %vm3097_vm8, %v9923_v53, -inf }
 0x62e   : > { %v9925_v52 = vpop.f32.mrf.mxu3 }
 0x62f   : > { %v3408_v43 = vsel %vm3097_vm8, %v9925_v52, -inf }
 0x632   : > { %v3229_v19 = vpop.f32.mrf.mxu0 }
 0x636   : > { %v3153_v54 = vpop.f32.mrf.mxu3 }
 0x63f   : > { %v9927_v46 = vpop.f32.mrf.mxu1 }
 0x640   : > { %v3402_v17 = vsel %vm3097_vm8, %v9927_v46, -inf }
 0x641   : > { %3403 = vmax.xlane.f32.xlu1 %v3402_v17 }
 0x643   : > { %v9931_v13 = vpop.f32.mrf.mxu3 }
 0x644   : > { %v9933_v8 = vpop.f32.mrf.mxu0  ;;  %v3417_v51 = vsel %vm3097_vm8, %v9931_v13, -inf }
 0x645   : > { %v3432_v56 = vsel %vm3097_vm8, %v9933_v8, -inf }
 0x647   : > { %v3115_v33 = vpop.f32.mrf.mxu1  ;;  %v9935_v7 = vpop.f32.mrf.mxu2 }
 0x648   : > { %v3414_v27 = vsel %vm3097_vm8, %v9935_v7, -inf }
 0x649   : > { %3415 = vmax.xlane.f32.xlu0 %v3414_v27 }
 0x64b   : > { %v3210_v26 = vpop.f32.mrf.mxu3 }
 0x64c   : > { %v3305_v2 = vpop.f32.mrf.mxu0 }
 0x64f   : > { %v9939_v15 = vpop.f32.mrf.mxu1  ;;  %v3191_v39 = vpop.f32.mrf.mxu2 }
 0x650   : > { %v3411_v48 = vsel %vm3097_vm8, %v9939_v15, -inf }
 0x651   : > { %3421 = vmax.xlane.f32.xlu0 %v3420_v34  ;;  %3412 = vmax.xlane.f32.xlu2 %v3411_v48  ;;  %v11098_v48 = vld [vmem:[#allocation12_spill] sm:$0xff] }
 0x654   : > { %v9945_v6 = vpop.f32.mrf.mxu0 }
 0x657   : > { %v3172_v0 = vpop.f32.mrf.mxu1  ;;  %v3265_v1 = vpop.f32.mrf.mxu2 }
 0x658   : > { %v3426_v42 = vsel %vm3097_vm8, %v3265_v1, -inf }
 0x659   : > { %3427 = vmax.xlane.f32.xlu1 %v3426_v42  ;;  %v9948_v21 = vpop.f32.mrf.mxu3 }
 0x65a   : > { %v3429_v40 = vsel %vm3097_vm8, %v9948_v21, -inf }
 0x65c   : > { %v3381_v5 = vpop.f32.mrf.mxu0 }
 0x65f   : > { %v9950_v10 = vpop.f32.mrf.mxu1  ;;  %v3267_v49 = vpop.f32.mrf.mxu2 }
 0x660   : > { %v3423_v47 = vsel %vm3097_vm8, %v9950_v10, -inf }
 0x661   : > { %3409 = vmax.xlane.f32.xlu1 %v3408_v43  ;;  %v3286_v24 = vpop.f32.mrf.mxu3 }
 0x667   : > { %v3248_v36 = vpop.f32.mrf.mxu1  ;;  %v9954_v25 = vpop.f32.mrf.mxu2 }
 0x668   : > { %v3438_v4 = vsel %vm3097_vm8, %v9954_v25, -inf }
 0x669   : > { %3433 = vmax.xlane.f32.xlu1 %v3432_v56  ;;  %3439 = vmax.xlane.f32.xlu2 %v3438_v4  ;;  %v9960_v60 = vpop.f32.mrf.mxu3 }
 0x66a   : > { %v3441_v23 = vsel %vm3097_vm8, %v9960_v60, -inf }
 0x66f   : > { %v9962_v55 = vpop.f32.mrf.mxu1  ;;  %v3343_v30 = vpop.f32.mrf.mxu2 }
 0x670   : > { %v3435_v9 = vsel %vm3097_vm8, %v9962_v55, -inf }
 0x671   : > { %3418 = vmax.xlane.f32.xlu2 %v3417_v51  ;;  %3424 = vmax.xlane.f32.xlu1 %v3423_v47  ;;  %v3362_v57 = vpop.f32.mrf.mxu3 }
 0x672   : > { %3436 = vmax.xlane.f32.xlu0 %v3435_v9 }
 0x677   : > { %v3324_v11 = vpop.f32.mrf.mxu1 }
 0x678   : > { %v3407_v45 = vpop.xlane.xlu2 %3406 }
 0x679   : > { %3430 = vmax.xlane.f32.xlu2 %v3429_v40  ;;  %v3451_v35 = vsub.f32 %v3132_v41, %v3407_v45 }
 0x67a   : > { %3442 = vmax.xlane.f32.xlu0 %v3441_v23 }
 0x67b   : > { %v3468_v44 = vmul.f32 1.442695, %v3451_v35 }
 0x67d   : > { %8294 = vpow2.f32 %v3468_v44 }
 0x67f   : > { %v9976_v20 = vpop.f32.mrf.mxu1 }
 0x683   : > { %v9978_v32 = vpop.eup %8294 }
 0x684   : > { %v3501_v58 = vsel %vm3097_vm8, %v9978_v32, 0.0 }
 0x685   : > { %3502 = vadd.xlane.f32.xlu0 %v3501_v58 }
 0x687   : > { %v3400_v59 = vpop.f32.mrf.mxu1 }
 0x691   : > { %8253 = vrot.lane.b32.xlu2 %v11096_v29, %s8439_s22 }
 0x699   : > { %8248 = vrot.lane.b32.xlu0 %v11097_v37, %s8439_s22 }
 0x6b4   : > { %v3404_v3 = vpop.xlane.xlu1 %3403 }
 0x6b5   : > { %v3450_v12 = vsub.f32 %v9927_v46, %v3404_v3 }
 0x6b7   : > { %v3466_v18 = vmul.f32 1.442695, %v3450_v12 }
 0x6b9   : > { %8296 = vpow2.f32 %v3466_v18 }
 0x6bc   : > { %v3416_v63 = vpop.xlane.xlu0 %3415 }
 0x6bd   : > { %v3454_v41 = vsub.f32 %v9935_v7, %v3416_v63  ;;  %v3447_v7 = vsel %vm3097_vm8, %v9976_v20, -inf }
 0x6bf   : > { %v9988_v61 = vpop.eup %8296  ;;  %v3474_v62 = vmul.f32 1.442695, %v3454_v41 }
 0x6c0   : > { %v3498_v19 = vsel %vm3097_vm8, %v9988_v61, 0.0 }
 0x6c1   : > { %8298 = vpow2.f32 %v3474_v62  ;;  %3499 = vadd.xlane.f32.xlu1 %v3498_v19 }
 0x6c4   : > { %v3413_v26 = vpop.xlane.xlu2 %3412 }
 0x6c5   : > { %v3453_v58 = vsub.f32 %v9939_v15, %v3413_v26  ;;  %v3444_v15 = vsel %vm3097_vm8, %v9945_v6, -inf }
 0x6c7   : > { %v9992_v54 = vpop.eup %8298  ;;  %v3472_v12 = vmul.f32 1.442695, %v3453_v58 }
 0x6c8   : > { %v3510_v17 = vsel %vm3097_vm8, %v9992_v54, 0.0 }
 0x6c9   : > { %3511 = vadd.xlane.f32.xlu2 %v3510_v17 }
 0x6cc   : > { %v3428_v46 = vpop.xlane.xlu1 %3427 }
 0x6cd   : > { %v3458_v33 = vsub.f32 %v3265_v1, %v3428_v46  ;;  %v3422_v1 = vpop.xlane.xlu0 %3421 }
 0x6ce   : > { %v3456_v63 = vsub.f32 %v9923_v53, %v3422_v1 }
 0x6cf   : > { %v3482_v27 = vmul.f32 1.442695, %v3458_v33 }
 0x6d0   : > { %v3478_v46 = vmul.f32 1.442695, %v3456_v63 }
 0x6d1   : > { %8300 = vpow2.f32 %v3482_v27  ;;  %3448 = vmax.xlane.f32.xlu2 %v3447_v7 }
 0x6d4   : > { %v3410_v2 = vpop.xlane.xlu1 %3409 }
 0x6d5   : > { %v3452_v36 = vsub.f32 %v9925_v52, %v3410_v2 }
 0x6d7   : > { %v9998_v39 = vpop.eup %8300  ;;  %v3470_v51 = vmul.f32 1.442695, %v3452_v36  ;;  %v3602_v36 = vpack.c.bf16 %v9909_v28, %v9909_v28 }
 0x6d8   : > { %v3522_v34 = vsel %vm3097_vm8, %v9998_v39, 0.0 }
 0x6d9   : > { %3523 = vadd.xlane.f32.xlu2 %v3522_v34 }
 0x6da   : > { %8243 = vrot.lane.b32.xlu1 %v11098_v48, %s8439_s22 }
 0x6dc   : > { %v3434_v0 = vpop.xlane.xlu1 %3433  ;;  %v3440_v42 = vpop.xlane.xlu2 %3439 }
 0x6dd   : > { %v3460_v30 = vsub.f32 %v9933_v8, %v3434_v0  ;;  %v3462_v44 = vsub.f32 %v9954_v25, %v3440_v42 }
 0x6df   : > { %v3486_v9 = vmul.f32 1.442695, %v3460_v30  ;;  %v3490_v29 = vmul.f32 1.442695, %v3462_v44  ;;  %v3767_v30 = vsel %vm3613_vm9, %v3602_v36, 0 }
 0x6e4   : > { %v3419_v5 = vpop.xlane.xlu2 %3418  ;;  %v3425_v49 = vpop.xlane.xlu1 %3424 }
 0x6e5   : > { %v3455_v43 = vsub.f32 %v9931_v13, %v3419_v5  ;;  %v3457_v24 = vsub.f32 %v9950_v10, %v3425_v49  ;;  %v3437_v47 = vpop.xlane.xlu0 %3436 }
 0x6e6   : > { %v3461_v25 = vsub.f32 %v9962_v55, %v3437_v47  ;;  %v3603_v55 = vpack.c.bf16 %v9906_v50, %v9906_v50 }
 0x6e7   : > { %v3476_v56 = vmul.f32 1.442695, %v3455_v43  ;;  %v3480_v4 = vmul.f32 1.442695, %v3457_v24 }
 0x6e8   : > { %v3488_v41 = vmul.f32 1.442695, %v3461_v25  ;;  %v3786_v7 = vsel %vm3613_vm9, %v3603_v55, 0 }
 0x6e9   : > { %8302 = vpow2.f32 %v3476_v56 }
 0x6ea   : > { %8304 = vpow2.f32 %v3480_v4 }
 0x6eb   : > { %8306 = vpow2.f32 %v3470_v51 }
 0x6ec   : > { %v3431_v57 = vpop.xlane.xlu2 %3430  ;;  %8308 = vpow2.f32 %v3486_v9  ;;  %v8241_v9 = vunpack.i.h.bf16 %v9970_v38 }
 0x6ed   : > { %v3459_v40 = vsub.f32 %v9948_v21, %v3431_v57  ;;  %v3443_v45 = vpop.xlane.xlu0 %3442 }
 0x6ee   : > { %v3463_v26 = vsub.f32 %v9960_v60, %v3443_v45 }
 0x6ef   : > { %v10008_v11 = vpop.eup %8302  ;;  %v3484_v10 = vmul.f32 1.442695, %v3459_v40  ;;  %v8240_v40 = vunpack.i.l.bf16 %v9970_v38  ;;  %v3606_v38 = vpack.c.bf16 %v9913_v31, %v9913_v31 }
 0x6f0   : > { %v10011_v13 = vpop.eup %8304  ;;  %v3513_v52 = vsel %vm3097_vm8, %v10008_v11, 0.0  ;;  %v3492_v2 = vmul.f32 1.442695, %v3463_v26 }
 0x6f1   : > { %3514 = vadd.xlane.f32.xlu0 %v3513_v52  ;;  %v3519_v8 = vsel %vm3097_vm8, %v10011_v13, 0.0  ;;  %v10017_v23 = vpop.eup %8306  ;;  %8310 = vpow2.f32 %v3484_v10  ;;  %v2795_v10 = vrot.slane %v8241_v9, 4 }
 0x6f2   : > { %3520 = vadd.xlane.f32.xlu2 %v3519_v8  ;;  %v10019_v35 = vpop.eup %8308  ;;  %v3504_v21 = vsel %vm3097_vm8, %v10017_v23, 0.0 }
 0x6f3   : > { %v3528_v59 = vsel %vm3097_vm8, %v10019_v35, 0.0 }
 0x6f4   : > { %v8254_v1 = vpop.permute.xlu2 %8253 }
 0x6f5   : > { %v8256_v44 = vunpack.i.h.bf16 %v8254_v1 }
 0x6f7   : > { %v10027_v37 = vpop.eup %8310  ;;  %v2805_v25 = vrot.slane %v8256_v44, 4 }
 0x6f8   : > { %v3503_v3 = vpop.xlane.xlu0 %3502  ;;  %v3525_v18 = vsel %vm3097_vm8, %v10027_v37, 0.0 }
 0x6f9   : > { %3505 = vadd.xlane.f32.xlu0 %v3504_v21  ;;  %8312 = vrcp.f32 %v3503_v3  ;;  %v8255_v21 = vunpack.i.l.bf16 %v8254_v1 }
 0x6fa   : > { %3529 = vadd.xlane.f32.xlu2 %v3528_v59  ;;  %8314 = vpow2.f32 %v3490_v29  ;;  %v2739_v59 = vrot.slane %v8240_v40, 4 }
 0x6fb   : > { %8316 = vpow2.f32 %v3472_v12 }
 0x6fc   : > { %8318 = vpow2.f32 %v3488_v41 }
 0x6fd   : > { %8320 = vpow2.f32 %v3478_v46 }
 0x6fe   : > { %8322 = vpow2.f32 %v3492_v2 }
 0x6ff   : > { %v8313_v62 = vpop.eup %8312 }
 0x700   : > { %v10035_v19 = vpop.eup %8314  ;;  %v3563_v17 = vmul.f32 %v8313_v62, %v9978_v32 }
 0x701   : > { %3526 = vadd.xlane.f32.xlu0 %v3525_v18  ;;  %v10040_v27 = vpop.eup %8316  ;;  %v3534_v53 = vsel %vm3097_vm8, %v10035_v19, 0.0  ;;  %v2749_v18 = vrot.slane %v8255_v21, 4 }
 0x702   : > { %v3579_v33 = vpack.c.bf16 %v3563_v17, %v3563_v17  ;;  %v3507_v50 = vsel %vm3097_vm8, %v10040_v27, 0.0  ;;  %v10049_v32 = vpop.eup %8318 }
 0x703   : > { %v10051_v34 = vpop.eup %8320  ;;  %v3531_v48 = vsel %vm3097_vm8, %v10049_v32, 0.0 }
 0x704   : > { %3445 = vmax.xlane.f32.xlu1 %v3444_v15  ;;  %7124 = vmatmul.msk.bf16.vlgmr.msrb.gmra.mxu3 %vm3097_vm8, %v3579_v33  ;;  %v3516_v0 = vsel %vm3097_vm8, %v10051_v34, 0.0  ;;  %v10057_v60 = vpop.eup %8322 }
 0x705   : > { %3795 = vmatpush.bf16.msrb.mxu3 %v3786_v7  ;;  %v3537_v42 = vsel %vm3097_vm8, %v10057_v60, 0.0 }
 0x709   : > { %3535 = vadd.xlane.f32.xlu0 %v3534_v53 }
 0x70b   : > { %v8249_v4 = vpop.permute.xlu0 %8248 }
 0x70c   : > { %3508 = vadd.xlane.f32.xlu1 %v3507_v50  ;;  %v8251_v51 = vunpack.i.h.bf16 %v8249_v4  ;;  %v8250_v47 = vunpack.i.l.bf16 %v8249_v4 }
 0x70e   : > { %v2793_v52 = vrot.slane %v8251_v51, 4  ;;  %v2737_v8 = vrot.slane %v8250_v47, 4  ;;  %v2796_v58 = vsel %vm1621_vm4, %v8251_v51, %v2795_v10 }
 0x70f   : > { %v2804_v63 = vperm.slane %v2796_v58, %v8926_v14 }
 0x710   : > { %v2794_v29 = vsel %vm1621_vm4, %v2793_v52, %v8241_v9  ;;  %v2738_v3 = vsel %vm1621_vm4, %v2737_v8, %v8240_v40 }
 0x711   : > { %3532 = vadd.xlane.f32.xlu0 %v3531_v48  ;;  %v2800_v15 = vperm.slane %v2794_v29, %v8926_v14  ;;  %v2744_v62 = vperm.slane %v2738_v3, %v8926_v14  ;;  %v2831_v2 = vrot.slane %v2804_v63, 4 }
 0x714   : > { %3517 = vadd.xlane.f32.xlu1 %v3516_v0 }
 0x71c   : > { %3538 = vadd.xlane.f32.xlu1 %v3537_v42 }
 0x734   : > { %v3500_v5 = vpop.xlane.xlu1 %3499 }
 0x735   : > { %8324 = vrcp.f32 %v3500_v5  ;;  %v2819_v5 = vrot.slane %v2800_v15, 4 }
 0x73b   : > { %v8325_v49 = vpop.eup %8324 }
 0x73c   : > { %v3562_v43 = vmul.f32 %v8325_v49, %v9988_v61  ;;  %v3512_v24 = vpop.xlane.xlu2 %3511  ;;  %v2763_v49 = vrot.slane %v2744_v62, 4 }
 0x73d   : > { %8326 = vrcp.f32 %v3512_v24 }
 0x73e   : > { %v3578_v56 = vpack.c.bf16 %v3562_v43, %v3562_v43 }
 0x740   : > { %7123 = vmatmul.msk.bf16.vlgmr.msrb.gmra.mxu2 %vm3097_vm8, %v3578_v56 }
 0x741   : > { %3776 = vmatpush.bf16.msrb.mxu2 %v3767_v30 }
 0x743   : > { %v8327_v28 = vpop.eup %8326 }
 0x744   : > { %v3449_v57 = vpop.xlane.xlu2 %3448  ;;  %v3566_v12 = vmul.f32 %v8327_v28, %v9992_v54  ;;  %v3843_v54 = vsel %vm3613_vm9, %v3606_v38, 0 }
 0x745   : > { %v3465_v61 = vsub.f32 %v9976_v20, %v3449_v57  ;;  %v2740_v20 = vsel %vm1621_vm4, %v8250_v47, %v2739_v59 }
 0x746   : > { %v2748_v46 = vperm.slane %v2740_v20, %v8926_v14  ;;  %v3582_v33 = vpack.c.bf16 %v3566_v12, %v3566_v12 }
 0x747   : > { %v3496_v45 = vmul.f32 1.442695, %v3465_v61 }
 0x748   : > { %v2775_v51 = vrot.slane %v2748_v46, 4 }
 0x749   : > { %8328 = vpow2.f32 %v3496_v45 }
 0x74c   : > { %v8244_v41 = vpop.permute.xlu1 %8243  ;;  %v3524_v42 = vpop.xlane.xlu2 %3523 }
 0x74d   : > { %v8246_v17 = vunpack.i.h.bf16 %v8244_v41  ;;  %v8245_v55 = vunpack.i.l.bf16 %v8244_v41  ;;  %8330 = vrcp.f32 %v3524_v42 }
 0x74f   : > { %v10081_v53 = vpop.eup %8328  ;;  %v2806_v31 = vsel %vm1621_vm4, %v2805_v25, %v8246_v17  ;;  %v2807_v7 = vrot.slane %v8246_v17, 4  ;;  %v2750_v26 = vsel %vm1621_vm4, %v2749_v18, %v8245_v55  ;;  %v2751_v50 = vrot.slane %v8245_v55, 4 }
 0x750   : > { %v2812_v48 = vperm.slane %v2806_v31, %v8926_v14  ;;  %v2756_v0 = vperm.slane %v2750_v26, %v8926_v14  ;;  %7127 = vmatmul.msk.bf16.vlgmr.msra.gmra.mxu2 %vm3097_vm8, %v3582_v33  ;;  %v3543_v1 = vsel %vm3097_vm8, %v10081_v53, 0.0 }
 0x751   : > { %v2808_v43 = vsel %vm1621_vm4, %v8256_v44, %v2807_v7  ;;  %v2752_v24 = vsel %vm1621_vm4, %v8255_v21, %v2751_v50  ;;  %3852 = vmatpush.bf16.msra.mxu2 %v3843_v54  ;;  %3544 = vadd.xlane.f32.xlu2 %v3543_v1 }
 0x752   : > { %v2816_v36 = vperm.slane %v2808_v43, %v8926_v14  ;;  %v2817_v56 = vrot.slane %v2812_v48, 4  ;;  %v2760_v4 = vperm.slane %v2752_v24, %v8926_v14  ;;  %v2761_v30 = vrot.slane %v2756_v0, 4 }
 0x753   : > { %v2764_v47 = vsel %vm1621_vm4, %v2756_v0, %v2763_v49  ;;  %v2820_v9 = vsel %vm1621_vm4, %v2812_v48, %v2819_v5 }
 0x754   : > { %v2829_v57 = vrot.slane %v2816_v36, 4  ;;  %v2762_v40 = vsel %vm1621_vm4, %v2761_v30, %v2744_v62  ;;  %v2772_v61 = vperm.slane %v2764_v47, %v8931_v22  ;;  %v2773_v52 = vrot.slane %v2760_v4, 4 }
 0x755   : > { %v2768_v8 = vperm.slane %v2762_v40, %v8931_v22  ;;  %v2776_v28 = vsel %vm1621_vm4, %v2760_v4, %v2775_v51  ;;  %v2818_v10 = vsel %vm1621_vm4, %v2817_v56, %v2800_v15  ;;  %v2828_v45 = vperm.slane %v2820_v9, %v8931_v22  ;;  %v8331_v15 = vpop.eup %8330 }
 0x756   : > { %v2774_v44 = vsel %vm1621_vm4, %v2773_v52, %v2748_v46  ;;  %v2784_v21 = vperm.slane %v2776_v28, %v8931_v22  ;;  %v2787_v59 = vrot.slane %v2772_v61, 4  ;;  %v2824_v58 = vperm.slane %v2818_v10, %v8931_v22 }
 0x757   : > { %v2780_v29 = vperm.slane %v2774_v44, %v8931_v22  ;;  %v2785_v3 = vrot.slane %v2768_v8, 4  ;;  %v2830_v12 = vsel %vm1621_vm4, %v2829_v57, %v2804_v63  ;;  %v2832_v38 = vsel %vm1621_vm4, %v2816_v36, %v2831_v2 }
 0x758   : > { %v2788_v20 = vsel %vm1621_vm4, 0.0, %v2787_v59  ;;  %v2791_v25 = vrot.slane %v2784_v21, 4  ;;  %v2836_v18 = vperm.slane %v2830_v12, %v8931_v22  ;;  %v2840_v41 = vperm.slane %v2832_v38, %v8931_v22 }
 0x759   : > { %v2786_v62 = vsel %vm1621_vm4, 0.0, %v2785_v3  ;;  %v2789_v17 = vrot.slane %v2780_v29, 4  ;;  %v2841_v55 = vrot.slane %v2824_v58, 4  ;;  %v2843_v46 = vrot.slane %v2828_v45, 4 }
 0x75a   : > { %v2792_v33 = vsel %vm1621_vm4, 0.0, %v2791_v25  ;;  %v2845_v54 = vrot.slane %v2836_v18, 4  ;;  %v2847_v31 = vrot.slane %v2840_v41, 4  ;;  %v2962_v63 = vrot.slane %v2788_v20, 4 }
 0x75b   : > { %v2790_v7 = vsel %vm1621_vm4, 0.0, %v2789_v17  ;;  %v2844_v26 = vsel %vm1621_vm4, 0.0, %v2843_v46  ;;  %v2973_v50 = vrot.slane %v2792_v33, 4  ;;  %v2842_v2 = vsel %vm1621_vm4, 0.0, %v2841_v55 }
 0x75c   : > { %v2848_v48 = vsel %vm1621_vm4, 0.0, %v2847_v31  ;;  %v3016_v0 = vrot.slane %v2844_v26, 4  ;;  %v3570_v42 = vmul.f32 %v8331_v15, %v9998_v39  ;;  %v2957_v5 = vsel %vm1621_vm4, %v2787_v59, %v2768_v8 }
 0x75d   : > { %v3027_v1 = vrot.slane %v2848_v48, 4  ;;  %v2963_v49 = vsel %vm1621_vm4, %v2962_v63, %v2786_v62  ;;  %v2968_v43 = vsel %vm1621_vm4, %v2791_v25, %v2780_v29  ;;  %v2846_v24 = vsel %vm1621_vm4, 0.0, %v2845_v54 }
 0x75e   : > { %v3586_v36 = vpack.c.bf16 %v3570_v42, %v3570_v42  ;;  %v2967_v56 = vperm.slane %v2963_v49, %v8926_v14  ;;  %v2972_v4 = vperm.slane %v2968_v43, %v8926_v14  ;;  %v2961_v30 = vperm.slane %v2957_v5, %v8926_v14 }
 0x75f   : > { %v2974_v51 = vsel %vm1621_vm4, %v2973_v50, %v2790_v7  ;;  %v3011_v39 = vsel %vm1621_vm4, %v2843_v46, %v2824_v58  ;;  %v3017_v47 = vsel %vm1621_vm4, %v3016_v0, %v2842_v2  ;;  %v3022_v61 = vsel %vm1621_vm4, %v2847_v31, %v2836_v18 }
 0x760   : > { %7131 = vmatmul.msk.bf16.vlgmr.msrb.gmra.mxu2 %vm3097_vm8, %v3586_v36  ;;  %v2978_v9 = vperm.slane %v2974_v51, %v8926_v14  ;;  %v2979_v57 = vrot.slane %v2967_v56, 4  ;;  %v10131_v40 = vperm.slane %v3017_v47, %v8926_v14  ;;  %v10135_v52 = vperm.slane %v3011_v39, %v8926_v14 }
 0x761   : > { %v3028_v8 = vsel %vm1621_vm4, %v3027_v1, %v2846_v24  ;;  %v2993_v28 = vrot.slane %v2972_v4, 4  ;;  %v3026_v58 = vperm.slane %v3022_v61, %v8926_v14  ;;  %v2981_v33 = vrot.slane %v2961_v30, 4 }
 0x762   : > { %v2980_v10 = vsel %vm1621_vm4, %v2979_v57, %v2961_v30  ;;  %v2991_v45 = vrot.slane %v2978_v9, 4  ;;  %v3032_v44 = vperm.slane %v3028_v8, %v8926_v14  ;;  %v3033_v21 = vrot.slane %v10131_v40, 4 }
 0x763   : > { %v2986_v59 = vperm.slane %v2980_v10, %v8931_v22  ;;  %v2994_v20 = vsel %vm1621_vm4, %v2978_v9, %v2993_v28  ;;  %v3607_v42 = vpack.c.bf16 %v9916_v16, %v9916_v16  ;;  %v2982_v24 = vsel %vm1621_vm4, %v2967_v56, %v2981_v33 }
 0x764   : > { %v3515_v29 = vpop.xlane.xlu0 %3514  ;;  %v2992_v3 = vsel %vm1621_vm4, %v2991_v45, %v2972_v4  ;;  %v3034_v12 = vsel %vm1621_vm4, %v3033_v21, %v10135_v52  ;;  %v3045_v38 = vrot.slane %v3032_v44, 4  ;;  %v10153_v54 = vperm.slane %v2994_v20, %v8931_v22 }
 0x765   : > { %8332 = vrcp.f32 %v3515_v29  ;;  %v2998_v25 = vperm.slane %v2992_v3, %v8931_v22  ;;  %v3040_v18 = vperm.slane %v3034_v12, %v8931_v22  ;;  %v3005_v41 = vrot.slane %v2986_v59, 4 }
 0x766   : > { %v3046_v15 = vsel %vm1621_vm4, %v3045_v38, %v3026_v58  ;;  %v3007_v4 = vrot.slane %v10153_v54, 4  ;;  %v3862_v56 = vsel %vm3613_vm9, %v3607_v42, 0  ;;  %v3047_v8 = vrot.slane %v3026_v58, 4 }
 0x767   : > { %v3003_v62 = vrot.slane %v2998_v25, 4  ;;  %v3052_v17 = vperm.slane %v3046_v15, %v8931_v22  ;;  %v3006_v55 = vsel %vm1621_vm4, %v2998_v25, %v3005_v41  ;;  %v3059_v46 = vrot.slane %v3040_v18, 4 }
 0x768   : > { %v3600_v7 = vpack.c.bf16 %v3006_v55, %v3006_v55  ;;  %v3035_v12 = vrot.slane %v10135_v52, 4 }
 0x769   : > { %v3004_v31 = vsel %vm1621_vm4, %v3003_v62, %v2986_v59  ;;  %v3057_v63 = vrot.slane %v3052_v17, 4  ;;  %v3060_v26 = vsel %vm1621_vm4, %v3052_v17, %v3059_v46  ;;  %v3048_v59 = vsel %vm1621_vm4, %v3032_v44, %v3047_v8 }
 0x76a   : > { %v3596_v50 = vpack.c.bf16 %v3004_v31, %v3004_v31  ;;  %v3601_v0 = vpack.c.bf16 %v3060_v26, %v3060_v26  ;;  %v3729_v36 = vsel %vm3613_vm9, %v3600_v7, 0  ;;  %v3056_v58 = vperm.slane %v3048_v59, %v8931_v22 }
 0x76b   : > { %v8333_v2 = vpop.eup %8332  ;;  %v3058_v48 = vsel %vm1621_vm4, %v3057_v63, %v3040_v18  ;;  %v3036_v25 = vsel %vm1621_vm4, %v10131_v40, %v3035_v12  ;;  %v3521_v40 = vpop.xlane.xlu2 %3520 }
 0x76c   : > { %v3567_v1 = vmul.f32 %v8333_v2, %v10008_v11  ;;  %v3653_v5 = vsel %vm3613_vm9, %v3596_v50, 0  ;;  %v3597_v49 = vpack.c.bf16 %v3058_v48, %v3058_v48  ;;  %v3506_v43 = vpop.xlane.xlu0 %3505  ;;  %v3748_v16 = vsel %vm3613_vm9, %v3601_v0, 0 }
 0x76d   : > { %3662 = vmatpush.bf16.msra.mxu0 %v3653_v5  ;;  %8334 = vrcp.f32 %v3506_v43  ;;  %v2990_v11 = vperm.slane %v2982_v24, %v8931_v22  ;;  %v3061_v44 = vrot.slane %v3056_v58, 4  ;;  %v3044_v52 = vperm.slane %v3036_v25, %v8931_v22 }
 0x76e   : > { %v3583_v30 = vpack.c.bf16 %v3567_v1, %v3567_v1  ;;  %v3672_v51 = vsel %vm3613_vm9, %v3597_v49, 0 }
 0x76f   : > { %3681 = vmatpush.bf16.msrb.mxu1 %v3672_v51  ;;  %v3008_v39 = vsel %vm1621_vm4, %v3007_v4, %v2990_v11  ;;  %v3062_v62 = vsel %vm1621_vm4, %v3061_v44, %v3044_v52  ;;  %v3009_v63 = vrot.slane %v2990_v11, 4  ;;  %v3063_v42 = vrot.slane %v3044_v52, 4 }
 0x770   : > { %7128 = vmatmul.msk.bf16.vlgmr.msra.gmra.mxu3 %vm3097_vm8, %v3583_v30  ;;  %v3604_v61 = vpack.c.bf16 %v3008_v39, %v3008_v39  ;;  %v3605_v31 = vpack.c.bf16 %v3062_v62, %v3062_v62 }
 0x771   : > { %3738 = vmatpush.bf16.msrb.mxu0 %v3729_v36  ;;  %3871 = vmatpush.bf16.msra.mxu3 %v3862_v56 }
 0x772   : > { %v3805_v21 = vsel %vm3613_vm9, %v3604_v61, 0  ;;  %v3824_v26 = vsel %vm3613_vm9, %v3605_v31, 0 }
 0x773   : > { %3757 = vmatpush.bf16.msra.mxu1 %v3748_v16  ;;  %v8335_v47 = vpop.eup %8334  ;;  %v3530_v1 = vpop.xlane.xlu2 %3529 }
 0x774   : > { %v3564_v9 = vmul.f32 %v8335_v47, %v10017_v23  ;;  %v3527_v57 = vpop.xlane.xlu0 %3526 }
 0x775   : > { %8336 = vrcp.f32 %v3527_v57 }
 0x776   : > { %v3580_v28 = vpack.c.bf16 %v3564_v9, %v3564_v9 }
 0x777   : > { %v3446_v10 = vpop.xlane.xlu1 %3445 }
 0x778   : > { %v3464_v45 = vsub.f32 %v9945_v6, %v3446_v10  ;;  %7125 = vmatmul.msk.bf16.vlgmr.msra.gmra.mxu0 %vm3097_vm8, %v3580_v28 }
 0x779   : > { %3814 = vmatpush.bf16.msra.mxu0 %v3805_v21 }
 0x77a   : > { %v3494_v29 = vmul.f32 1.442695, %v3464_v45 }
 0x77b   : > { %v8337_v3 = vpop.eup %8336 }
 0x77c   : > { %v3571_v23 = vmul.f32 %v8337_v3, %v10027_v37  ;;  %8338 = vpow2.f32 %v3494_v29  ;;  %v3536_v38 = vpop.xlane.xlu0 %3535 }
 0x77d   : > { %8340 = vrcp.f32 %v3536_v38 }
 0x77e   : > { %v3587_v20 = vpack.c.bf16 %v3571_v23, %v3571_v23 }
 0x77f   : > { %v3509_v6 = vpop.xlane.xlu1 %3508 }
 0x780   : > { %8342 = vrcp.f32 %v3509_v6  ;;  %7132 = vmatmul.msk.bf16.vlgmr.msrb.gmra.mxu3 %vm3097_vm8, %v3587_v20 }
 0x782   : > { %v10182_v18 = vpop.eup %8338 }
 0x783   : > { %v8341_v41 = vpop.eup %8340  ;;  %v3540_v37 = vsel %vm3097_vm8, %v10182_v18, 0.0 }
 0x784   : > { %v3574_v15 = vmul.f32 %v8341_v41, %v10035_v19  ;;  %3541 = vadd.xlane.f32.xlu1 %v3540_v37  ;;  %v3010_v19 = vsel %vm1621_vm4, %v10153_v54, %v3009_v63  ;;  %v3064_v54 = vsel %vm1621_vm4, %v3056_v58, %v3063_v42  ;;  %v3533_v16 = vpop.xlane.xlu0 %3532 }
 0x785   : > { %v3608_v0 = vpack.c.bf16 %v3010_v19, %v3010_v19  ;;  %v3609_v30 = vpack.c.bf16 %v3064_v54, %v3064_v54 }
 0x786   : > { %v8343_v17 = vpop.eup %8342  ;;  %v3590_v55 = vpack.c.bf16 %v3574_v15, %v3574_v15 }
 0x787   : > { %v3565_v46 = vmul.f32 %v8343_v17, %v10040_v27  ;;  %v3518_v33 = vpop.xlane.xlu1 %3517  ;;  %v10195_v50 = vpop.f32.mrf.mxu3  ;;  %v3881_v43 = vsel %vm3613_vm9, %v3608_v0, 0  ;;  %v3900_v39 = vsel %vm3613_vm9, %v3609_v30, 0 }
 0x788   : > { %8344 = vrcp.f32 %v3518_v33  ;;  %7135 = vmatmul.msk.bf16.vlgmr.msra.gmra.mxu2 %vm3097_vm8, %v3590_v55 }
 0x789   : > { %v3581_v7 = vpack.c.bf16 %v3565_v46, %v3565_v46  ;;  %8346 = vrcp.f32 %v3521_v40 }
 0x78b   : > { %7126 = vmatmul.msk.bf16.vlgmr.msrb.gmra.mxu1 %vm3097_vm8, %v3581_v7 }
 0x78c   : > { %3833 = vmatpush.bf16.msrb.mxu1 %v3824_v26 }
 0x78e   : > { %v8345_v2 = vpop.eup %8344 }
 0x78f   : > { %v3568_v27 = vmul.f32 %v8345_v2, %v10051_v34  ;;  %v3539_v48 = vpop.xlane.xlu1 %3538  ;;  %v8347_v49 = vpop.eup %8346 }
 0x790   : > { %8348 = vrcp.f32 %v3539_v48  ;;  %v3647_v24 = vpop.f32.mrf.mxu3  ;;  %v3569_v36 = vmul.f32 %v8347_v49, %v10011_v13 }
 0x791   : > { %v3584_v5 = vpack.c.bf16 %v3568_v27, %v3568_v27  ;;  %8350 = vrcp.f32 %v3530_v1 }
 0x792   : > { %v3585_v51 = vpack.c.bf16 %v3569_v36, %v3569_v36  ;;  %8352 = vrcp.f32 %v3533_v16 }
 0x793   : > { %7129 = vmatmul.msk.bf16.vlgmr.msrb.gmra.mxu0 %vm3097_vm8, %v3584_v5 }
 0x794   : > { %3890 = vmatpush.bf16.msrb.mxu0 %v3881_v43 }
 0x796   : > { %v8349_v4 = vpop.eup %8348 }
 0x797   : > { %v3575_v34 = vmul.f32 %v8349_v4, %v10057_v60  ;;  %v8351_v56 = vpop.eup %8350 }
 0x798   : > { %v3572_v47 = vmul.f32 %v8351_v56, %v10019_v35  ;;  %v8353_v13 = vpop.eup %8352 }
 0x799   : > { %v3591_v11 = vpack.c.bf16 %v3575_v34, %v3575_v34  ;;  %v3573_v60 = vmul.f32 %v8353_v13, %v10049_v32 }
 0x79a   : > { %v3588_v9 = vpack.c.bf16 %v3572_v47, %v3572_v47 }
 0x79b   : > { %7130 = vmatmul.msk.bf16.vlgmr.msra.gmra.mxu1 %vm3097_vm8, %v3585_v51  ;;  %7136 = vmatmul.msk.bf16.vlgmr.msra.gmra.mxu3 %vm3097_vm8, %v3591_v11  ;;  %v3589_v57 = vpack.c.bf16 %v3573_v60, %v3573_v60  ;;  %v3973_v11 = vrot.slane %v10195_v50, 4 }
 0x79c   : > { %3909 = vmatpush.bf16.msra.mxu1 %v3900_v39 }
 0x7a3   : > { %7133 = vmatmul.msk.bf16.vlgmr.msra.gmra.mxu0 %vm3097_vm8, %v3588_v9 }
 0x7ab   : > { %7134 = vmatmul.msk.bf16.vlgmr.msrb.gmra.mxu1 %vm3097_vm8, %v3589_v57 }
 0x7c3   : > { %v3626_v61 = vpop.f32.mrf.mxu2 }
 0x7c4   : > { %v3545_v8 = vpop.xlane.xlu2 %3544  ;;  %v3917_v44 = vrot.slane %v3626_v61, 4 }
 0x7c5   : > { %8354 = vrcp.f32 %v3545_v8 }
 0x7cb   : > { %v8355_v28 = vpop.eup %8354  ;;  %v3628_v10 = vpop.f32.mrf.mxu2 }
 0x7cc   : > { %v3577_v45 = vmul.f32 %v8355_v28, %v10081_v53 }
 0x7ce   : > { %v3593_v21 = vpack.c.bf16 %v3577_v45, %v3577_v45 }
 0x7d0   : > { %7138 = vmatmul.msk.bf16.vlgmr.msra.gmra.mxu1 %vm3097_vm8, %v3593_v21 }
 0x7d3   : > { %v3702_v35 = vpop.f32.mrf.mxu2 }
 0x7d4   : > { %v3929_v17 = vrot.slane %v3702_v35, 4 }
 0x7db   : > { %v3704_v59 = vpop.f32.mrf.mxu2 }
 0x7e3   : > { %v3778_v29 = vpop.f32.mrf.mxu2 }
 0x7e4   : > { %v3915_v52 = vrot.slane %v3778_v29, 4  ;;  %v3918_v41 = vsel %vm1621_vm4, %v3778_v29, %v3917_v44 }
 0x7e5   : > { %v3926_v62 = vperm.slane %v3918_v41, %v8926_v14 }
 0x7e6   : > { %v3916_v37 = vsel %vm1621_vm4, %v3915_v52, %v3626_v61 }
 0x7e7   : > { %v3922_v55 = vperm.slane %v3916_v37, %v8926_v14  ;;  %v3953_v31 = vrot.slane %v3926_v62, 4 }
 0x7e9   : > { %v3941_v26 = vrot.slane %v3922_v55, 4 }
 0x7eb   : > { %v3780_v3 = vpop.f32.mrf.mxu2 }
 0x7f3   : > { %v10212_v12 = vpop.f32.mrf.mxu3 }
 0x7f5   : > { %v10214_v32 = vpop.f32.mrf.mxu0 }
 0x7f7   : > { %v3542_v23 = vpop.xlane.xlu1 %3541 }
 0x7f8   : > { %8356 = vrcp.f32 %v3542_v23 }
 0x7fb   : > { %v3723_v38 = vpop.f32.mrf.mxu3 }
 0x7fd   : > { %v3666_v58 = vpop.f32.mrf.mxu0 }
 0x7fe   : > { %v8357_v20 = vpop.eup %8356 }
 0x7ff   : > { %v3576_v6 = vmul.f32 %v8357_v20, %v10182_v18 }
 0x801   : > { %v3592_v25 = vpack.c.bf16 %v3576_v6, %v3576_v6 }
 0x803   : > { %v3797_v53 = vpop.f32.mrf.mxu3  ;;  %7137 = vmatmul.msk.bf16.vlgmr.msrb.gmra.mxu0 %vm3097_vm8, %v3592_v25 }
 0x804   : > { %v3971_v56 = vrot.slane %v3797_v53, 4  ;;  %v3974_v45 = vsel %vm1621_vm4, %v3797_v53, %v3973_v11 }
 0x805   : > { %v3982_v25 = vperm.slane %v3974_v45, %v8926_v14 }
 0x806   : > { %v3972_v6 = vsel %vm1621_vm4, %v3971_v56, %v10195_v50 }
 0x808   : > { %v10220_v15 = vpop.f32.mrf.mxu1 }
 0x80b   : > { %v3799_v40 = vpop.f32.mrf.mxu3  ;;  %v3854_v46 = vpop.f32.mrf.mxu2 }
 0x80c   : > { %v3927_v18 = vrot.slane %v3854_v46, 4  ;;  %v3930_v33 = vsel %vm1621_vm4, %v3854_v46, %v3929_v17  ;;  %v3978_v40 = vperm.slane %v3972_v6, %v8926_v14 }
 0x80d   : > { %v3938_v63 = vperm.slane %v3930_v33, %v8926_v14 }
 0x80e   : > { %v3928_v7 = vsel %vm1621_vm4, %v3927_v18, %v3702_v35 }
 0x80f   : > { %v3934_v19 = vperm.slane %v3928_v7, %v8926_v14  ;;  %v3951_v2 = vrot.slane %v3938_v63, 4  ;;  %v3954_v27 = vsel %vm1621_vm4, %v3938_v63, %v3953_v31 }
 0x810   : > { %v3962_v48 = vperm.slane %v3954_v27, %v8931_v22  ;;  %v3685_v0 = vpop.f32.mrf.mxu1  ;;  %v10230_v42 = vpop.f32.mrf.mxu0 }
 0x811   : > { %v3939_v1 = vrot.slane %v3934_v19, 4  ;;  %v3942_v5 = vsel %vm1621_vm4, %v3934_v19, %v3941_v26  ;;  %v3952_v49 = vsel %vm1621_vm4, %v3951_v2, %v3926_v62  ;;  %v3985_v62 = vrot.slane %v10212_v12, 4 }
 0x812   : > { %v3950_v43 = vperm.slane %v3942_v5, %v8931_v22  ;;  %v3958_v54 = vperm.slane %v3952_v49, %v8931_v22  ;;  %v3969_v24 = vrot.slane %v3962_v48, 4  ;;  %v4009_v26 = vrot.slane %v3982_v25, 4 }
 0x813   : > { %v3940_v36 = vsel %vm1621_vm4, %v3939_v1, %v3922_v55  ;;  %v3856_v4 = vpop.f32.mrf.mxu2  ;;  %v4029_v55 = vrot.slane %v10214_v32, 4 }
 0x814   : > { %v3946_v34 = vperm.slane %v3940_v36, %v8931_v22  ;;  %v3965_v30 = vrot.slane %v3950_v43, 4  ;;  %v3967_v51 = vrot.slane %v3958_v54, 4  ;;  %v3970_v16 = vsel %vm1621_vm4, 0.0, %v3969_v24 }
 0x815   : > { %v4150_v39 = vsel %vm1621_vm4, %v3969_v24, %v3958_v54  ;;  %v4155_v47 = vrot.slane %v3970_v16, 4  ;;  %v3997_v43 = vrot.slane %v3978_v40, 4 }
 0x816   : > { %v3963_v9 = vrot.slane %v3946_v34, 4  ;;  %v3966_v13 = vsel %vm1621_vm4, 0.0, %v3965_v30  ;;  %v3968_v60 = vsel %vm1621_vm4, 0.0, %v3967_v51  ;;  %v4139_v57 = vsel %vm1621_vm4, %v3965_v30, %v3946_v34 }
 0x817   : > { %v4144_v61 = vrot.slane %v3966_v13, 4  ;;  %v4154_v8 = vperm.slane %v4150_v39, %v8926_v14  ;;  %v4156_v28 = vsel %vm1621_vm4, %v4155_v47, %v3968_v60  ;;  %v4143_v10 = vperm.slane %v4139_v57, %v8926_v14 }
 0x818   : > { %v4160_v21 = vperm.slane %v4156_v28, %v8926_v14  ;;  %v3742_v35 = vpop.f32.mrf.mxu0  ;;  %v10249_v59 = vpop.f32.mrf.mxu1  ;;  %v3964_v29 = vsel %vm1621_vm4, 0.0, %v3963_v9  ;;  %v4085_v28 = vrot.slane %v10220_v15, 4 }
 0x819   : > { %v4175_v3 = vrot.slane %v4154_v8, 4  ;;  %v4145_v23 = vsel %vm1621_vm4, %v4144_v61, %v3964_v29  ;;  %v4163_v38 = vrot.slane %v4143_v10, 4 }
 0x81a   : > { %v4149_v58 = vperm.slane %v4145_v23, %v8926_v14  ;;  %v4173_v20 = vrot.slane %v4160_v21, 4 }
 0x81b   : > { %v4176_v53 = vsel %vm1621_vm4, %v4160_v21, %v4175_v3 }
 0x81c   : > { %v4164_v44 = vsel %vm1621_vm4, %v4149_v58, %v4163_v38  ;;  %v4184_v52 = vperm.slane %v4176_v53, %v8931_v22  ;;  %v4161_v41 = vrot.slane %v4149_v58, 4  ;;  %v4174_v37 = vsel %vm1621_vm4, %v4173_v20, %v4154_v8 }
 0x81d   : > { %v4172_v17 = vperm.slane %v4164_v44, %v8931_v22  ;;  %v4180_v11 = vperm.slane %v4174_v37, %v8931_v22 }
 0x81e   : > { %v3873_v50 = vpop.f32.mrf.mxu3  ;;  %v4189_v46 = vrot.slane %v4184_v52, 4  ;;  %v4162_v18 = vsel %vm1621_vm4, %v4161_v41, %v4143_v10 }
 0x81f   : > { %v3983_v33 = vrot.slane %v3873_v50, 4  ;;  %v3986_v31 = vsel %vm1621_vm4, %v3873_v50, %v3985_v62  ;;  %v4191_v63 = vrot.slane %v4172_v17, 4  ;;  %v10268_v7 = vperm.slane %v4162_v18, %v8931_v22 }
 0x820   : > { %v3994_v19 = vperm.slane %v3986_v31, %v8926_v14  ;;  %v3761_v2 = vpop.f32.mrf.mxu1  ;;  %v3816_v27 = vpop.f32.mrf.mxu0  ;;  %v10272_v48 = vsel %vm1621_vm4, %v4189_v46, %v4172_v17 }
 0x821   : > { %v3984_v0 = vsel %vm1621_vm4, %v3983_v33, %v10212_v12  ;;  %v4027_v1 = vrot.slane %v3816_v27, 4  ;;  %v10277_v5 = vsel %vm1621_vm4, %v3816_v27, %v4029_v55  ;;  %v10280_v49 = vsel %vm1621_vm4, %v4184_v52, %v4191_v63 }
 0x822   : > { %v3990_v54 = vperm.slane %v3984_v0, %v8926_v14  ;;  %v4007_v24 = vrot.slane %v3994_v19, 4  ;;  %v4010_v36 = vsel %vm1621_vm4, %v3994_v19, %v4009_v26  ;;  %v4187_v12 = vrot.slane %v10268_v7, 4 }
 0x823   : > { %v4018_v4 = vperm.slane %v4010_v36, %v8931_v22  ;;  %v10287_v34 = vsel %vm1621_vm4, %v4027_v1, %v10214_v32  ;;  %v4185_v19 = vrot.slane %v4180_v11, 4 }
 0x824   : > { %v3995_v30 = vrot.slane %v3990_v54, 4  ;;  %v3998_v51 = vsel %vm1621_vm4, %v3990_v54, %v3997_v43  ;;  %v4008_v16 = vsel %vm1621_vm4, %v4007_v24, %v3982_v25  ;;  %v4188_v32 = vsel %vm1621_vm4, %v4180_v11, %v4187_v12 }
 0x825   : > { %v4006_v56 = vperm.slane %v3998_v51, %v8931_v22  ;;  %v4014_v39 = vperm.slane %v4008_v16, %v8931_v22  ;;  %v4025_v47 = vrot.slane %v4018_v4, 4  ;;  %v10327_v12 = vsel %vm1621_vm4, %v4185_v19, %v10268_v7 }
 0x826   : > { %v3996_v9 = vsel %vm1621_vm4, %v3995_v30, %v3978_v40  ;;  %v3875_v13 = vpop.f32.mrf.mxu3 }
 0x827   : > { %v4002_v60 = vperm.slane %v3996_v9, %v8931_v22  ;;  %v4021_v57 = vrot.slane %v4006_v56, 4  ;;  %v4023_v61 = vrot.slane %v4014_v39, 4  ;;  %v4026_v8 = vsel %vm1621_vm4, 0.0, %v4025_v47 }
 0x828   : > { %v4204_v10 = vsel %vm1621_vm4, %v4025_v47, %v4014_v39  ;;  %v4209_v45 = vrot.slane %v4026_v8, 4  ;;  %v3818_v21 = vpop.f32.mrf.mxu0  ;;  %v3835_v35 = vpop.f32.mrf.mxu1 }
 0x829   : > { %v4019_v29 = vrot.slane %v4002_v60, 4  ;;  %v4022_v3 = vsel %vm1621_vm4, 0.0, %v4021_v57  ;;  %v4024_v23 = vsel %vm1621_vm4, 0.0, %v4023_v61  ;;  %v4193_v38 = vsel %vm1621_vm4, %v4021_v57, %v4002_v60 }
 0x82a   : > { %v4198_v58 = vrot.slane %v4022_v3, 4  ;;  %v4208_v20 = vperm.slane %v4204_v10, %v8926_v14  ;;  %v4210_v6 = vsel %vm1621_vm4, %v4209_v45, %v4024_v23  ;;  %v4083_v25 = vrot.slane %v3835_v35, 4 }
 0x82b   : > { %v4214_v53 = vperm.slane %v4210_v6, %v8926_v14  ;;  %v4086_v44 = vsel %vm1621_vm4, %v3835_v35, %v4085_v28  ;;  %v4020_v52 = vsel %vm1621_vm4, 0.0, %v4019_v29  ;;  %v4197_v41 = vperm.slane %v4193_v38, %v8926_v14 }
 0x82c   : > { %v4229_v37 = vrot.slane %v4208_v20, 4  ;;  %v4084_v62 = vsel %vm1621_vm4, %v4083_v25, %v10220_v15  ;;  %v4199_v17 = vsel %vm1621_vm4, %v4198_v58, %v4020_v52  ;;  %v4094_v7 = vperm.slane %v4086_v44, %v8926_v14 }
 0x82d   : > { %v4203_v55 = vperm.slane %v4199_v17, %v8926_v14  ;;  %v4217_v40 = vrot.slane %v4197_v41, 4  ;;  %v4227_v50 = vrot.slane %v4214_v53, 4  ;;  %v4090_v56 = vperm.slane %v4084_v62, %v8926_v14 }
 0x82e   : > { %v4230_v46 = vsel %vm1621_vm4, %v4214_v53, %v4229_v37  ;;  %v4121_v13 = vrot.slane %v4094_v7, 4 }
 0x82f   : > { %v4218_v18 = vsel %vm1621_vm4, %v4203_v55, %v4217_v40  ;;  %v4238_v33 = vperm.slane %v4230_v46, %v8931_v22  ;;  %v4215_v31 = vrot.slane %v4203_v55, 4  ;;  %v4228_v2 = vsel %vm1621_vm4, %v4227_v50, %v4208_v20 }
 0x830   : > { %v3837_v63 = vpop.f32.mrf.mxu1  ;;  %v4226_v26 = vperm.slane %v4218_v18, %v8931_v22  ;;  %v4234_v54 = vperm.slane %v4228_v2, %v8931_v22  ;;  %v4109_v57 = vrot.slane %v4090_v56, 4 }
 0x831   : > { %v4243_v15 = vrot.slane %v4238_v33, 4  ;;  %v4216_v27 = vsel %vm1621_vm4, %v4215_v31, %v4197_v41 }
 0x832   : > { %v4245_v0 = vrot.slane %v4226_v26, 4  ;;  %v4222_v1 = vperm.slane %v4216_v27, %v8931_v22 }
 0x833   : > { %v4244_v43 = vsel %vm1621_vm4, %v4243_v15, %v4226_v26 }
 0x834   : > { %v8262_v24 = vpack.i.bf16 %v4244_v43, %v10272_v48  ;;  %v4246_v36 = vsel %vm1621_vm4, %v4238_v33, %v4245_v0  ;;  %v4241_v4 = vrot.slane %v4222_v1, 4  ;;  %v4239_v48 = vrot.slane %v4234_v54, 4 }
 0x835   : > { %v8267_v30 = vpack.i.bf16 %v4246_v36, %v10280_v49  ;;  %v4097_v49 = vrot.slane %v10249_v59, 4 }
 0x836   : > { %8263 = vrot.lane.b32.xlu1 %v8262_v24, %s8442_s8  ;;  %v4242_v51 = vsel %vm1621_vm4, %v4234_v54, %v4241_v4  ;;  %v10335_v11 = vsel %vm1621_vm4, %v4239_v48, %v4222_v1 }
 0x837   : > { %8268 = vrot.lane.b32.xlu2 %v8267_v30, %s8443_s10  ;;  %v8257_v16 = vpack.i.bf16 %v4242_v51, %v4188_v32 }
 0x839   : > { %8258 = vrot.lane.b32.xlu0 %v8257_v16, %s8444_s24 }
 0x84d   : > { %v3911_v39 = vpop.f32.mrf.mxu1 }
 0x84e   : > { %v4095_v47 = vrot.slane %v3911_v39, 4  ;;  %v4098_v9 = vsel %vm1621_vm4, %v3911_v39, %v4097_v49  ;;  %v4038_v39 = vperm.slane %v10277_v5, %v8926_v14 }
 0x84f   : > { %v4106_v32 = vperm.slane %v4098_v9, %v8926_v14  ;;  %v4034_v9 = vperm.slane %v10287_v34, %v8926_v14 }
 0x850   : > { %v4096_v60 = vsel %vm1621_vm4, %v4095_v47, %v10249_v59  ;;  %v4041_v47 = vrot.slane %v10230_v42, 4 }
 0x851   : > { %v4102_v61 = vperm.slane %v4096_v60, %v8926_v14  ;;  %v4119_v8 = vrot.slane %v4106_v32, 4  ;;  %v4122_v28 = vsel %vm1621_vm4, %v4106_v32, %v4121_v13 }
 0x852   : > { %v4130_v10 = vperm.slane %v4122_v28, %v8931_v22  ;;  %v4053_v28 = vrot.slane %v4034_v9, 4 }
 0x853   : > { %v4107_v45 = vrot.slane %v4102_v61, 4  ;;  %v4110_v21 = vsel %vm1621_vm4, %v4102_v61, %v4109_v57  ;;  %v4120_v35 = vsel %vm1621_vm4, %v4119_v8, %v4094_v7  ;;  %v4065_v57 = vrot.slane %v4038_v39, 4 }
 0x854   : > { %v4118_v29 = vperm.slane %v4110_v21, %v8931_v22  ;;  %v4126_v3 = vperm.slane %v4120_v35, %v8931_v22  ;;  %v4137_v23 = vrot.slane %v4130_v10, 4 }
 0x855   : > { %v4108_v59 = vsel %vm1621_vm4, %v4107_v45, %v4090_v56  ;;  %v3913_v38 = vpop.f32.mrf.mxu1 }
 0x856   : > { %v4114_v58 = vperm.slane %v4108_v59, %v8931_v22  ;;  %v4133_v20 = vrot.slane %v4118_v29, 4  ;;  %v4135_v6 = vrot.slane %v4126_v3, 4  ;;  %v4138_v25 = vsel %vm1621_vm4, 0.0, %v4137_v23 }
 0x857   : > { %v4312_v53 = vsel %vm1621_vm4, %v4137_v23, %v4126_v3  ;;  %v4317_v44 = vrot.slane %v4138_v25, 4 }
 0x858   : > { %v4136_v52 = vsel %vm1621_vm4, 0.0, %v4135_v6  ;;  %v4301_v41 = vsel %vm1621_vm4, %v4133_v20, %v4114_v58  ;;  %v4134_v62 = vsel %vm1621_vm4, 0.0, %v4133_v20  ;;  %v4316_v17 = vperm.slane %v4312_v53, %v8926_v14 }
 0x859   : > { %v4318_v37 = vsel %vm1621_vm4, %v4317_v44, %v4136_v52  ;;  %v4131_v55 = vrot.slane %v4114_v58, 4  ;;  %v4306_v40 = vrot.slane %v4134_v62, 4  ;;  %v4305_v18 = vperm.slane %v4301_v41, %v8926_v14 }
 0x85a   : > { %v4322_v50 = vperm.slane %v4318_v37, %v8926_v14  ;;  %v4337_v46 = vrot.slane %v4316_v17, 4 }
 0x85b   : > { %v4132_v33 = vsel %vm1621_vm4, 0.0, %v4131_v55  ;;  %v4325_v63 = vrot.slane %v4305_v18, 4 }
 0x85c   : > { %v4307_v31 = vsel %vm1621_vm4, %v4306_v40, %v4132_v33  ;;  %v4338_v19 = vsel %vm1621_vm4, %v4322_v50, %v4337_v46  ;;  %v4335_v2 = vrot.slane %v4322_v50, 4 }
 0x85d   : > { %v4311_v26 = vperm.slane %v4307_v31, %v8926_v14  ;;  %v4346_v15 = vperm.slane %v4338_v19, %v8931_v22 }
 0x85e   : > { %v4336_v1 = vsel %vm1621_vm4, %v4335_v2, %v4316_v17 }
 0x85f   : > { %v4326_v27 = vsel %vm1621_vm4, %v4311_v26, %v4325_v63  ;;  %v4323_v0 = vrot.slane %v4311_v26, 4  ;;  %v4351_v54 = vrot.slane %v4346_v15, 4  ;;  %v4342_v24 = vperm.slane %v4336_v1, %v8931_v22  ;;  %v7852_v1 = vld [vmem:[%s8627_s5 + $0x8] sm:$0xff] }
 0x860   : > { %v4334_v43 = vperm.slane %v4326_v27, %v8931_v22  ;;  %4451 = vmatpush.bf16.msrb.mxu2 %v7852_v1 }
 0x861   : > { %v4324_v36 = vsel %vm1621_vm4, %v4323_v0, %v4305_v18  ;;  %v4347_v51 = vrot.slane %v4342_v24, 4 }
 0x862   : > { %v10373_v4 = vsel %vm1621_vm4, %v4351_v54, %v4334_v43  ;;  %v4330_v30 = vperm.slane %v4324_v36, %v8931_v22  ;;  %v4353_v16 = vrot.slane %v4334_v43, 4 }
 0x864   : > { %v4349_v48 = vrot.slane %v4330_v30, 4  ;;  %v10377_v7 = vsel %vm1621_vm4, %v4346_v15, %v4353_v16  ;;  %v10380_v49 = vsel %vm1621_vm4, %v4347_v51, %v4330_v30  ;;  %v7851_v30 = vld [vmem:[%s8627_s5] sm:$0xff] }
 0x865   : > { %4452 = vmatpush.bf16.msrb.mxu2 %v7851_v30 }
 0x866   : > { %v10383_v56 = vsel %vm1621_vm4, %v4342_v24, %v4349_v48 }
 0x880   : > { %v3892_v13 = vpop.f32.mrf.mxu0 }
 0x881   : > { %v4039_v32 = vrot.slane %v3892_v13, 4  ;;  %v4042_v60 = vsel %vm1621_vm4, %v3892_v13, %v4041_v47 }
 0x882   : > { %v4050_v61 = vperm.slane %v4042_v60, %v8926_v14 }
 0x883   : > { %v4040_v8 = vsel %vm1621_vm4, %v4039_v32, %v10230_v42 }
 0x884   : > { %v4046_v10 = vperm.slane %v4040_v8, %v8926_v14  ;;  %v4063_v45 = vrot.slane %v4050_v61, 4  ;;  %v4066_v5 = vsel %vm1621_vm4, %v4050_v61, %v4065_v57 }
 0x885   : > { %v4074_v21 = vperm.slane %v4066_v5, %v8931_v22 }
 0x886   : > { %v4051_v35 = vrot.slane %v4046_v10, 4  ;;  %v4054_v34 = vsel %vm1621_vm4, %v4046_v10, %v4053_v28  ;;  %v4064_v29 = vsel %vm1621_vm4, %v4063_v45, %v4038_v39 }
 0x887   : > { %v4062_v3 = vperm.slane %v4054_v34, %v8931_v22  ;;  %v4070_v23 = vperm.slane %v4064_v29, %v8931_v22  ;;  %v4081_v59 = vrot.slane %v4074_v21, 4 }
 0x888   : > { %v4052_v42 = vsel %vm1621_vm4, %v4051_v35, %v4034_v9  ;;  %v3894_v38 = vpop.f32.mrf.mxu0 }
 0x889   : > { %v4058_v58 = vperm.slane %v4052_v42, %v8931_v22  ;;  %v4077_v20 = vrot.slane %v4062_v3, 4  ;;  %v4079_v6 = vrot.slane %v4070_v23, 4  ;;  %v4082_v25 = vsel %vm1621_vm4, 0.0, %v4081_v59 }
 0x88a   : > { %v4258_v53 = vsel %vm1621_vm4, %v4081_v59, %v4070_v23  ;;  %v4263_v44 = vrot.slane %v4082_v25, 4 }
 0x88b   : > { %v4075_v52 = vrot.slane %v4058_v58, 4  ;;  %v4078_v41 = vsel %vm1621_vm4, 0.0, %v4077_v20  ;;  %v4080_v37 = vsel %vm1621_vm4, 0.0, %v4079_v6  ;;  %v4247_v62 = vsel %vm1621_vm4, %v4077_v20, %v4058_v58 }
 0x88c   : > { %v4252_v17 = vrot.slane %v4078_v41, 4  ;;  %v4262_v55 = vperm.slane %v4258_v53, %v8926_v14  ;;  %v4264_v40 = vsel %vm1621_vm4, %v4263_v44, %v4080_v37  ;;  %v4251_v50 = vperm.slane %v4247_v62, %v8926_v14 }
 0x88d   : > { %v4268_v46 = vperm.slane %v4264_v40, %v8926_v14  ;;  %v4076_v18 = vsel %vm1621_vm4, 0.0, %v4075_v52 }
 0x88e   : > { %v4283_v33 = vrot.slane %v4262_v55, 4  ;;  %v4253_v31 = vsel %vm1621_vm4, %v4252_v17, %v4076_v18  ;;  %v4271_v63 = vrot.slane %v4251_v50, 4 }
 0x88f   : > { %v4257_v26 = vperm.slane %v4253_v31, %v8926_v14  ;;  %v4281_v19 = vrot.slane %v4268_v46, 4 }
 0x890   : > { %v4284_v2 = vsel %vm1621_vm4, %v4268_v46, %v4283_v33  ;;  %v8376_v46 = vld [vmem:[#allocation2] sm:$0xff] }
 0x891   : > { %v4272_v15 = vsel %vm1621_vm4, %v4257_v26, %v4271_v63  ;;  %v4292_v27 = vperm.slane %v4284_v2, %v8931_v22  ;;  %v4269_v0 = vrot.slane %v4257_v26, 4  ;;  %v4282_v36 = vsel %vm1621_vm4, %v4281_v19, %v4262_v55  ;;  %v8269_v61 = vpop.permute.xlu2 %8268  ;;  %v8377_v26 = vld [vmem:[#allocation2 + $0x8] sm:$0xff] }
 0x892   : > { %v4280_v43 = vperm.slane %v4272_v15, %v8931_v22  ;;  %v4288_v39 = vperm.slane %v4282_v36, %v8931_v22  ;;  %v8271_v5 = vunpack.i.h.bf16 %v8269_v61  ;;  %v8270_v21 = vunpack.i.l.bf16 %v8269_v61 }
 0x893   : > { %v4297_v54 = vrot.slane %v4292_v27, 4  ;;  %v4270_v24 = vsel %vm1621_vm4, %v4269_v0, %v4251_v50  ;;  %v8445_v15 = vmov 32.0  }
 0x894   : > { %v4276_v14 = vperm.slane %v4270_v24, %v8931_v22  ;;  %v4299_v51 = vrot.slane %v4280_v43, 4  ;;  %v4293_v57 = vrot.slane %v4288_v39, 4  ;;  %8358 = vrcp.f32 %v8445_v15  ;;  %v7161_v15 = vld [vmem:[%s8645_s6 + $0x48] sm:$0xf0] }
 0x895   : > { %v4298_v16 = vsel %vm1621_vm4, %v4297_v54, %v4280_v43  ;;  %v8378_v54 = vld [vmem:[#allocation2 + $0x10] sm:$0xff] }
 0x896   : > { %v8277_v48 = vpack.i.bf16 %v10373_v4, %v4298_v16  ;;  %v4295_v47 = vrot.slane %v4276_v14, 4  ;;  %v4300_v9 = vsel %vm1621_vm4, %v4292_v27, %v4299_v51  ;;  %v4294_v4 = vsel %vm1621_vm4, %v4293_v57, %v4276_v14 }
 0x897   : > { %v8282_v13 = vpack.i.bf16 %v10377_v7, %v4300_v9 }
 0x898   : > { %8278 = vrot.lane.b32.xlu1 %v8277_v48, %s8442_s8  ;;  %v4296_v32 = vsel %vm1621_vm4, %v4288_v39, %v4295_v47  ;;  %v8379_v48 = vld [vmem:[#allocation2 + $0x18] sm:$0xff] }
 0x899   : > { %v8272_v60 = vpack.i.bf16 %v10383_v56, %v4296_v32 }
 0x89a   : > { %v8359_v27 = vpop.eup %8358 }
 0x89b   : > { %8273 = vrot.lane.b32.xlu0 %v8272_v60, %s8444_s24  ;;  %v4483_v0 = vmul.f32 32.0, %v8359_v27  ;;  %vm4487_vm12 = vweird.f32 %v8359_v27 }
 0x89d   : > { %v4484_v36 = vsub.f32 1.0, %v4483_v0 }
 0x89f   : > { %v4485_v14 = vmul.f32 %v8359_v27, %v4484_v36 }
 0x8a1   : > { %v4486_v47 = vadd.f32 %v8359_v27, %v4485_v14 }
 0x8a3   : > { %8283 = vrot.lane.b32.xlu0 %v8282_v13, %s8443_s10  ;;  %v10461_v13 = vsel %vm4487_vm12, %v8359_v27, %v4486_v47 }
 0x8a8   : > { %v8264_v22 = vpop.permute.xlu1 %8263 }
 0x8a9   : > { %v8266_v10 = vunpack.i.h.bf16 %v8264_v22  ;;  %v8265_v45 = vunpack.i.l.bf16 %v8264_v22 }
 0x8ab   : > { %v8259_v8 = vpop.permute.xlu0 %8258 }
 0x8ac   : > { %v8261_v28 = vunpack.i.h.bf16 %v8259_v8  ;;  %v8260_v7 = vunpack.i.l.bf16 %v8259_v8 }
 0x8ae   : > { %v4404_v56 = vsel %vm3097_vm8, %v10335_v11, %v8261_v28  ;;  %v4403_v35 = vsel %vm3097_vm8, %v10327_v12, %v8260_v7 }
 0x8af   : > { %v4409_v34 = vsel %vm4407_vm10, %v4404_v56, %v8266_v10  ;;  %v4408_v29 = vsel %vm4407_vm10, %v4403_v35, %v8265_v45 }
 0x8b0   : > { %v4413_v3 = vsel %vm4412_vm11, %v4408_v29, %v8270_v21  ;;  %v4414_v23 = vsel %vm4412_vm11, %v4409_v34, %v8271_v5 }
 0x8b1   : > { %v4417_v59 = vpack.c.bf16 %v4414_v23, %v4413_v3 }
 0x8b3   : > { %7147 = vmatmul.msk.bf16.vlgmr.msrb.gmra.mxu2 %vm1550_vm7, %v4417_v59 }
 0x90a   : > { %v8279_v20 = vpop.permute.xlu1 %8278 }
 0x90b   : > { %v8281_v6 = vunpack.i.h.bf16 %v8279_v20  ;;  %v8280_v25 = vunpack.i.l.bf16 %v8279_v20  ;;  %v7215_v20 = vld [vmem:[%s8645_s6 + $0x80] sm:$0xf] }
 0x90d   : > { %v8274_v42 = vpop.permute.xlu0 %8273 }
 0x90e   : > { %v8276_v38 = vunpack.i.h.bf16 %v8274_v42  ;;  %v8275_v58 = vunpack.i.l.bf16 %v8274_v42 }
 0x910   : > { %v4405_v11 = vsel %vm3097_vm8, %v4294_v4, %v8275_v58  ;;  %v4406_v12 = vsel %vm3097_vm8, %v10380_v49, %v8276_v38  ;;  %v8288_v49 = vld [vmem:[%s11099_s21] ss:$0 sm:$0xff] }
 0x911   : > { %v4410_v41 = vsel %vm4407_vm10, %v4405_v11, %v8280_v25  ;;  %v4411_v37 = vsel %vm4407_vm10, %v4406_v12, %v8281_v6  ;;  %v7877_v11 = vld [vmem:[%s8645_s6 + $0xbc] sm:$0xf0]  ;;  %v7869_v12 = vld [vmem:[%s8645_s6 + $0x84] sm:$0xf] }
 0x912   : > { %v7216_v6 = vor.u32 %v7877_v11, %v7215_v20  ;;  %v7217_v25 = vld [vmem:[%s8645_s6 + $0xc0] sm:$0xf0] }
 0x914   : > { %4821 = vmatpush.bf16.msrb.mxu3 %v7216_v6  ;;  %v7863_v6 = vld [vmem:[%s8645_s6 + $0x4c] sm:$0xf0] }
 0x915   : > { %v8284_v53 = vpop.permute.xlu0 %8283 }
 0x916   : > { %v8286_v44 = vunpack.i.h.bf16 %v8284_v53  ;;  %v8285_v52 = vunpack.i.l.bf16 %v8284_v53  ;;  %v7223_v53 = vld [vmem:[%s8645_s6 + $0x88] sm:$0xf] }
 0x918   : > { %v4415_v62 = vsel %vm4412_vm11, %v4410_v41, %v8285_v52  ;;  %v4416_v17 = vsel %vm4412_vm11, %v4411_v37, %v8286_v44  ;;  %v7878_v44 = vld [vmem:[%s8645_s6 + $0xc4] sm:$0xf0]  ;;  %v7220_v52 = vor.u32 %v7869_v12, %v7217_v25  ;;  %v7870_v37 = vld [vmem:[%s8645_s6 + $0x8c] sm:$0xf]  ;;  %v7167_v12 = vld [vmem:[%s8645_s6 + $0x10] sm:$0xf] }
 0x919   : > { %v4418_v55 = vpack.c.bf16 %v4416_v17, %v4415_v62  ;;  %v7224_v41 = vor.u32 %v7878_v44, %v7223_v53  ;;  %v7225_v62 = vld [vmem:[%s8645_s6 + $0xc8] sm:$0xf0]  ;;  %v7151_v17 = vld [vmem:[%s8645_s6] sm:$0xf]  ;;  %v7239_v25 = vld [vmem:[%s8645_s6 + $0x98] sm:$0xf]  ;;  %v7168_v44 = vor.u32 %v7863_v6, %v7167_v12 }
 0x91a   : > { %4840 = vmatpush.bf16.msra.mxu0 %v7220_v52  ;;  %v7880_v52 = vld [vmem:[%s8645_s6 + $0xd4] sm:$0xf0] }
 0x91b   : > { %7148 = vmatmul.msk.bf16.gmra.mxu2 %vm1550_vm7, %v4418_v55  ;;  %4859 = vmatpush.bf16.msrb.mxu1 %v7224_v41  ;;  %v7856_v41 = vld [vmem:[%s8645_s6 + $0x1c] sm:$0xf] }
 0x936   : > { %v4454_v40 = vpop.f32.mrf.mxu2 }
 0x937   : > { %v4455_v50 = vadd.f32 %v8288_v49, %v4454_v40  ;;  %v7861_v40 = vld [vmem:[%s8645_s6 + $0x3c] sm:$0xf0] }
 0x939   : > { %v4464_v18 = vadd.f32 %v8376_v46, %v4455_v50  ;;  %v7853_v50 = vld [vmem:[%s8645_s6 + $0x4] sm:$0xf] }
 0x93a   : > { %v7153_v46 = vld [vmem:[%s8645_s6 + $0x40] sm:$0xf0] }
 0x93b   : > { %v4470_v33 = vsel %vm1550_vm7, %v4464_v18, 0.0 }
 0x93c   : > { %4471 = vadd.xlane.f32.xlu2 %v4470_v33  ;;  %v7152_v33 = vor.u32 %v7861_v40, %v7151_v17  ;;  %v7175_v40 = vld [vmem:[%s8645_s6 + $0x18] sm:$0xf] }
 0x93e   : > { %v4456_v31 = vpop.f32.mrf.mxu2  ;;  %4822 = vmatpush.bf16.msrb.mxu3 %v7152_v33  ;;  %v7864_v33 = vld [vmem:[%s8645_s6 + $0x54] sm:$0xf0] }
 0x93f   : > { %v4457_v63 = vadd.f32 %v8288_v49, %v4456_v31  ;;  %v7156_v31 = vor.u32 %v7853_v50, %v7153_v46 }
 0x941   : > { %v4465_v19 = vadd.f32 %v8377_v26, %v4457_v63  ;;  %v7159_v63 = vld [vmem:[%s8645_s6 + $0x8] sm:$0xf]  ;;  %4841 = vmatpush.bf16.msra.mxu0 %v7156_v31 }
 0x942   : > { %v7862_v26 = vld [vmem:[%s8645_s6 + $0x44] sm:$0xf0] }
 0x943   : > { %v4473_v2 = vsel %vm1550_vm7, %v4465_v19, 0.0 }
 0x944   : > { %4474 = vadd.xlane.f32.xlu1 %v4473_v2  ;;  %v7160_v2 = vor.u32 %v7862_v26, %v7159_v63  ;;  %v7176_v63 = vor.u32 %v7864_v33, %v7175_v40  ;;  %v7867_v40 = vld [vmem:[%s8645_s6 + $0x6c] sm:$0xf0]  ;;  %v7860_v33 = vld [vmem:[%s8645_s6 + $0x3c] sm:$0xf] }
 0x946   : > { %4860 = vmatpush.bf16.msrb.mxu1 %v7160_v2 }
 0x99e   : > { %v4459_v1 = vpop.f32.mrf.mxu2 }
 0x99f   : > { %v4460_v43 = vadd.f32 %v8288_v49, %v4459_v1 }
 0x9a1   : > { %v4466_v24 = vadd.f32 %v8378_v54, %v4460_v43 }
 0x9a3   : > { %v4476_v30 = vsel %vm1550_vm7, %v4466_v24, 0.0 }
 0x9a4   : > { %4477 = vadd.xlane.f32.xlu0 %v4476_v30 }
 0x9a6   : > { %v4461_v51 = vpop.f32.mrf.mxu2 }
 0x9a7   : > { %v4462_v16 = vadd.f32 %v8288_v49, %v4461_v51  ;;  %v7228_v49 = vor.u32 %v7870_v37, %v7225_v62  ;;  %v7177_v37 = vld [vmem:[%s8645_s6 + $0x58] sm:$0xf0]  ;;  %v7240_v62 = vor.u32 %v7880_v52, %v7239_v25  ;;  %v7263_v25 = vld [vmem:[%s8645_s6 + $0xb0] sm:$0xf] }
 0x9a8   : > { %v7180_v17 = vor.u32 %v7856_v41, %v7177_v37  ;;  %v7273_v41 = vld [vmem:[%s8645_s6 + $0xf8] sm:$0xf0]  ;;  %v7875_v37 = vld [vmem:[%s8645_s6 + $0xb4] sm:$0xf] }
 0x9a9   : > { %v4467_v39 = vadd.f32 %v8379_v48, %v4462_v16  ;;  %4878 = vmatpush.bf16.msra.mxu2 %v7228_v49  ;;  %v7169_v49 = vld [vmem:[%s8645_s6 + $0x50] sm:$0xf0]  ;;  %4935 = vmatpush.bf16.msra.mxu1 %v7240_v62 }
 0x9aa   : > { %v7265_v62 = vld [vmem:[%s8645_s6 + $0xf0] sm:$0xf0] }
 0x9ab   : > { %v4479_v9 = vsel %vm1550_vm7, %v4467_v39, 0.0 }
 0x9ac   : > { %4480 = vadd.xlane.f32.xlu2 %v4479_v9  ;;  %v10510_v9 = vld [vmem:[%s11100_s0] ss:$0 sm:$0xff] }
 0x9ad   : > { %4936 = vmatpush.bf16.msra.mxu1 %v7176_v63  ;;  %v7209_v63 = vld [vmem:[%s8645_s6 + $0x78] sm:$0xf0] }
 0x9af   : > { %v4472_v32 = vpop.xlane.xlu2 %4471 }
 0x9b0   : > { %v4489_v60 = vmul.f32 %v10461_v13, %v4472_v32 }
 0x9b2   : > { %v10464_v57 = vsub.f32 %v4464_v18, %v4489_v60 }
 0x9b4   : > { %v4497_v4 = vmul.f32 %v10464_v57, %v10464_v57 }
 0x9b6   : > { %v4501_v22 = vsel %vm1550_vm7, %v4497_v4, 0.0 }
 0x9b7   : > { %4502 = vadd.xlane.f32.xlu1 %v4501_v22  ;;  %v4475_v61 = vpop.xlane.xlu1 %4474  ;;  %v10518_v22 = vld [vmem:[%s11101_s23] ss:$0 sm:$0xff] }
 0x9b8   : > { %v4490_v8 = vmul.f32 %v10461_v13, %v4475_v61 }
 0x9ba   : > { %v10470_v28 = vsub.f32 %v4465_v19, %v4490_v8  ;;  %v7854_v19 = vld [vmem:[%s8645_s6 + $0xc] sm:$0xf] }
 0x9bb   : > { %v7164_v1 = vor.u32 %v7854_v19, %v7161_v15 }
 0x9bc   : > { %v4498_v7 = vmul.f32 %v10470_v28, %v10470_v28 }
 0x9bd   : > { %4879 = vmatpush.bf16.msra.mxu2 %v7164_v1 }
 0x9be   : > { %v4504_v10 = vsel %vm1550_vm7, %v4498_v7, 0.0 }
 0x9bf   : > { %4505 = vadd.xlane.f32.xlu0 %v4504_v10 }
 0xa17   : > { %v4478_v45 = vpop.xlane.xlu0 %4477 }
 0xa18   : > { %v4491_v5 = vmul.f32 %v10461_v13, %v4478_v45 }
 0xa1a   : > { %v10476_v21 = vsub.f32 %v4466_v24, %v4491_v5 }
 0xa1c   : > { %v4499_v56 = vmul.f32 %v10476_v21, %v10476_v21 }
 0xa1e   : > { %v4507_v35 = vsel %vm1550_vm7, %v4499_v56, 0.0 }
 0xa1f   : > { %v4481_v34 = vpop.xlane.xlu2 %4480  ;;  %4508 = vadd.xlane.f32.xlu2 %v4507_v35  ;;  %v7231_v35 = vld [vmem:[%s8645_s6 + $0x90] sm:$0xf] }
 0xa20   : > { %v4492_v29 = vmul.f32 %v10461_v13, %v4481_v34  ;;  %v7879_v34 = vld [vmem:[%s8645_s6 + $0xcc] sm:$0xf0] }
 0xa22   : > { %v10482_v3 = vsub.f32 %v4467_v39, %v4492_v29  ;;  %v7872_v29 = vld [vmem:[%s8645_s6 + $0x9c] sm:$0xf] }
 0xa24   : > { %v4500_v23 = vmul.f32 %v10482_v3, %v10482_v3 }
 0xa26   : > { %v4510_v59 = vsel %vm1550_vm7, %v4500_v23, 0.0  ;;  %v7232_v23 = vor.u32 %v7879_v34, %v7231_v35  ;;  %v7882_v35 = vld [vmem:[%s8645_s6 + $0xe4] sm:$0xf0] }
 0xa27   : > { %4511 = vadd.xlane.f32.xlu1 %v4510_v59  ;;  %v7241_v59 = vld [vmem:[%s8645_s6 + $0xd8] sm:$0xf0] }
 0xa28   : > { %4897 = vmatpush.bf16.msra.mxu3 %v7232_v23  ;;  %v7858_v23 = vld [vmem:[%s8645_s6 + $0x2c] sm:$0xf] }
 0xa2a   : > { %v4503_v42 = vpop.xlane.xlu1 %4502 }
 0xa2b   : > { %v4513_v38 = vmul.f32 %v4503_v42, %v10461_v13  ;;  %v7871_v42 = vld [vmem:[%s8645_s6 + $0x94] sm:$0xf] }
 0xa2c   : > { %4898 = vmatpush.bf16.msra.mxu3 %v7168_v44  ;;  %v7876_v44 = vld [vmem:[%s8645_s6 + $0xbc] sm:$0xf] }
 0xa2d   : > { %v4517_v58 = vadd.f32 1e-05, %v4513_v38  ;;  %v7233_v38 = vld [vmem:[%s8645_s6 + $0xd0] sm:$0xf0] }
 0xa2e   : > { %v7236_v20 = vor.u32 %v7871_v42, %v7233_v38  ;;  %v7857_v42 = vld [vmem:[%s8645_s6 + $0x24] sm:$0xf] }
 0xa2f   : > { %8360 = vrsqrt.f32 %v4517_v58  ;;  %vm4527_vm14 = vweird.f32 %v4517_v58 }
 0xa30   : > { %4916 = vmatpush.bf16.msrb.mxu0 %v7236_v20  ;;  %v7191_v20 = vld [vmem:[%s8645_s6 + $0x28] sm:$0xf] }
 0xa32   : > { %v4506_v55 = vpop.xlane.xlu0 %4505 }
 0xa33   : > { %v4514_v18 = vmul.f32 %v4506_v55, %v10461_v13  ;;  %v7855_v55 = vld [vmem:[%s8645_s6 + $0x14] sm:$0xf] }
 0xa35   : > { %v8361_v27 = vpop.eup %8360  ;;  %v4518_v0 = vadd.f32 1e-05, %v4514_v18  ;;  %v7172_v18 = vor.u32 %v7855_v55, %v7169_v49  ;;  %v7268_v55 = vor.u32 %v7875_v37, %v7265_v62  ;;  %v7199_v49 = vld [vmem:[%s8645_s6 + $0x30] sm:$0xf]  ;;  %v7924_v37 = vld [vmem:[%s8660_s29 + $0x138] sm:$0xff] }
 0xa36   : > { %v4522_v43 = vmul.f32 %v8361_v27, %v4517_v58  ;;  %vm4528_vm13 = vweird.f32 %v8361_v27  ;;  %v7244_v58 = vor.u32 %v7872_v29, %v7241_v59  ;;  %v7193_v59 = vld [vmem:[%s8645_s6 + $0x68] sm:$0xf0] }
 0xa37   : > { %8362 = vrsqrt.f32 %v4518_v0  ;;  %vm4529_vm15 = vmor %vm4527_vm14, %vm4528_vm13  ;;  %vm4537_vm1 = vweird.f32 %v4518_v0  ;;  %4917 = vmatpush.bf16.msrb.mxu0 %v7172_v18  ;;  %v7196_v38 = vor.u32 %v7858_v23, %v7193_v59  ;;  %v7884_v18 = vld [vmem:[%s8645_s6 + $0xf4] sm:$0xf0]  ;;  %v7886_v23 = vld [vmem:[%s8660_s29 + $0x8] sm:$0xff] }
 0xa38   : > { %v4523_v54 = vmul.f32 %v8361_v27, %v4522_v43  ;;  %4954 = vmatpush.bf16.msrb.mxu2 %v7244_v58  ;;  %v7185_v58 = vld [vmem:[%s8645_s6 + $0x60] sm:$0xf0]  ;;  %v7894_v59 = vld [vmem:[%s8660_s29 + $0x48] sm:$0xff] }
 0xa39   : > { %v7188_v12 = vor.u32 %v7857_v42, %v7185_v58  ;;  %v7902_v42 = vld [vmem:[%s8660_s29 + $0x88] sm:$0xff]  ;;  %v7885_v58 = vld [vmem:[%s8660_s29] sm:$0xff] }
 0xa3a   : > { %v4524_v24 = vmul.f32 0.5, %v4523_v54 }
 0xa3c   : > { %v4525_v36 = vsub.f32 1.5, %v4524_v24  ;;  %4955 = vmatpush.bf16.msrb.mxu2 %v7180_v17  ;;  %v7247_v24 = vld [vmem:[%s8645_s6 + $0xa0] sm:$0xf]  ;;  %v7276_v17 = vor.u32 %v7876_v44, %v7273_v41  ;;  %v7940_v41 = vld [vmem:[%s8660_s29 + $0x1b8] sm:$0xff] }
 0xa3d   : > { %v8363_v30 = vpop.eup %8362 }
 0xa3e   : > { %v4526_v14 = vmul.f32 %v8361_v27, %v4525_v36  ;;  %v4532_v51 = vmul.f32 %v8363_v30, %v4518_v0  ;;  %vm4538_vm0 = vweird.f32 %v8363_v30  ;;  %v7881_v36 = vld [vmem:[%s8645_s6 + $0xdc] sm:$0xf0] }
 0xa3f   : > { %vm4539_vm2 = vmor %vm4537_vm1, %vm4538_vm0 }
 0xa40   : > { %v4533_v16 = vmul.f32 %v8363_v30, %v4532_v51  ;;  %v4530_v48 = vsel %vm4529_vm15, %v8361_v27, %v4526_v14 }
 0xa41   : > { %v4561_v32 = vmul.f32 %v4530_v48, %v10464_v57 }
 0xa42   : > { %v4534_v39 = vmul.f32 0.5, %v4533_v16 }
 0xa43   : > { %v4568_v61 = vmul.f32 %v10510_v9, %v4561_v32  ;;  %v7874_v32 = vld [vmem:[%s8645_s6 + $0xac] sm:$0xf] }
 0xa44   : > { %v4535_v47 = vsub.f32 1.5, %v4534_v39 }
 0xa45   : > { %v10524_v57 = vadd.f32 %v10518_v22, %v4568_v61 }
 0xa46   : > { %v4536_v60 = vmul.f32 %v8363_v30, %v4535_v47 }
 0xa48   : > { %v4540_v4 = vsel %vm4539_vm2, %v8363_v30, %v4536_v60  ;;  %v7248_v30 = vor.u32 %v7881_v36, %v7247_v24  ;;  %v7257_v60 = vld [vmem:[%s8645_s6 + $0xe8] sm:$0xf0]  ;;  %v7908_v24 = vld [vmem:[%s8660_s29 + $0xb8] sm:$0xff] }
 0xa49   : > { %v4562_v8 = vmul.f32 %v4540_v4, %v10470_v28  ;;  %v7916_v36 = vld [vmem:[%s8660_s29 + $0xf8] sm:$0xff] }
 0xa4b   : > { %v4569_v7 = vmul.f32 %v10510_v9, %v4562_v8 }
 0xa4d   : > { %v10527_v10 = vadd.f32 %v10518_v22, %v4569_v7 }
 0xa4f   : > { %v10531_v45 = vpack.c.bf16 %v10527_v10, %v10524_v57 }
 0xa51   : > { %7277 = vmatmul.msk.bf16.vlgmr.msrb.gmra.mxu3 %vm1550_vm7, %v10531_v45  ;;  %7279 = vmatmul.msk.bf16.vlgmr.msra.gmra.mxu0 %vm1550_vm7, %v10531_v45 }
 0xa52   : > { %7281 = vmatmul.msk.bf16.vlgmr.msrb.gmra.mxu1 %vm1550_vm7, %v10531_v45  ;;  %7283 = vmatmul.msk.bf16.vlgmr.msra.gmra.mxu2 %vm1550_vm7, %v10531_v45 }
 0xa53   : > { %4973 = vmatpush.bf16.msrb.mxu3 %v7248_v30  ;;  %v7891_v30 = vld [vmem:[%s8660_s29 + $0x30] sm:$0xff] }
 0xa92   : > { %v4509_v28 = vpop.xlane.xlu2 %4508 }
 0xa93   : > { %v4515_v5 = vmul.f32 %v4509_v28, %v10461_v13 }
 0xa95   : > { %v4519_v56 = vadd.f32 1e-05, %v4515_v5  ;;  %v7865_v5 = vld [vmem:[%s8645_s6 + $0x5c] sm:$0xf0] }
 0xa97   : > { %8364 = vrsqrt.f32 %v4519_v56  ;;  %vm4547_vm5 = vweird.f32 %v4519_v56 }
 0xa9a   : > { %v4512_v11 = vpop.xlane.xlu1 %4511 }
 0xa9b   : > { %v4516_v53 = vmul.f32 %v4512_v11, %v10461_v13  ;;  %v7866_v11 = vld [vmem:[%s8645_s6 + $0x64] sm:$0xf0] }
 0xa9c   : > { %v7192_v6 = vor.u32 %v7866_v11, %v7191_v20  ;;  %v7893_v20 = vld [vmem:[%s8660_s29 + $0x40] sm:$0xff] }
 0xa9d   : > { %v8365_v50 = vpop.eup %8364  ;;  %v4520_v46 = vadd.f32 1e-05, %v4516_v53  ;;  %v7883_v53 = vld [vmem:[%s8645_s6 + $0xec] sm:$0xf0]  ;;  %v7901_v11 = vld [vmem:[%s8660_s29 + $0x80] sm:$0xff] }
 0xa9e   : > { %v4542_v31 = vmul.f32 %v8365_v50, %v4519_v56  ;;  %vm4548_vm3 = vweird.f32 %v8365_v50  ;;  %v7255_v56 = vld [vmem:[%s8645_s6 + $0xa8] sm:$0xf]  ;;  %v7264_v52 = vor.u32 %v7883_v53, %v7263_v25 }
 0xa9f   : > { %8366 = vrsqrt.f32 %v4520_v46  ;;  %vm4549_vm6 = vmor %vm4547_vm5, %vm4548_vm3  ;;  %vm4557_vm8 = vweird.f32 %v4520_v46  ;;  %v7256_v29 = vor.u32 %v7882_v35, %v7255_v56  ;;  %v7887_v56 = vld [vmem:[%s8660_s29 + $0x10] sm:$0xff] }
 0xaa0   : > { %v4543_v26 = vmul.f32 %v8365_v50, %v4542_v31  ;;  %v7895_v35 = vld [vmem:[%s8660_s29 + $0x50] sm:$0xff] }
 0xaa1   : > { %5011 = vmatpush.bf16.msrb.mxu1 %v7256_v29  ;;  %v7911_v29 = vld [vmem:[%s8660_s29 + $0xd0] sm:$0xff] }
 0xaa2   : > { %v4544_v19 = vmul.f32 0.5, %v4543_v26  ;;  %v7859_v26 = vld [vmem:[%s8645_s6 + $0x34] sm:$0xf] }
 0xaa4   : > { %v4545_v2 = vsub.f32 1.5, %v4544_v19  ;;  %v7201_v19 = vld [vmem:[%s8645_s6 + $0x70] sm:$0xf0] }
 0xaa5   : > { %v8367_v15 = vpop.eup %8366  ;;  %5012 = vmatpush.bf16.msrb.mxu1 %v7192_v6 }
 0xaa6   : > { %v4546_v27 = vmul.f32 %v8365_v50, %v4545_v2  ;;  %v4552_v0 = vmul.f32 %v8367_v15, %v4520_v46  ;;  %vm4558_vm4 = vweird.f32 %v8367_v15  ;;  %v7271_v46 = vld [vmem:[%s8645_s6 + $0xb8] sm:$0xf]  ;;  %v7212_v2 = vor.u32 %v7860_v33, %v7209_v63 }
 0xaa7   : > { %vm4559_vm10 = vmor %vm4557_vm8, %vm4558_vm4  ;;  %v7272_v31 = vor.u32 %v7884_v18, %v7271_v46 }
 0xaa8   : > { %v4553_v1 = vmul.f32 %v8367_v15, %v4552_v0  ;;  %v4550_v43 = vsel %vm4549_vm6, %v8365_v50, %v4546_v27  ;;  %v7200_v50 = vor.u32 %v7867_v40, %v7199_v49  ;;  %v7207_v27 = vld [vmem:[%s8645_s6 + $0x38] sm:$0xf]  ;;  %v7939_v49 = vld [vmem:[%s8660_s29 + $0x1b0] sm:$0xff] }
 0xaa9   : > { %v4563_v51 = vmul.f32 %v4550_v43, %v10476_v21  ;;  %v7260_v21 = vor.u32 %v7874_v32, %v7257_v60  ;;  %v7868_v0 = vld [vmem:[%s8645_s6 + $0x74] sm:$0xf0]  ;;  %v7914_v32 = vld [vmem:[%s8660_s29 + $0xe8] sm:$0xff]  ;;  %v7889_v60 = vld [vmem:[%s8660_s29 + $0x20] sm:$0xff] }
 0xaaa   : > { %v4554_v54 = vmul.f32 0.5, %v4553_v1  ;;  %v7208_v1 = vor.u32 %v7868_v0, %v7207_v27  ;;  %v7892_v43 = vld [vmem:[%s8660_s29 + $0x38] sm:$0xff] }
 0xaab   : > { %v4570_v39 = vmul.f32 %v10510_v9, %v4563_v51  ;;  %5030 = vmatpush.bf16.msra.mxu2 %v7260_v21  ;;  %v7907_v51 = vld [vmem:[%s8660_s29 + $0xb0] sm:$0xff]  ;;  %v7905_v21 = vld [vmem:[%s8660_s29 + $0xa0] sm:$0xff] }
 0xaac   : > { %v4555_v14 = vsub.f32 1.5, %v4554_v54  ;;  %v7900_v54 = vld [vmem:[%s8660_s29 + $0x78] sm:$0xff] }
 0xaad   : > { %v10568_v61 = vadd.f32 %v10518_v22, %v4570_v39  ;;  %v7898_v39 = vld [vmem:[%s8660_s29 + $0x68] sm:$0xff] }
 0xaae   : > { %v4556_v16 = vmul.f32 %v8367_v15, %v4555_v14  ;;  %v7899_v14 = vld [vmem:[%s8660_s29 + $0x70] sm:$0xff] }
 0xaaf   : > { %5031 = vmatpush.bf16.msra.mxu2 %v7196_v38  ;;  %v7910_v38 = vld [vmem:[%s8660_s29 + $0xc8] sm:$0xff] }
 0xab0   : > { %v4560_v48 = vsel %vm4559_vm10, %v8367_v15, %v4556_v16  ;;  %v7204_v15 = vor.u32 %v7859_v26, %v7201_v19  ;;  %v7915_v16 = vld [vmem:[%s8660_s29 + $0xf0] sm:$0xff] }
 0xab1   : > { %v4564_v47 = vmul.f32 %v4560_v48, %v10482_v3  ;;  %v7873_v3 = vld [vmem:[%s8645_s6 + $0xa4] sm:$0xf]  ;;  %v7890_v48 = vld [vmem:[%s8660_s29 + $0x28] sm:$0xff] }
 0xab3   : > { %v4571_v4 = vmul.f32 %v10510_v9, %v4564_v47  ;;  %v7249_v9 = vld [vmem:[%s8645_s6 + $0xe0] sm:$0xf0]  ;;  %v7906_v47 = vld [vmem:[%s8660_s29 + $0xa8] sm:$0xff] }
 0xab4   : > { %v7252_v28 = vor.u32 %v7873_v3, %v7249_v9  ;;  %v7913_v3 = vld [vmem:[%s8660_s29 + $0xe0] sm:$0xff]  ;;  %v7888_v9 = vld [vmem:[%s8660_s29 + $0x18] sm:$0xff] }
 0xab5   : > { %v10571_v8 = vadd.f32 %v10518_v22, %v4571_v4  ;;  %v7183_v22 = vld [vmem:[%s8645_s6 + $0x20] sm:$0xf] }
 0xab6   : > { %v7184_v34 = vor.u32 %v7865_v5, %v7183_v22  ;;  %4992 = vmatpush.bf16.msra.mxu0 %v7252_v28  ;;  %v7897_v4 = vld [vmem:[%s8660_s29 + $0x60] sm:$0xff]  ;;  %v7896_v22 = vld [vmem:[%s8660_s29 + $0x58] sm:$0xff] }
 0xab7   : > { %v10575_v7 = vpack.c.bf16 %v10571_v8, %v10568_v61  ;;  %v7904_v28 = vld [vmem:[%s8660_s29 + $0x98] sm:$0xff] }
 0xab8   : > { %4974 = vmatpush.bf16.msrb.mxu3 %v7184_v34  ;;  %v7912_v5 = vld [vmem:[%s8660_s29 + $0xd8] sm:$0xff]  ;;  %v7903_v34 = vld [vmem:[%s8660_s29 + $0x90] sm:$0xff] }
 0xab9   : > { %7278 = vmatmul.msk.bf16.gmra.mxu3 %vm1550_vm7, %v10575_v7  ;;  %7280 = vmatmul.msk.bf16.gmra.mxu0 %vm1550_vm7, %v10575_v7 }
 0xaba   : > { %7282 = vmatmul.msk.bf16.gmra.mxu1 %vm1550_vm7, %v10575_v7  ;;  %7284 = vmatmul.msk.bf16.gmra.mxu2 %vm1550_vm7, %v10575_v7 }
 0xabb   : > { %4993 = vmatpush.bf16.msra.mxu0 %v7188_v12  ;;  %v7909_v12 = vld [vmem:[%s8660_s29 + $0xc0] sm:$0xff] }
 0xac9   : > { %7285 = vmatmul.msk.bf16.vlgmr.msra.gmra.mxu3 %vm1550_vm7, %v10531_v45  ;;  %7287 = vmatmul.msk.bf16.vlgmr.msrb.gmra.mxu0 %vm1550_vm7, %v10531_v45 }
 0xaca   : > { %7289 = vmatmul.msk.bf16.vlgmr.msra.gmra.mxu1 %vm1550_vm7, %v10531_v45  ;;  %7291 = vmatmul.msk.bf16.vlgmr.msrb.gmra.mxu2 %vm1550_vm7, %v10531_v45 }
 0xacb   : > { %5049 = vmatpush.bf16.msra.mxu3 %v7264_v52  ;;  %5106 = vmatpush.bf16.msrb.mxu2 %v7276_v17  ;;  %v10690_v52 = vld [vmem:[%s8650_s4] sm:$0xff] }
 0xacc   : > { %5068 = vmatpush.bf16.msrb.mxu0 %v7268_v55  ;;  %5087 = vmatpush.bf16.msra.mxu1 %v7272_v31  ;;  %v7931_v55 = vld [vmem:[%s8660_s29 + $0x170] sm:$0xff]  ;;  %v10702_v40 = vperm.slane %v10690_v52, 1  ;;  %v10711_v33 = vperm.slane %v10690_v52, 3 }
 0xace   : > { %v4843_v6 = vpop.f32.mrf.mxu0 }
 0xacf   : > { %5050 = vmatpush.bf16.msra.mxu3 %v7200_v50  ;;  %5107 = vmatpush.bf16.msrb.mxu2 %v7212_v2  ;;  %v4862_v53 = vpop.f32.mrf.mxu1  ;;  %v10705_v50 = vperm.slane %v10690_v52, 0  ;;  %v7948_v2 = vld [vmem:[%s8660_s29 + $0x1f8] sm:$0xff] }
 0xad0   : > { %5069 = vmatpush.bf16.msrb.mxu0 %v7204_v15  ;;  %5088 = vmatpush.bf16.msra.mxu1 %v7208_v1  ;;  %v4844_v15 = vadd.f32 %v4843_v6, %v10702_v40 }
 0xad4   : > { %v4824_v25 = vpop.f32.mrf.mxu3 }
 0xad5   : > { %v4881_v44 = vpop.f32.mrf.mxu2  ;;  %v4825_v27 = vadd.f32 %v4824_v25, %v10705_v50  ;;  %v7925_v25 = vld [vmem:[%s8660_s29 + $0x140] sm:$0xff] }
 0xad6   : > { %v4845_v62 = vpop.f32.mrf.mxu0  ;;  %v4882_v1 = vadd.f32 %v4881_v44, %v10711_v33 }
 0xad7   : > { %v4864_v46 = vpop.f32.mrf.mxu1  ;;  %v4846_v31 = vadd.f32 %v4845_v62, %v10702_v40  ;;  %v7972_v62 = vld [vmem:[%s8660_s29 + $0x2b8] sm:$0xff] }
 0xad9   : > { %7286 = vmatmul.msk.bf16.gmra.mxu3 %vm1550_vm7, %v10575_v7  ;;  %7288 = vmatmul.msk.bf16.gmra.mxu0 %vm1550_vm7, %v10575_v7 }
 0xada   : > { %7290 = vmatmul.msk.bf16.gmra.mxu1 %vm1550_vm7, %v10575_v7  ;;  %7292 = vmatmul.msk.bf16.gmra.mxu2 %vm1550_vm7, %v10575_v7 }
 0xadc   : > { %v4826_v17 = vpop.f32.mrf.mxu3 }
 0xadd   : > { %v4883_v18 = vpop.f32.mrf.mxu2  ;;  %v4827_v63 = vadd.f32 %v4826_v17, %v10705_v50  ;;  %v7917_v17 = vld [vmem:[%s8660_s29 + $0x100] sm:$0xff] }
 0xade   : > { %v4884_v19 = vadd.f32 %v4883_v18, %v10711_v33 }
 0xae9   : > { %7293 = vmatmul.msk.bf16.vlgmr.msrb.gmra.mxu3 %vm1550_vm7, %v10531_v45  ;;  %7295 = vmatmul.msk.bf16.vlgmr.msra.gmra.mxu0 %vm1550_vm7, %v10531_v45 }
 0xaea   : > { %7297 = vmatmul.msk.bf16.vlgmr.msrb.gmra.mxu1 %vm1550_vm7, %v10531_v45  ;;  %7299 = vmatmul.msk.bf16.vlgmr.msra.gmra.mxu2 %vm1550_vm7, %v10531_v45 }
 0xaeb   : > { %6243 = vmatpush.bf16.msrb.mxu3 %v7892_v43  ;;  %6262 = vmatpush.bf16.msra.mxu0 %v7900_v54  ;;  %v7930_v43 = vld [vmem:[%s8660_s29 + $0x168] sm:$0xff] }
 0xaec   : > { %6281 = vmatpush.bf16.msrb.mxu1 %v7908_v24  ;;  %6300 = vmatpush.bf16.msra.mxu2 %v7916_v36  ;;  %v7938_v54 = vld [vmem:[%s8660_s29 + $0x1a8] sm:$0xff]  ;;  %v7923_v24 = vld [vmem:[%s8660_s29 + $0x130] sm:$0xff]  ;;  %v5136_v36 = vmax.f32 %v4846_v31, 0.0 }
 0xaef   : > { %6244 = vmatpush.bf16.msrb.mxu3 %v7891_v30  ;;  %6263 = vmatpush.bf16.msra.mxu0 %v7899_v14  ;;  %v5135_v30 = vmax.f32 %v4827_v63, 0.0  ;;  %v7947_v14 = vld [vmem:[%s8660_s29 + $0x1f0] sm:$0xff] }
 0xaf0   : > { %6282 = vmatpush.bf16.msrb.mxu1 %v7907_v51  ;;  %6301 = vmatpush.bf16.msra.mxu2 %v7915_v16  ;;  %v5138_v16 = vmax.f32 %v4884_v19, 0.0  ;;  %v7971_v63 = vld [vmem:[%s8660_s29 + $0x2b0] sm:$0xff] }
 0xaf3   : > { %6245 = vmatpush.bf16.msrb.mxu3 %v7890_v48  ;;  %6264 = vmatpush.bf16.msra.mxu0 %v7898_v39  ;;  %v7929_v48 = vld [vmem:[%s8660_s29 + $0x160] sm:$0xff] }
 0xaf4   : > { %6283 = vmatpush.bf16.msrb.mxu1 %v7906_v47  ;;  %6302 = vmatpush.bf16.msra.mxu2 %v7914_v32  ;;  %v7937_v39 = vld [vmem:[%s8660_s29 + $0x1a0] sm:$0xff]  ;;  %v5120_v47 = vmax.f32 %v4844_v15, 0.0  ;;  %v5119_v32 = vmax.f32 %v4825_v27, 0.0 }
 0xaf7   : > { %6246 = vmatpush.bf16.msrb.mxu3 %v7889_v60  ;;  %6265 = vmatpush.bf16.msra.mxu0 %v7897_v4  ;;  %v5122_v4 = vmax.f32 %v4882_v1, 0.0  ;;  %v7980_v1 = vld [vmem:[%s8660_s29 + $0x2f8] sm:$0xff] }
 0xaf8   : > { %6284 = vmatpush.bf16.msrb.mxu1 %v7905_v21  ;;  %6303 = vmatpush.bf16.msra.mxu2 %v7913_v3  ;;  %v5184_v21 = vpack.c.bf16 %v5136_v36, %v5120_v47  ;;  %v5183_v3 = vpack.c.bf16 %v5135_v30, %v5119_v32  ;;  %v7962_v30 = vld [vmem:[%s8660_s29 + $0x268] sm:$0xff]  ;;  %v7961_v32 = vld [vmem:[%s8660_s29 + $0x260] sm:$0xff] }
 0xaf9   : > { %7294 = vmatmul.msk.bf16.gmra.mxu3 %vm1550_vm7, %v10575_v7  ;;  %7296 = vmatmul.msk.bf16.gmra.mxu0 %vm1550_vm7, %v10575_v7 }
 0xafa   : > { %7298 = vmatmul.msk.bf16.gmra.mxu1 %vm1550_vm7, %v10575_v7  ;;  %7300 = vmatmul.msk.bf16.gmra.mxu2 %vm1550_vm7, %v10575_v7 }
 0xafb   : > { %6247 = vmatpush.bf16.msrb.mxu3 %v7888_v9  ;;  %6266 = vmatpush.bf16.msra.mxu0 %v7896_v22  ;;  %v7922_v9 = vld [vmem:[%s8660_s29 + $0x128] sm:$0xff] }
 0xafc   : > { %6285 = vmatpush.bf16.msrb.mxu1 %v7904_v28  ;;  %6304 = vmatpush.bf16.msra.mxu2 %v7912_v5  ;;  %v5186_v28 = vpack.c.bf16 %v5138_v16, %v5122_v4  ;;  %v7946_v5 = vld [vmem:[%s8660_s29 + $0x1e8] sm:$0xff] }
 0xaff   : > { %6248 = vmatpush.bf16.msrb.mxu3 %v7887_v56  ;;  %6267 = vmatpush.bf16.msra.mxu0 %v7895_v35  ;;  %v7928_v56 = vld [vmem:[%s8660_s29 + $0x158] sm:$0xff] }
 0xb00   : > { %6286 = vmatpush.bf16.msrb.mxu1 %v7903_v34  ;;  %6305 = vmatpush.bf16.msra.mxu2 %v7911_v29  ;;  %v7936_v35 = vld [vmem:[%s8660_s29 + $0x198] sm:$0xff]  ;;  %v7921_v34 = vld [vmem:[%s8660_s29 + $0x120] sm:$0xff] }
 0xb01   : > { %v7945_v29 = vld [vmem:[%s8660_s29 + $0x1e0] sm:$0xff] }
 0xb03   : > { %6249 = vmatpush.bf16.msrb.mxu3 %v7886_v23  ;;  %6268 = vmatpush.bf16.msra.mxu0 %v7894_v59  ;;  %v7927_v23 = vld [vmem:[%s8660_s29 + $0x150] sm:$0xff] }
 0xb04   : > { %6287 = vmatpush.bf16.msrb.mxu1 %v7902_v42  ;;  %6306 = vmatpush.bf16.msra.mxu2 %v7910_v38  ;;  %v7935_v59 = vld [vmem:[%s8660_s29 + $0x190] sm:$0xff]  ;;  %v7920_v42 = vld [vmem:[%s8660_s29 + $0x118] sm:$0xff] }
 0xb05   : > { %v7944_v38 = vld [vmem:[%s8660_s29 + $0x1d8] sm:$0xff] }
 0xb07   : > { %6250 = vmatpush.bf16.msrb.mxu3 %v7885_v58  ;;  %6269 = vmatpush.bf16.msra.mxu0 %v7893_v20  ;;  %v7926_v58 = vld [vmem:[%s8660_s29 + $0x148] sm:$0xff] }
 0xb08   : > { %6288 = vmatpush.bf16.msrb.mxu1 %v7901_v11  ;;  %6307 = vmatpush.bf16.msra.mxu2 %v7909_v12  ;;  %v7934_v20 = vld [vmem:[%s8660_s29 + $0x188] sm:$0xff]  ;;  %v7919_v11 = vld [vmem:[%s8660_s29 + $0x110] sm:$0xff] }
 0xb09   : > { %7301 = vmatmul.msk.bf16.vlgmr.msra.gmra.mxu3 %vm1550_vm7, %v10531_v45  ;;  %7303 = vmatmul.msk.bf16.vlgmr.msrb.gmra.mxu0 %vm1550_vm7, %v10531_v45  ;;  %v7943_v12 = vld [vmem:[%s8660_s29 + $0x1d0] sm:$0xff] }
 0xb0a   : > { %7305 = vmatmul.msk.bf16.vlgmr.msra.gmra.mxu1 %vm1550_vm7, %v10531_v45  ;;  %7307 = vmatmul.msk.bf16.vlgmr.msrb.gmra.mxu2 %vm1550_vm7, %v10531_v45  ;;  %v7932_v45 = vld [vmem:[%s8660_s29 + $0x178] sm:$0xff] }
 0xb0b   : > { %6338 = vmatpush.bf16.msrb.mxu0 %v7932_v45  ;;  %6319 = vmatpush.bf16.msra.mxu3 %v7924_v37  ;;  %v7918_v45 = vld [vmem:[%s8660_s29 + $0x108] sm:$0xff]  ;;  %v7964_v37 = vld [vmem:[%s8660_s29 + $0x278] sm:$0xff] }
 0xb0c   : > { %6357 = vmatpush.bf16.msra.mxu1 %v7940_v41  ;;  %6376 = vmatpush.bf16.msrb.mxu2 %v7948_v2  ;;  %v7942_v41 = vld [vmem:[%s8660_s29 + $0x1c8] sm:$0xff] }
 0xb0f   : > { %6339 = vmatpush.bf16.msrb.mxu0 %v7931_v55  ;;  %6320 = vmatpush.bf16.msra.mxu3 %v7923_v24 }
 0xb10   : > { %6358 = vmatpush.bf16.msra.mxu1 %v7939_v49  ;;  %6377 = vmatpush.bf16.msrb.mxu2 %v7947_v14  ;;  %v7941_v49 = vld [vmem:[%s8660_s29 + $0x1c0] sm:$0xff]  ;;  %v7955_v14 = vld [vmem:[%s8660_s29 + $0x230] sm:$0xff] }
 0xb13   : > { %6340 = vmatpush.bf16.msrb.mxu0 %v7930_v43  ;;  %6321 = vmatpush.bf16.msra.mxu3 %v7922_v9 }
 0xb14   : > { %6359 = vmatpush.bf16.msra.mxu1 %v7938_v54  ;;  %6378 = vmatpush.bf16.msrb.mxu2 %v7946_v5 }
 0xb17   : > { %6341 = vmatpush.bf16.msrb.mxu0 %v7929_v48  ;;  %6322 = vmatpush.bf16.msra.mxu3 %v7921_v34  ;;  %v7978_v34 = vld [vmem:[%s8660_s29 + $0x2e8] sm:$0xff] }
 0xb18   : > { %6360 = vmatpush.bf16.msra.mxu1 %v7937_v39  ;;  %6379 = vmatpush.bf16.msrb.mxu2 %v7945_v29  ;;  %v10771_v29 = vperm.slane %v10690_v52, 5 }
 0xb19   : > { %7302 = vmatmul.msk.bf16.gmra.mxu3 %vm1550_vm7, %v10575_v7  ;;  %7304 = vmatmul.msk.bf16.gmra.mxu0 %vm1550_vm7, %v10575_v7 }
 0xb1a   : > { %7306 = vmatmul.msk.bf16.gmra.mxu1 %vm1550_vm7, %v10575_v7  ;;  %7308 = vmatmul.msk.bf16.gmra.mxu2 %vm1550_vm7, %v10575_v7  ;;  %v10708_v7 = vperm.slane %v10690_v52, 2 }
 0xb1b   : > { %6342 = vmatpush.bf16.msrb.mxu0 %v7928_v56  ;;  %6323 = vmatpush.bf16.msra.mxu3 %v7920_v42  ;;  %v7960_v42 = vld [vmem:[%s8660_s29 + $0x258] sm:$0xff] }
 0xb1c   : > { %v4865_v26 = vadd.f32 %v4864_v46, %v10708_v7  ;;  %v4863_v0 = vadd.f32 %v4862_v53, %v10708_v7  ;;  %6361 = vmatpush.bf16.msra.mxu1 %v7936_v35  ;;  %6380 = vmatpush.bf16.msrb.mxu2 %v7944_v38  ;;  %v7933_v53 = vld [vmem:[%s8660_s29 + $0x180] sm:$0xff]  ;;  %v7963_v46 = vld [vmem:[%s8660_s29 + $0x270] sm:$0xff]  ;;  %v7968_v38 = vld [vmem:[%s8660_s29 + $0x298] sm:$0xff] }
 0xb1e   : > { %v5137_v51 = vmax.f32 %v4865_v26, 0.0  ;;  %v5121_v60 = vmax.f32 %v4863_v0, 0.0  ;;  %v7956_v26 = vld [vmem:[%s8660_s29 + $0x238] sm:$0xff] }
 0xb1f   : > { %6343 = vmatpush.bf16.msrb.mxu0 %v7927_v23  ;;  %6324 = vmatpush.bf16.msra.mxu3 %v7919_v11  ;;  %v10774_v23 = vperm.slane %v10690_v52, 6 }
 0xb20   : > { %v5185_v22 = vpack.c.bf16 %v5137_v51, %v5121_v60  ;;  %6362 = vmatpush.bf16.msra.mxu1 %v7935_v59  ;;  %6381 = vmatpush.bf16.msrb.mxu2 %v7943_v12  ;;  %v7959_v12 = vld [vmem:[%s8660_s29 + $0x250] sm:$0xff] }
 0xb23   : > { %6344 = vmatpush.bf16.msrb.mxu0 %v7926_v58  ;;  %6325 = vmatpush.bf16.msra.mxu3 %v7918_v45  ;;  %v7953_v58 = vld [vmem:[%s8660_s29 + $0x220] sm:$0xff] }
 0xb24   : > { %6363 = vmatpush.bf16.msra.mxu1 %v7934_v20  ;;  %6382 = vmatpush.bf16.msrb.mxu2 %v7942_v41  ;;  %v7977_v20 = vld [vmem:[%s8660_s29 + $0x2e0] sm:$0xff]  ;;  %v7952_v41 = vld [vmem:[%s8660_s29 + $0x218] sm:$0xff] }
 0xb27   : > { %6345 = vmatpush.bf16.msrb.mxu0 %v7925_v25  ;;  %6326 = vmatpush.bf16.msra.mxu3 %v7917_v17 }
 0xb28   : > { %6364 = vmatpush.bf16.msra.mxu1 %v7933_v53  ;;  %6383 = vmatpush.bf16.msrb.mxu2 %v7941_v49  ;;  %v7967_v53 = vld [vmem:[%s8660_s29 + $0x290] sm:$0xff] }
 0xb29   : > { %6251 = vmatmul.bf16.vlgmr.msrb.gmra.mxu3 %v5183_v3  ;;  %6270 = vmatmul.bf16.vlgmr.msra.gmra.mxu0 %v5184_v21  ;;  %v7969_v21 = vld [vmem:[%s8660_s29 + $0x2a0] sm:$0xff] }
 0xb2a   : > { %6289 = vmatmul.bf16.vlgmr.msrb.gmra.mxu1 %v5185_v22  ;;  %6308 = vmatmul.bf16.vlgmr.msra.gmra.mxu2 %v5186_v28  ;;  %v7954_v22 = vld [vmem:[%s8660_s29 + $0x228] sm:$0xff] }
 0xb2b   : > { %6414 = vmatpush.bf16.msra.mxu0 %v7964_v37  ;;  %6395 = vmatpush.bf16.msrb.mxu3 %v7956_v26  ;;  %v10786_v37 = vperm.slane %v10690_v52, 4 }
 0xb2c   : > { %6433 = vmatpush.bf16.msrb.mxu1 %v7972_v62  ;;  %6452 = vmatpush.bf16.msra.mxu2 %v7980_v1  ;;  %v7966_v1 = vld [vmem:[%s8660_s29 + $0x288] sm:$0xff] }
 0xb2f   : > { %6415 = vmatpush.bf16.msra.mxu0 %v7963_v46  ;;  %6396 = vmatpush.bf16.msrb.mxu3 %v7955_v14  ;;  %v7976_v46 = vld [vmem:[%s8660_s29 + $0x2d8] sm:$0xff]  ;;  %v7957_v14 = vld [vmem:[%s8660_s29 + $0x240] sm:$0xff] }
 0xb30   : > { %6434 = vmatpush.bf16.msrb.mxu1 %v7971_v63 }
 0xb33   : > { %6416 = vmatpush.bf16.msra.mxu0 %v7962_v30  ;;  %6397 = vmatpush.bf16.msrb.mxu3 %v7954_v22 }
 0xb36   : > { %v4848_v6 = vpop.f32.mrf.mxu0 }
 0xb37   : > { %v4867_v44 = vpop.f32.mrf.mxu1  ;;  %v4849_v18 = vadd.f32 %v4848_v6, %v10702_v40  ;;  %6417 = vmatpush.bf16.msra.mxu0 %v7961_v32  ;;  %6398 = vmatpush.bf16.msrb.mxu3 %v7953_v58  ;;  %v7950_v32 = vld [vmem:[%s8660_s29 + $0x208] sm:$0xff] }
 0xb38   : > { %v4868_v19 = vadd.f32 %v4867_v44, %v10708_v7 }
 0xb39   : > { %v5152_v43 = vmax.f32 %v4849_v18, 0.0 }
 0xb3a   : > { %v5153_v24 = vmax.f32 %v4868_v19, 0.0 }
 0xb3b   : > { %6418 = vmatpush.bf16.msra.mxu0 %v7960_v42  ;;  %6399 = vmatpush.bf16.msrb.mxu3 %v7952_v41  ;;  %v7988_v42 = vld [vmem:[%s8660_s29 + $0x338] sm:$0xff] }
 0xb3c   : > { %v4829_v55 = vpop.f32.mrf.mxu3 }
 0xb3d   : > { %v4886_v31 = vpop.f32.mrf.mxu2  ;;  %v4830_v51 = vadd.f32 %v4829_v55, %v10705_v50  ;;  %v10790_v55 = vperm.slane %v10690_v52, 7 }
 0xb3e   : > { %v4850_v2 = vpop.f32.mrf.mxu0  ;;  %v4887_v48 = vadd.f32 %v4886_v31, %v10711_v33 }
 0xb3f   : > { %v4851_v15 = vadd.f32 %v4850_v2, %v10702_v40  ;;  %v4869_v27 = vpop.f32.mrf.mxu1  ;;  %v7970_v40 = vld [vmem:[%s8660_s29 + $0x2a8] sm:$0xff]  ;;  %v5151_v28 = vmax.f32 %v4830_v51, 0.0  ;;  %6419 = vmatpush.bf16.msra.mxu0 %v7959_v12 }
 0xb40   : > { %v4870_v0 = vadd.f32 %v4869_v27, %v10708_v7  ;;  %v7979_v7 = vld [vmem:[%s8660_s29 + $0x2f0] sm:$0xff]  ;;  %6435 = vmatpush.bf16.msrb.mxu1 %v7970_v40 }
 0xb41   : > { %v5168_v54 = vmax.f32 %v4851_v15, 0.0  ;;  %6453 = vmatpush.bf16.msra.mxu2 %v7979_v7 }
 0xb42   : > { %v5169_v36 = vmax.f32 %v4870_v0, 0.0  ;;  %v7958_v0 = vld [vmem:[%s8660_s29 + $0x248] sm:$0xff] }
 0xb43   : > { %v5200_v16 = vpack.c.bf16 %v5168_v54, %v5152_v43  ;;  %v7951_v43 = vld [vmem:[%s8660_s29 + $0x210] sm:$0xff]  ;;  %6420 = vmatpush.bf16.msra.mxu0 %v7958_v0 }
 0xb44   : > { %v4831_v39 = vpop.f32.mrf.mxu3  ;;  %v5201_v47 = vpack.c.bf16 %v5169_v36, %v5153_v24  ;;  %6436 = vmatpush.bf16.msrb.mxu1 %v7969_v21  ;;  %v7975_v36 = vld [vmem:[%s8660_s29 + $0x2d0] sm:$0xff]  ;;  %6400 = vmatpush.bf16.msrb.mxu3 %v7951_v43  ;;  %v7974_v21 = vld [vmem:[%s8660_s29 + $0x2c8] sm:$0xff] }
 0xb45   : > { %v4832_v60 = vadd.f32 %v4831_v39, %v10705_v50  ;;  %v4888_v4 = vpop.f32.mrf.mxu2  ;;  %6275 = vmatmul.bf16.gmra.mxu0 %v5200_v16  ;;  %v5154_v50 = vmax.f32 %v4887_v48, 0.0  ;;  %6454 = vmatpush.bf16.msra.mxu2 %v7978_v34  ;;  %v7965_v48 = vld [vmem:[%s8660_s29 + $0x280] sm:$0xff] }
 0xb46   : > { %v4889_v3 = vadd.f32 %v4888_v4, %v10711_v33  ;;  %6294 = vmatmul.bf16.gmra.mxu1 %v5201_v47  ;;  %v4919_v9 = vpop.f32.mrf.mxu0 }
 0xb47   : > { %v5167_v5 = vmax.f32 %v4832_v60, 0.0  ;;  %v4938_v56 = vpop.f32.mrf.mxu1  ;;  %v4920_v6 = vadd.f32 %v4919_v9, %v10771_v29  ;;  %6421 = vmatpush.bf16.msra.mxu0 %v7957_v14  ;;  %v8004_v9 = vld [vmem:[%s8660_s29 + $0x3b8] sm:$0xff] }
 0xb48   : > { %v5170_v35 = vmax.f32 %v4889_v3, 0.0  ;;  %6437 = vmatpush.bf16.msrb.mxu1 %v7968_v38  ;;  %v4939_v44 = vadd.f32 %v4938_v56, %v10774_v23  ;;  %v7996_v3 = vld [vmem:[%s8660_s29 + $0x378] sm:$0xff]  ;;  %6401 = vmatpush.bf16.msrb.mxu3 %v7950_v32 }
 0xb49   : > { %v5199_v33 = vpack.c.bf16 %v5167_v5, %v5151_v28  ;;  %6455 = vmatpush.bf16.msra.mxu2 %v7977_v20  ;;  %v5124_v18 = vmax.f32 %v4920_v6, 0.0  ;;  %v7949_v28 = vld [vmem:[%s8660_s29 + $0x200] sm:$0xff]  ;;  %v8000_v14 = vld [vmem:[%s8660_s29 + $0x398] sm:$0xff] }
 0xb4a   : > { %v5202_v59 = vpack.c.bf16 %v5170_v35, %v5154_v50  ;;  %v5125_v63 = vmax.f32 %v4939_v44, 0.0  ;;  %v7973_v50 = vld [vmem:[%s8660_s29 + $0x2c0] sm:$0xff]  ;;  %v7995_v35 = vld [vmem:[%s8660_s29 + $0x370] sm:$0xff] }
 0xb4b   : > { %6256 = vmatmul.bf16.gmra.mxu3 %v5199_v33 }
 0xb4c   : > { %6313 = vmatmul.bf16.gmra.mxu2 %v5202_v59  ;;  %v4900_v11 = vpop.f32.mrf.mxu3  ;;  %6438 = vmatpush.bf16.msrb.mxu1 %v7967_v53  ;;  %v8003_v59 = vld [vmem:[%s8660_s29 + $0x3b0] sm:$0xff] }
 0xb4d   : > { %v4957_v25 = vpop.f32.mrf.mxu2  ;;  %v4901_v19 = vadd.f32 %v4900_v11, %v10786_v37  ;;  %6456 = vmatpush.bf16.msra.mxu2 %v7976_v46  ;;  %6402 = vmatpush.bf16.msrb.mxu3 %v7949_v28  ;;  %v8012_v11 = vld [vmem:[%s8660_s29 + $0x3f8] sm:$0xff] }
 0xb4e   : > { %v4921_v45 = vpop.f32.mrf.mxu0  ;;  %v4958_v52 = vadd.f32 %v4957_v25, %v10790_v55 }
 0xb4f   : > { %v4922_v62 = vadd.f32 %v4921_v45, %v10771_v29  ;;  %v4940_v17 = vpop.f32.mrf.mxu1  ;;  %v5123_v51 = vmax.f32 %v4901_v19, 0.0 }
 0xb50   : > { %v4941_v49 = vadd.f32 %v4940_v17, %v10774_v23  ;;  %6439 = vmatpush.bf16.msrb.mxu1 %v7966_v1  ;;  %v5126_v39 = vmax.f32 %v4958_v52, 0.0  ;;  %v8002_v17 = vld [vmem:[%s8660_s29 + $0x3a8] sm:$0xff] }
 0xb51   : > { %v5140_v31 = vmax.f32 %v4922_v62, 0.0  ;;  %6457 = vmatpush.bf16.msra.mxu2 %v7975_v36  ;;  %v7994_v62 = vld [vmem:[%s8660_s29 + $0x368] sm:$0xff] }
 0xb52   : > { %v5141_v26 = vmax.f32 %v4941_v49, 0.0  ;;  %v7987_v49 = vld [vmem:[%s8660_s29 + $0x330] sm:$0xff] }
 0xb53   : > { %v5188_v2 = vpack.c.bf16 %v5140_v31, %v5124_v18  ;;  %v8011_v31 = vld [vmem:[%s8660_s29 + $0x3f0] sm:$0xff] }
 0xb54   : > { %v5189_v15 = vpack.c.bf16 %v5141_v26, %v5125_v63  ;;  %v4902_v27 = vpop.f32.mrf.mxu3  ;;  %6440 = vmatpush.bf16.msrb.mxu1 %v7965_v48  ;;  %v10827_v26 = vld [vmem:[%s8650_s4 + $0x8] sm:$0xff] }
 0xb55   : > { %v4903_v54 = vadd.f32 %v4902_v27, %v10786_v37  ;;  %v4959_v24 = vpop.f32.mrf.mxu2  ;;  %6346 = vmatmul.bf16.vlgmr.msrb.gmra.mxu0 %v5188_v2  ;;  %6458 = vmatpush.bf16.msra.mxu2 %v7974_v21  ;;  %v7993_v2 = vld [vmem:[%s8660_s29 + $0x360] sm:$0xff]  ;;  %v10833_v43 = vperm.slane %v10827_v26, 1 }
 0xb56   : > { %v4960_v30 = vadd.f32 %v4959_v24, %v10790_v55  ;;  %6365 = vmatmul.bf16.vlgmr.msra.gmra.mxu1 %v5189_v15  ;;  %v4924_v40 = vpop.f32.mrf.mxu0  ;;  %6490 = vmatpush.bf16.msrb.mxu0 %v7996_v3  ;;  %v10836_v24 = vperm.slane %v10827_v26, 2 }
 0xb57   : > { %v5139_v16 = vmax.f32 %v4903_v54, 0.0  ;;  %v4943_v7 = vpop.f32.mrf.mxu1  ;;  %v4925_v5 = vadd.f32 %v4924_v40, %v10771_v29  ;;  %v7992_v40 = vld [vmem:[%s8660_s29 + $0x358] sm:$0xff] }
 0xb58   : > { %v5142_v47 = vmax.f32 %v4960_v30, 0.0  ;;  %v4944_v34 = vadd.f32 %v4943_v7, %v10774_v23  ;;  %6509 = vmatpush.bf16.msra.mxu1 %v8004_v9  ;;  %v8010_v30 = vld [vmem:[%s8660_s29 + $0x3e8] sm:$0xff]  ;;  %v7999_v9 = vld [vmem:[%s8660_s29 + $0x390] sm:$0xff] }
 0xb59   : > { %v5187_v60 = vpack.c.bf16 %v5139_v16, %v5123_v51  ;;  %v5156_v12 = vmax.f32 %v4925_v5, 0.0  ;;  %6459 = vmatpush.bf16.msra.mxu2 %v7973_v50  ;;  %v7985_v16 = vld [vmem:[%s8660_s29 + $0x320] sm:$0xff]  ;;  %v7984_v5 = vld [vmem:[%s8660_s29 + $0x318] sm:$0xff] }
 0xb5a   : > { %v5190_v4 = vpack.c.bf16 %v5142_v47, %v5126_v39  ;;  %6491 = vmatpush.bf16.msrb.mxu0 %v7995_v35  ;;  %v5157_v25 = vmax.f32 %v4944_v34, 0.0  ;;  %v8009_v39 = vld [vmem:[%s8660_s29 + $0x3e0] sm:$0xff]  ;;  %v8008_v35 = vld [vmem:[%s8660_s29 + $0x3d8] sm:$0xff] }
 0xb5b   : > { %6327 = vmatmul.bf16.vlgmr.msra.gmra.mxu3 %v5187_v60  ;;  %v7991_v60 = vld [vmem:[%s8660_s29 + $0x350] sm:$0xff] }
 0xb5c   : > { %6384 = vmatmul.bf16.vlgmr.msrb.gmra.mxu2 %v5190_v4  ;;  %v4905_v22 = vpop.f32.mrf.mxu3  ;;  %6510 = vmatpush.bf16.msra.mxu1 %v8003_v59  ;;  %v10847_v4 = vperm.slane %v10827_v26, 0 }
 0xb5d   : > { %v4962_v56 = vpop.f32.mrf.mxu2  ;;  %6471 = vmatpush.bf16.msra.mxu3 %v7988_v42  ;;  %6528 = vmatpush.bf16.msrb.mxu2 %v8012_v11  ;;  %v7990_v11 = vld [vmem:[%s8660_s29 + $0x348] sm:$0xff] }
 0xb5e   : > { %v4926_v33 = vpop.f32.mrf.mxu0  ;;  %6492 = vmatpush.bf16.msrb.mxu0 %v7994_v62 }
 0xb5f   : > { %v4927_v38 = vadd.f32 %v4926_v33, %v10771_v29  ;;  %v4945_v58 = vpop.f32.mrf.mxu1  ;;  %v4906_v29 = vadd.f32 %v4905_v22, %v10786_v37  ;;  %v10852_v22 = vperm.slane %v10827_v26, 3 }
 0xb60   : > { %v4946_v20 = vadd.f32 %v4945_v58, %v10774_v23  ;;  %v4963_v23 = vadd.f32 %v4962_v56, %v10790_v55  ;;  %6511 = vmatpush.bf16.msra.mxu1 %v8002_v17 }
 0xb61   : > { %v5172_v6 = vmax.f32 %v4927_v38, 0.0  ;;  %v5155_v52 = vmax.f32 %v4906_v29, 0.0  ;;  %6472 = vmatpush.bf16.msra.mxu3 %v7987_v49  ;;  %6529 = vmatpush.bf16.msrb.mxu2 %v8011_v31  ;;  %v8007_v29 = vld [vmem:[%s8660_s29 + $0x3d0] sm:$0xff]  ;;  %v7997_v49 = vld [vmem:[%s8660_s29 + $0x380] sm:$0xff]  ;;  %v7982_v31 = vld [vmem:[%s8660_s29 + $0x308] sm:$0xff] }
 0xb62   : > { %v5173_v53 = vmax.f32 %v4946_v20, 0.0  ;;  %v5158_v0 = vmax.f32 %v4963_v23, 0.0  ;;  %6493 = vmatpush.bf16.msrb.mxu0 %v7993_v2  ;;  %v8006_v2 = vld [vmem:[%s8660_s29 + $0x3c8] sm:$0xff] }
 0xb63   : > { %v5204_v44 = vpack.c.bf16 %v5172_v6, %v5156_v12  ;;  %v7998_v12 = vld [vmem:[%s8660_s29 + $0x388] sm:$0xff]  ;;  %v7983_v6 = vld [vmem:[%s8660_s29 + $0x310] sm:$0xff] }
 0xb64   : > { %v4907_v45 = vpop.f32.mrf.mxu3  ;;  %v5205_v41 = vpack.c.bf16 %v5173_v53, %v5157_v25 }
 0xb65   : > { %v4908_v46 = vadd.f32 %v4907_v45, %v10786_v37  ;;  %v4964_v18 = vpop.f32.mrf.mxu2  ;;  %6351 = vmatmul.bf16.gmra.mxu0 %v5204_v44  ;;  %v8001_v37 = vld [vmem:[%s8660_s29 + $0x3a0] sm:$0xff]  ;;  %6530 = vmatpush.bf16.msrb.mxu2 %v8010_v30 }
 0xb66   : > { %v4965_v63 = vadd.f32 %v4964_v18, %v10790_v55  ;;  %6370 = vmatmul.bf16.gmra.mxu1 %v5205_v41  ;;  %v4995_v19 = vpop.f32.mrf.mxu0  ;;  %v7986_v55 = vld [vmem:[%s8660_s29 + $0x328] sm:$0xff]  ;;  %6494 = vmatpush.bf16.msrb.mxu0 %v7992_v40  ;;  %v7989_v45 = vld [vmem:[%s8660_s29 + $0x340] sm:$0xff] }
 0xb67   : > { %v5171_v15 = vmax.f32 %v4908_v46, 0.0  ;;  %v5014_v27 = vpop.f32.mrf.mxu1  ;;  %6512 = vmatpush.bf16.msra.mxu1 %v8001_v37  ;;  %6473 = vmatpush.bf16.msra.mxu3 %v7986_v55  ;;  %v4996_v7 = vadd.f32 %v4995_v19, %v10833_v43 }
 0xb68   : > { %v5174_v1 = vmax.f32 %v4965_v63, 0.0  ;;  %v5015_v47 = vadd.f32 %v5014_v27, %v10836_v24 }
 0xb69   : > { %v5203_v54 = vpack.c.bf16 %v5171_v15, %v5155_v52  ;;  %v5128_v56 = vmax.f32 %v4996_v7, 0.0  ;;  %6531 = vmatpush.bf16.msrb.mxu2 %v8009_v39  ;;  %v7981_v15 = vld [vmem:[%s8660_s29 + $0x300] sm:$0xff] }
 0xb6a   : > { %v5206_v36 = vpack.c.bf16 %v5174_v1, %v5158_v0  ;;  %v5129_v34 = vmax.f32 %v5015_v47, 0.0  ;;  %6495 = vmatpush.bf16.msrb.mxu0 %v7991_v60  ;;  %v8005_v0 = vld [vmem:[%s8660_s29 + $0x3c0] sm:$0xff]  ;;  %s11102_s29 = scalar_lea.vmem %s11003_s17, %s8609_s7  ;;  %s11103_s7 = sld [smem:[#allocation3_spill]] }
 0xb6b   : > { %6332 = vmatmul.bf16.gmra.mxu3 %v5203_v54  ;;  %6513 = vmatpush.bf16.msra.mxu1 %v8000_v14 }
 0xb6c   : > { %6389 = vmatmul.bf16.gmra.mxu2 %v5206_v36  ;;  %v4976_v51 = vpop.f32.mrf.mxu3  ;;  %6474 = vmatpush.bf16.msra.mxu3 %v7985_v16 }
 0xb6d   : > { %v5033_v48 = vpop.f32.mrf.mxu2  ;;  %v4977_v59 = vadd.f32 %v4976_v51, %v10847_v4  ;;  %6532 = vmatpush.bf16.msrb.mxu2 %v8008_v35  ;;  %v4630_v35 = vperm.slane %v10827_v26, 5 }
 0xb6e   : > { %v4997_v32 = vpop.f32.mrf.mxu0  ;;  %v5034_v38 = vadd.f32 %v5033_v48, %v10852_v22  ;;  %6496 = vmatpush.bf16.msrb.mxu0 %v7990_v11 }
 0xb6f   : > { %v4998_v21 = vadd.f32 %v4997_v32, %v10833_v43  ;;  %v5016_v3 = vpop.f32.mrf.mxu1  ;;  %6514 = vmatpush.bf16.msra.mxu1 %v7999_v9  ;;  %v5127_v41 = vmax.f32 %v4977_v59, 0.0 }
 0xb70   : > { %v5017_v28 = vadd.f32 %v5016_v3, %v10836_v24  ;;  %6475 = vmatpush.bf16.msra.mxu3 %v7984_v5  ;;  %v5130_v46 = vmax.f32 %v5034_v38, 0.0  ;;  %p7821_p9 = scmp.ne.s32.totalorder %s11103_s7, 1 }
 0xb71   : > { %v5144_v50 = vmax.f32 %v4998_v21, 0.0  ;;  %6533 = vmatpush.bf16.msrb.mxu2 %v8007_v29  ;;  %s11104_s24 = sld [smem:[#allocation27_spill]] (!%p7821_p9) }
 0xb72   : > { %v5145_v33 = vmax.f32 %v5017_v28, 0.0  ;;  %6497 = vmatpush.bf16.msrb.mxu0 %v7989_v45  ;;  %s11105_s9 = sld [smem:[#allocation25_spill]] (!%p7821_p9) }
 0xb73   : > { %v5192_v42 = vpack.c.bf16 %v5144_v50, %v5128_v56  ;;  %6515 = vmatpush.bf16.msra.mxu1 %v7998_v12  ;;  %v4632_v12 = vperm.slane %v10827_v26, 7  ;;  %s11106_s27 = sld [smem:[#allocation26_spill]] (!%p7821_p9) }
 0xb74   : > { %v5193_v58 = vpack.c.bf16 %v5145_v33, %v5129_v34  ;;  %v4978_v20 = vpop.f32.mrf.mxu3  ;;  %6476 = vmatpush.bf16.msra.mxu3 %v7983_v6  ;;  %v4631_v33 = vperm.slane %v10827_v26, 6  ;;  %s11107_s4 = sld [smem:[#allocation28_spill]] (!%p7821_p9) }
 0xb75   : > { %v4979_v25 = vadd.f32 %v4978_v20, %v10847_v4  ;;  %v5035_v53 = vpop.f32.mrf.mxu2  ;;  %6422 = vmatmul.bf16.vlgmr.msra.gmra.mxu0 %v5192_v42  ;;  %6534 = vmatpush.bf16.msrb.mxu2 %v8006_v2 }
 0xb76   : > { %v5036_v44 = vadd.f32 %v5035_v53, %v10852_v22  ;;  %6441 = vmatmul.bf16.vlgmr.msrb.gmra.mxu1 %v5193_v58  ;;  %v5000_v23 = vpop.f32.mrf.mxu0  ;;  %v4629_v58 = vperm.slane %v10827_v26, 4 }
 0xb77   : > { %v5143_v62 = vmax.f32 %v4979_v25, 0.0  ;;  %v5019_v17 = vpop.f32.mrf.mxu1  ;;  %6516 = vmatpush.bf16.msra.mxu1 %v7997_v49  ;;  %v5001_v27 = vadd.f32 %v5000_v23, %v10833_v43 }
 0xb78   : > { %v5146_v18 = vmax.f32 %v5036_v44, 0.0  ;;  %6477 = vmatpush.bf16.msra.mxu3 %v7982_v31  ;;  %v5020_v1 = vadd.f32 %v5019_v17, %v10836_v24 }
 0xb79   : > { %v5191_v63 = vpack.c.bf16 %v5143_v62, %v5127_v41  ;;  %v5160_v40 = vmax.f32 %v5001_v27, 0.0  ;;  %6535 = vmatpush.bf16.msrb.mxu2 %v8005_v0 }
 0xb7a   : > { %v5194_v19 = vpack.c.bf16 %v5146_v18, %v5130_v46  ;;  %v5161_v51 = vmax.f32 %v5020_v1, 0.0 }
 0xb7b   : > { %6403 = vmatmul.bf16.vlgmr.msrb.gmra.mxu3 %v5191_v63 }
 0xb7c   : > { %6460 = vmatmul.bf16.vlgmr.msra.gmra.mxu2 %v5194_v19  ;;  %v4981_v52 = vpop.f32.mrf.mxu3  ;;  %6478 = vmatpush.bf16.msra.mxu3 %v7981_v15 }
 0xb7d   : > { %v5038_v37 = vpop.f32.mrf.mxu2  ;;  %v4982_v7 = vadd.f32 %v4981_v52, %v10847_v4 }
 0xb7e   : > { %v5002_v55 = vpop.f32.mrf.mxu0  ;;  %v5039_v39 = vadd.f32 %v5038_v37, %v10852_v22 }
 0xb7f   : > { %v5003_v54 = vadd.f32 %v5002_v55, %v10833_v43  ;;  %v5021_v36 = vpop.f32.mrf.mxu1  ;;  %v5159_v3 = vmax.f32 %v4982_v7, 0.0 }
 0xb80   : > { %v5022_v30 = vadd.f32 %v5021_v36, %v10836_v24  ;;  %v5162_v5 = vmax.f32 %v5039_v39, 0.0 }
 0xb81   : > { %v5176_v14 = vmax.f32 %v5003_v54, 0.0 }
 0xb82   : > { %v5177_v16 = vmax.f32 %v5022_v30, 0.0 }
 0xb83   : > { %v5208_v48 = vpack.c.bf16 %v5176_v14, %v5160_v40 }
 0xb84   : > { %v5209_v47 = vpack.c.bf16 %v5177_v16, %v5161_v51  ;;  %v4983_v32 = vpop.f32.mrf.mxu3 }
 0xb85   : > { %v4984_v60 = vadd.f32 %v4983_v32, %v10847_v4  ;;  %v5040_v21 = vpop.f32.mrf.mxu2  ;;  %6427 = vmatmul.bf16.gmra.mxu0 %v5208_v48 }
 0xb86   : > { %v5041_v43 = vadd.f32 %v5040_v21, %v10852_v22  ;;  %6446 = vmatmul.bf16.gmra.mxu1 %v5209_v47  ;;  %v5071_v24 = vpop.f32.mrf.mxu0 }
 0xb87   : > { %v5175_v9 = vmax.f32 %v4984_v60, 0.0  ;;  %v5090_v28 = vpop.f32.mrf.mxu1  ;;  %v5072_v59 = vadd.f32 %v5071_v24, %v4630_v35 }
 0xb88   : > { %v5178_v56 = vmax.f32 %v5041_v43, 0.0  ;;  %v5091_v38 = vadd.f32 %v5090_v28, %v4631_v33 }
 0xb89   : > { %v5207_v50 = vpack.c.bf16 %v5175_v9, %v5159_v3  ;;  %v5132_v25 = vmax.f32 %v5072_v59, 0.0 }
 0xb8a   : > { %v5210_v34 = vpack.c.bf16 %v5178_v56, %v5162_v5  ;;  %v5133_v29 = vmax.f32 %v5091_v38, 0.0 }
 0xb8b   : > { %6408 = vmatmul.bf16.gmra.mxu3 %v5207_v50  ;;  %v8291_v50 = vld [vmem:[%s11102_s29] ss:$0 sm:$0xff] }
 0xb8c   : > { %6465 = vmatmul.bf16.gmra.mxu2 %v5210_v34  ;;  %v5052_v4 = vpop.f32.mrf.mxu3 }
 0xb8d   : > { %v5109_v42 = vpop.f32.mrf.mxu2  ;;  %v5053_v23 = vadd.f32 %v5052_v4, %v4629_v58 }
 0xb8e   : > { %v5073_v22 = vpop.f32.mrf.mxu0  ;;  %v5110_v41 = vadd.f32 %v5109_v42, %v4632_v12 }
 0xb8f   : > { %v5074_v20 = vadd.f32 %v5073_v22, %v4630_v35  ;;  %v5092_v11 = vpop.f32.mrf.mxu1  ;;  %v5131_v63 = vmax.f32 %v5053_v23, 0.0 }
 0xb90   : > { %v5093_v6 = vadd.f32 %v5092_v11, %v4631_v33  ;;  %v5134_v26 = vmax.f32 %v5110_v41, 0.0 }
 0xb91   : > { %v5148_v53 = vmax.f32 %v5074_v20, 0.0 }
 0xb92   : > { %v5149_v44 = vmax.f32 %v5093_v6, 0.0 }
 0xb93   : > { %v5196_v45 = vpack.c.bf16 %v5148_v53, %v5132_v25 }
 0xb94   : > { %v5197_v62 = vpack.c.bf16 %v5149_v44, %v5133_v29  ;;  %v5054_v17 = vpop.f32.mrf.mxu3 }
 0xb95   : > { %v5055_v49 = vadd.f32 %v5054_v17, %v4629_v58  ;;  %v5111_v46 = vpop.f32.mrf.mxu2  ;;  %6498 = vmatmul.bf16.vlgmr.msrb.gmra.mxu0 %v5196_v45 }
 0xb96   : > { %v5112_v18 = vadd.f32 %v5111_v46, %v4632_v12  ;;  %6517 = vmatmul.bf16.vlgmr.msra.gmra.mxu1 %v5197_v62  ;;  %v5076_v31 = vpop.f32.mrf.mxu0 }
 0xb97   : > { %v5147_v19 = vmax.f32 %v5055_v49, 0.0  ;;  %v5095_v2 = vpop.f32.mrf.mxu1  ;;  %v5077_v0 = vadd.f32 %v5076_v31, %v4630_v35 }
 0xb98   : > { %v5150_v52 = vmax.f32 %v5112_v18, 0.0  ;;  %v5096_v55 = vadd.f32 %v5095_v2, %v4631_v33 }
 0xb99   : > { %v5195_v15 = vpack.c.bf16 %v5147_v19, %v5131_v63  ;;  %v5164_v14 = vmax.f32 %v5077_v0, 0.0 }
 0xb9a   : > { %v5198_v27 = vpack.c.bf16 %v5150_v52, %v5134_v26  ;;  %v5165_v16 = vmax.f32 %v5096_v55, 0.0 }
 0xb9b   : > { %6479 = vmatmul.bf16.vlgmr.msra.gmra.mxu3 %v5195_v15 }
 0xb9c   : > { %6536 = vmatmul.bf16.vlgmr.msrb.gmra.mxu2 %v5198_v27  ;;  %v5057_v37 = vpop.f32.mrf.mxu3 }
 0xb9d   : > { %v5114_v1 = vpop.f32.mrf.mxu2  ;;  %v5058_v48 = vadd.f32 %v5057_v37, %v4629_v58 }
 0xb9e   : > { %v5078_v54 = vpop.f32.mrf.mxu0  ;;  %v5115_v47 = vadd.f32 %v5114_v1, %v4632_v12 }
 0xb9f   : > { %v5079_v36 = vadd.f32 %v5078_v54, %v4630_v35  ;;  %v5097_v30 = vpop.f32.mrf.mxu1  ;;  %v5163_v3 = vmax.f32 %v5058_v48, 0.0 }
 0xba0   : > { %v5098_v40 = vadd.f32 %v5097_v30, %v4631_v33  ;;  %v5166_v28 = vmax.f32 %v5115_v47, 0.0 }
 0xba1   : > { %v5180_v51 = vmax.f32 %v5079_v36, 0.0 }
 0xba2   : > { %v5181_v7 = vmax.f32 %v5098_v40, 0.0 }
 0xba3   : > { %v5212_v39 = vpack.c.bf16 %v5180_v51, %v5164_v14 }
 0xba4   : > { %v5213_v32 = vpack.c.bf16 %v5181_v7, %v5165_v16  ;;  %v5059_v60 = vpop.f32.mrf.mxu3 }
 0xba5   : > { %v5060_v21 = vadd.f32 %v5059_v60, %v4629_v58  ;;  %v5116_v43 = vpop.f32.mrf.mxu2  ;;  %6503 = vmatmul.bf16.gmra.mxu0 %v5212_v39 }
 0xba6   : > { %v5117_v24 = vadd.f32 %v5116_v43, %v4632_v12  ;;  %6522 = vmatmul.bf16.gmra.mxu1 %v5213_v32  ;;  %v6271_v34 = vpop.f32.mrf.mxu0 }
 0xba7   : > { %v5179_v9 = vmax.f32 %v5060_v21, 0.0  ;;  %v6290_v59 = vpop.f32.mrf.mxu1 }
 0xba8   : > { %v5182_v5 = vmax.f32 %v5117_v24, 0.0 }
 0xba9   : > { %v5211_v56 = vpack.c.bf16 %v5179_v9, %v5163_v3 }
 0xbaa   : > { %v5214_v35 = vpack.c.bf16 %v5182_v5, %v5166_v28 }
 0xbab   : > { %6484 = vmatmul.bf16.gmra.mxu3 %v5211_v56 }
 0xbac   : > { %6541 = vmatmul.bf16.gmra.mxu2 %v5214_v35  ;;  %v6252_v33 = vpop.f32.mrf.mxu3 }
 0xbad   : > { %v6253_v4 = vadd.f32 %v8291_v50, %v6252_v33  ;;  %v6309_v38 = vpop.f32.mrf.mxu2 }
 0xbae   : > { %v6273_v12 = vpop.f32.mrf.mxu0 }
 0xbaf   : > { %v6272_v42 = vadd.f32 %v6271_v34, %v6253_v4  ;;  %v6292_v25 = vpop.f32.mrf.mxu1 }
 0xbb1   : > { %v6291_v22 = vadd.f32 %v6290_v59, %v6272_v42 }
 0xbb3   : > { %v6310_v58 = vadd.f32 %v6309_v38, %v6291_v22 }
 0xbb4   : > { %v6254_v20 = vpop.f32.mrf.mxu3 }
 0xbb5   : > { %v6255_v11 = vadd.f32 %v8291_v50, %v6254_v20  ;;  %v6311_v29 = vpop.f32.mrf.mxu2 }
 0xbb7   : > { %v6274_v6 = vadd.f32 %v6273_v12, %v6255_v11 }
 0xbb9   : > { %v6293_v53 = vadd.f32 %v6292_v25, %v6274_v6 }
 0xbbb   : > { %v6312_v44 = vadd.f32 %v6311_v29, %v6293_v53 }
 0xbc2   : > { %v6276_v23 = vpop.f32.mrf.mxu0 }
 0xbc3   : > { %v6295_v45 = vpop.f32.mrf.mxu1 }
 0xbca   : > { %v6278_v41 = vpop.f32.mrf.mxu0 }
 0xbcb   : > { %v6297_v62 = vpop.f32.mrf.mxu1 }
 0xbce   : > { %v6257_v17 = vpop.f32.mrf.mxu3 }
 0xbcf   : > { %v6258_v49 = vadd.f32 %v8291_v50, %v6257_v17  ;;  %v6314_v46 = vpop.f32.mrf.mxu2 }
 0xbd1   : > { %v6277_v18 = vadd.f32 %v6276_v23, %v6258_v49 }
 0xbd2   : > { %v6347_v31 = vpop.f32.mrf.mxu0 }
 0xbd3   : > { %v6296_v63 = vadd.f32 %v6295_v45, %v6277_v18  ;;  %v6366_v19 = vpop.f32.mrf.mxu1 }
 0xbd5   : > { %v6315_v2 = vadd.f32 %v6314_v46, %v6296_v63 }
 0xbd6   : > { %v6259_v26 = vpop.f32.mrf.mxu3 }
 0xbd7   : > { %v6260_v52 = vadd.f32 %v8291_v50, %v6259_v26  ;;  %v6316_v15 = vpop.f32.mrf.mxu2 }
 0xbd9   : > { %v6279_v27 = vadd.f32 %v6278_v41, %v6260_v52 }
 0xbda   : > { %v6349_v37 = vpop.f32.mrf.mxu0 }
 0xbdb   : > { %v6298_v0 = vadd.f32 %v6297_v62, %v6279_v27  ;;  %v6368_v1 = vpop.f32.mrf.mxu1 }
 0xbdd   : > { %v6317_v55 = vadd.f32 %v6316_v15, %v6298_v0 }
 0xbde   : > { %v6328_v54 = vpop.f32.mrf.mxu3 }
 0xbdf   : > { %v6385_v36 = vpop.f32.mrf.mxu2  ;;  %v6329_v28 = vadd.f32 %v6328_v54, %v6310_v58 }
 0xbe1   : > { %v6348_v50 = vadd.f32 %v6347_v31, %v6329_v28 }
 0xbe2   : > { %v6352_v30 = vpop.f32.mrf.mxu0 }
 0xbe3   : > { %v6371_v40 = vpop.f32.mrf.mxu1  ;;  %v6367_v33 = vadd.f32 %v6366_v19, %v6348_v50 }
 0xbe5   : > { %v6386_v42 = vadd.f32 %v6385_v36, %v6367_v33 }
 0xbe6   : > { %v6330_v14 = vpop.f32.mrf.mxu3 }
 0xbe7   : > { %v6387_v51 = vpop.f32.mrf.mxu2  ;;  %v6331_v4 = vadd.f32 %v6330_v14, %v6312_v44 }
 0xbe9   : > { %v6350_v38 = vadd.f32 %v6349_v37, %v6331_v4 }
 0xbea   : > { %v6354_v16 = vpop.f32.mrf.mxu0 }
 0xbeb   : > { %v6373_v7 = vpop.f32.mrf.mxu1  ;;  %v6369_v6 = vadd.f32 %v6368_v1, %v6350_v38 }
 0xbed   : > { %v6388_v23 = vadd.f32 %v6387_v51, %v6369_v6 }
 0xbee   : > { %v6333_v48 = vpop.f32.mrf.mxu3 }
 0xbef   : > { %v6390_v39 = vpop.f32.mrf.mxu2  ;;  %v6334_v25 = vadd.f32 %v6333_v48, %v6315_v2 }
 0xbf1   : > { %v6353_v58 = vadd.f32 %v6352_v30, %v6334_v25 }
 0xbf2   : > { %v6423_v47 = vpop.f32.mrf.mxu0 }
 0xbf3   : > { %v6442_v32 = vpop.f32.mrf.mxu1  ;;  %v6372_v49 = vadd.f32 %v6371_v40, %v6353_v58 }
 0xbf5   : > { %v6391_v19 = vadd.f32 %v6390_v39, %v6372_v49 }
 0xbf6   : > { %v6335_v60 = vpop.f32.mrf.mxu3 }
 0xbf7   : > { %v6392_v21 = vpop.f32.mrf.mxu2  ;;  %v6336_v46 = vadd.f32 %v6335_v60, %v6317_v55 }
 0xbf9   : > { %v6355_v26 = vadd.f32 %v6354_v16, %v6336_v46 }
 0xbfa   : > { %v6425_v43 = vpop.f32.mrf.mxu0 }
 0xbfb   : > { %v6444_v24 = vpop.f32.mrf.mxu1  ;;  %v6374_v0 = vadd.f32 %v6373_v7, %v6355_v26 }
 0xbfd   : > { %v6393_v55 = vadd.f32 %v6392_v21, %v6374_v0 }
 0xbfe   : > { %v6404_v3 = vpop.f32.mrf.mxu3 }
 0xbff   : > { %v6461_v9 = vpop.f32.mrf.mxu2  ;;  %v6405_v11 = vadd.f32 %v6404_v3, %v6386_v42 }
 0xc01   : > { %v6424_v53 = vadd.f32 %v6423_v47, %v6405_v11 }
 0xc02   : > { %v6428_v5 = vpop.f32.mrf.mxu0 }
 0xc03   : > { %v6447_v34 = vpop.f32.mrf.mxu1  ;;  %v6443_v41 = vadd.f32 %v6442_v32, %v6424_v53 }
 0xc05   : > { %v6462_v18 = vadd.f32 %v6461_v9, %v6443_v41 }
 0xc06   : > { %v6406_v56 = vpop.f32.mrf.mxu3 }
 0xc07   : > { %v6463_v35 = vpop.f32.mrf.mxu2  ;;  %v6407_v62 = vadd.f32 %v6406_v56, %v6388_v23 }
 0xc09   : > { %v6426_v31 = vadd.f32 %v6425_v43, %v6407_v62 }
 0xc0a   : > { %v6430_v20 = vpop.f32.mrf.mxu0 }
 0xc0b   : > { %v6449_v12 = vpop.f32.mrf.mxu1  ;;  %v6445_v27 = vadd.f32 %v6444_v24, %v6426_v31 }
 0xc0d   : > { %v6464_v36 = vadd.f32 %v6463_v35, %v6445_v27 }
 0xc0e   : > { %v6409_v59 = vpop.f32.mrf.mxu3 }
 0xc0f   : > { %v6466_v22 = vpop.f32.mrf.mxu2  ;;  %v6410_v2 = vadd.f32 %v6409_v59, %v6391_v19 }
 0xc11   : > { %v6429_v30 = vadd.f32 %v6428_v5, %v6410_v2 }
 0xc12   : > { %v6499_v17 = vpop.f32.mrf.mxu0 }
 0xc13   : > { %v6518_v44 = vpop.f32.mrf.mxu1  ;;  %v6448_v39 = vadd.f32 %v6447_v34, %v6429_v30 }
 0xc15   : > { %v6467_v7 = vadd.f32 %v6466_v22, %v6448_v39 }
 0xc16   : > { %v6411_v29 = vpop.f32.mrf.mxu3 }
 0xc17   : > { %v6468_v45 = vpop.f32.mrf.mxu2  ;;  %v6412_v16 = vadd.f32 %v6411_v29, %v6393_v55 }
 0xc19   : > { %v6431_v3 = vadd.f32 %v6430_v20, %v6412_v16 }
 0xc1a   : > { %v6501_v54 = vpop.f32.mrf.mxu0 }
 0xc1b   : > { %v6520_v51 = vpop.f32.mrf.mxu1  ;;  %v6450_v35 = vadd.f32 %v6449_v12, %v6431_v3  ;;  %v8292_v3 = vld [vmem:[%s940_s28] ss:$0 sm:$0xff] }
 0xc1d   : > { %v6469_v59 = vadd.f32 %v6468_v45, %v6450_v35 }
 0xc1e   : > { %v6480_v63 = vpop.f32.mrf.mxu3 }
 0xc1f   : > { %v6481_v52 = vadd.f32 %v6480_v63, %v6462_v18  ;;  %v6537_v15 = vpop.f32.mrf.mxu2 }
 0xc21   : > { %v6500_v37 = vadd.f32 %v6499_v17, %v6481_v52 }
 0xc22   : > { %v6504_v28 = vpop.f32.mrf.mxu0 }
 0xc23   : > { %v6519_v1 = vadd.f32 %v6518_v44, %v6500_v37  ;;  %v6523_v21 = vpop.f32.mrf.mxu1 }
 0xc25   : > { %v6538_v14 = vadd.f32 %v6537_v15, %v6519_v1 }
 0xc26   : > { %v6482_v40 = vpop.f32.mrf.mxu3 }
 0xc27   : > { %v6483_v48 = vadd.f32 %v6482_v40, %v6464_v36  ;;  %v6547_v47 = vadd.f32 %v6538_v14, %v10524_v57  ;;  %v6539_v32 = vpop.f32.mrf.mxu2 }
 0xc29   : > { %v6502_v60 = vadd.f32 %v6501_v54, %v6483_v48  ;;  %v6553_v43 = vsel %vm1550_vm7, %v6547_v47, 0.0 }
 0xc2a   : > { %6554 = vadd.xlane.f32.xlu0 %v6553_v43  ;;  %v6506_v20 = vpop.f32.mrf.mxu0 }
 0xc2b   : > { %v6521_v24 = vadd.f32 %v6520_v51, %v6502_v60  ;;  %v6525_v53 = vpop.f32.mrf.mxu1 }
 0xc2d   : > { %v6540_v9 = vadd.f32 %v6539_v32, %v6521_v24 }
 0xc2e   : > { %v6485_v5 = vpop.f32.mrf.mxu3 }
 0xc2f   : > { %v6486_v56 = vadd.f32 %v6485_v5, %v6467_v7  ;;  %v6548_v50 = vadd.f32 %v6540_v9, %v10527_v10  ;;  %v6542_v34 = vpop.f32.mrf.mxu2  ;;  %v8293_v5 = vld [vmem:[%s943_s20] ss:$0 sm:$0xff] }
 0xc31   : > { %v6505_v33 = vadd.f32 %v6504_v28, %v6486_v56  ;;  %v6556_v57 = vsel %vm1550_vm7, %v6548_v50, 0.0 }
 0xc32   : > { %6557 = vadd.xlane.f32.xlu2 %v6556_v57 }
 0xc33   : > { %v6524_v4 = vadd.f32 %v6523_v21, %v6505_v33 }
 0xc35   : > { %v6543_v42 = vadd.f32 %v6542_v34, %v6524_v4 }
 0xc36   : > { %v6487_v38 = vpop.f32.mrf.mxu3 }
 0xc37   : > { %v6488_v11 = vadd.f32 %v6487_v38, %v6469_v59  ;;  %v6549_v22 = vadd.f32 %v6543_v42, %v10568_v61  ;;  %v6544_v12 = vpop.f32.mrf.mxu2 }
 0xc39   : > { %v6507_v6 = vadd.f32 %v6506_v20, %v6488_v11  ;;  %v6559_v25 = vsel %vm1550_vm7, %v6549_v22, 0.0 }
 0xc3a   : > { %6560 = vadd.xlane.f32.xlu1 %v6559_v25 }
 0xc3b   : > { %v6526_v10 = vadd.f32 %v6525_v53, %v6507_v6 }
 0xc3d   : > { %v6545_v29 = vadd.f32 %v6544_v12, %v6526_v10 }
 0xc3f   : > { %v6550_v23 = vadd.f32 %v6545_v29, %v10571_v8 }
 0xc41   : > { %v6562_v58 = vsel %vm1550_vm7, %v6550_v23, 0.0 }
 0xc42   : > { %6563 = vadd.xlane.f32.xlu0 %v6562_v58 }
 0xc9d   : > { %v6555_v45 = vpop.xlane.xlu0 %6554 }
 0xc9e   : > { %v6565_v41 = vmul.f32 %v6555_v45, %v10461_v13 }
 0xca0   : > { %v6569_v62 = vsub.f32 %v6547_v47, %v6565_v41 }
 0xca2   : > { %v6573_v17 = vmul.f32 %v6569_v62, %v6569_v62 }
 0xca4   : > { %v6577_v61 = vsel %vm1550_vm7, %v6573_v17, 0.0 }
 0xca5   : > { %v6558_v49 = vpop.xlane.xlu2 %6557  ;;  %6578 = vadd.xlane.f32.xlu2 %v6577_v61 }
 0xca6   : > { %v6566_v46 = vmul.f32 %v6558_v49, %v10461_v13 }
 0xca8   : > { %v6570_v44 = vsub.f32 %v6548_v50, %v6566_v46 }
 0xcaa   : > { %v6574_v18 = vmul.f32 %v6570_v44, %v6570_v44 }
 0xcac   : > { %v6580_v31 = vsel %vm1550_vm7, %v6574_v18, 0.0 }
 0xcad   : > { %v6561_v63 = vpop.xlane.xlu1 %6560  ;;  %6581 = vadd.xlane.f32.xlu1 %v6580_v31 }
 0xcae   : > { %v6567_v8 = vmul.f32 %v6561_v63, %v10461_v13 }
 0xcb0   : > { %v10901_v19 = vsub.f32 %v6549_v22, %v6567_v8 }
 0xcb2   : > { %v6575_v26 = vmul.f32 %v10901_v19, %v10901_v19 }
 0xcb4   : > { %v6583_v52 = vsel %vm1550_vm7, %v6575_v26, 0.0 }
 0xcb5   : > { %6584 = vadd.xlane.f32.xlu0 %v6583_v52  ;;  %v6564_v15 = vpop.xlane.xlu0 %6563 }
 0xcb6   : > { %v6568_v27 = vmul.f32 %v6564_v15, %v10461_v13 }
 0xcb8   : > { %v10907_v2 = vsub.f32 %v6550_v23, %v6568_v27 }
 0xcba   : > { %v6576_v37 = vmul.f32 %v10907_v2, %v10907_v2 }
 0xcbc   : > { %v6586_v0 = vsel %vm1550_vm7, %v6576_v37, 0.0 }
 0xcbd   : > { %6587 = vadd.xlane.f32.xlu2 %v6586_v0 }
 0xd18   : > { %v6579_v1 = vpop.xlane.xlu2 %6578 }
 0xd19   : > { %v6589_v54 = vmul.f32 %v6579_v1, %v10461_v13 }
 0xd1b   : > { %v6593_v36 = vadd.f32 1e-05, %v6589_v54 }
 0xd1d   : > { %8368 = vrsqrt.f32 %v6593_v36  ;;  %vm6603_vm12 = vweird.f32 %v6593_v36 }
 0xd20   : > { %v6582_v30 = vpop.xlane.xlu1 %6581 }
 0xd21   : > { %v6590_v14 = vmul.f32 %v6582_v30, %v10461_v13 }
 0xd23   : > { %v8369_v51 = vpop.eup %8368  ;;  %v6594_v40 = vadd.f32 1e-05, %v6590_v14 }
 0xd24   : > { %v6598_v55 = vmul.f32 %v8369_v51, %v6593_v36  ;;  %vm6604_vm11 = vweird.f32 %v8369_v51 }
 0xd25   : > { %8370 = vrsqrt.f32 %v6594_v40  ;;  %vm6605_vm13 = vmor %vm6603_vm12, %vm6604_vm11  ;;  %vm6613_vm15 = vweird.f32 %v6594_v40 }
 0xd26   : > { %v6599_v48 = vmul.f32 %v8369_v51, %v6598_v55 }
 0xd28   : > { %v6600_v47 = vmul.f32 0.5, %v6599_v48  ;;  %v6585_v32 = vpop.xlane.xlu0 %6584 }
 0xd29   : > { %v6591_v39 = vmul.f32 %v6585_v32, %v10461_v13 }
 0xd2a   : > { %v6601_v16 = vsub.f32 1.5, %v6600_v47 }
 0xd2b   : > { %v8371_v60 = vpop.eup %8370  ;;  %v6595_v43 = vadd.f32 1e-05, %v6591_v39 }
 0xd2c   : > { %v6602_v24 = vmul.f32 %v8369_v51, %v6601_v16  ;;  %v6608_v7 = vmul.f32 %v8371_v60, %v6594_v40  ;;  %vm6614_vm14 = vweird.f32 %v8371_v60 }
 0xd2d   : > { %8372 = vrsqrt.f32 %v6595_v43  ;;  %vm6615_vm0 = vmor %vm6613_vm15, %vm6614_vm14  ;;  %vm6623_vm2 = vweird.f32 %v6595_v43 }
 0xd2e   : > { %v6606_v9 = vsel %vm6605_vm13, %v8369_v51, %v6602_v24  ;;  %v6609_v28 = vmul.f32 %v8371_v60, %v6608_v7 }
 0xd2f   : > { %v6637_v56 = vmul.f32 %v6606_v9, %v6569_v62 }
 0xd30   : > { %v6610_v50 = vmul.f32 0.5, %v6609_v28  ;;  %v6588_v21 = vpop.xlane.xlu2 %6587 }
 0xd31   : > { %v6644_v35 = vmul.f32 %v8292_v3, %v6637_v56  ;;  %v6592_v33 = vmul.f32 %v6588_v21, %v10461_v13 }
 0xd32   : > { %v6611_v57 = vsub.f32 1.5, %v6610_v50 }
 0xd33   : > { %v8373_v34 = vpop.eup %8372  ;;  %v10926_v4 = vadd.f32 %v8293_v5, %v6644_v35  ;;  %v6596_v59 = vadd.f32 1e-05, %v6592_v33 }
 0xd34   : > { %v6612_v42 = vmul.f32 %v8371_v60, %v6611_v57  ;;  %v6618_v38 = vmul.f32 %v8373_v34, %v6595_v43  ;;  %vm6624_vm1 = vweird.f32 %v8373_v34 }
 0xd35   : > { %6655 = vst.msk [vmem:[#allocation2] sm:$0xff] %vm1550_vm7, %v10926_v4  ;;  %8374 = vrsqrt.f32 %v6596_v59  ;;  %vm6625_vm3 = vmor %vm6623_vm2, %vm6624_vm1  ;;  %vm6633_vm6 = vweird.f32 %v6596_v59 }
 0xd36   : > { %v6616_v11 = vsel %vm6615_vm0, %v8371_v60, %v6612_v42  ;;  %v6619_v22 = vmul.f32 %v8373_v34, %v6618_v38 }
 0xd37   : > { %v6638_v20 = vmul.f32 %v6616_v11, %v6570_v44 }
 0xd38   : > { %v6620_v6 = vmul.f32 0.5, %v6619_v22 }
 0xd39   : > { %v6645_v25 = vmul.f32 %v8292_v3, %v6638_v20 }
 0xd3a   : > { %v6621_v53 = vsub.f32 1.5, %v6620_v6 }
 0xd3b   : > { %v8375_v10 = vpop.eup %8374  ;;  %v6652_v12 = vadd.f32 %v8293_v5, %v6645_v25 }
 0xd3c   : > { %v6622_v29 = vmul.f32 %v8373_v34, %v6621_v53  ;;  %v6628_v23 = vmul.f32 %v8375_v10, %v6596_v59  ;;  %vm6634_vm5 = vweird.f32 %v8375_v10 }
 0xd3d   : > { %6656 = vst.msk [vmem:[#allocation2 + $0x8] sm:$0xff] %vm1550_vm7, %v6652_v12  ;;  %vm6635_vm4 = vmor %vm6633_vm6, %vm6634_vm5 }
 0xd3e   : > { %v6626_v58 = vsel %vm6625_vm3, %v8373_v34, %v6622_v29  ;;  %v6629_v45 = vmul.f32 %v8375_v10, %v6628_v23 }
 0xd3f   : > { %v6639_v41 = vmul.f32 %v6626_v58, %v10901_v19 }
 0xd40   : > { %v6630_v62 = vmul.f32 0.5, %v6629_v45 }
 0xd41   : > { %v6646_v17 = vmul.f32 %v8292_v3, %v6639_v41 }
 0xd42   : > { %v6631_v61 = vsub.f32 1.5, %v6630_v62 }
 0xd43   : > { %v6653_v49 = vadd.f32 %v8293_v5, %v6646_v17 }
 0xd44   : > { %v6632_v46 = vmul.f32 %v8375_v10, %v6631_v61 }
 0xd45   : > { %6657 = vst.msk [vmem:[#allocation2 + $0x10] sm:$0xff] %vm1550_vm7, %v6653_v49 }
 0xd46   : > { %v6636_v44 = vsel %vm6635_vm4, %v8375_v10, %v6632_v46 }
 0xd47   : > { %v6640_v18 = vmul.f32 %v6636_v44, %v10907_v2 }
 0xd49   : > { %v6647_v31 = vmul.f32 %v8292_v3, %v6640_v18  ;;  %6662 = sbr.rel (%p7821_p9) target bundleno = 4088 (0xff8), region = 124 }
 0xd4b   : > { %v6654_v63 = vadd.f32 %v8293_v5, %v6647_v31 }
 0xd4d   : > { %6658 = vst.msk [vmem:[#allocation2 + $0x18] sm:$0xff] %vm1550_vm7, %v6654_v63 }
 0xd4e   : > { %v6669_v8 = vrot.slane %v6652_v12, 7  ;;  %v6670_v19 = vrot.slane %v6653_v49, 6  ;;  %vm6671_vm8 = vcmask 1041409   ;;  %v6673_v26 = vrot.slane %v6654_v63, 5  ;;  %v8014_v50 = vld [vmem:[%s11104_s24 + $0x8] sm:$0xff]  ;;  %v8013_v35 = vld [vmem:[%s11104_s24] sm:$0xff] }
 0xd4f   : > { %vm6674_vm10 = vcmask 1042434   ;;  %vm6682_vm11 = vcmask 256000   ;;  %vm6678_vm12 = vcmask 261127   ;;  %6823 = vmatpush.bf16.msra.mxu0 %v8014_v50  ;;  %v8381_v62 = vld [vmem:[%s11106_s27] ss:$0 sm:$0xff]  ;;  %vm6799_vm3 = vcmask 1043459  }
 0xd50   : > { %v6672_v52 = vsel %vm6671_vm8, %v6670_v19, %v6669_v8  ;;  %v6679_v2 = vsel %vm6678_vm12, %v10926_v4, 0.0 }
 0xd51   : > { %v6675_v15 = vsel %vm6674_vm10, %v6673_v26, %v6672_v52 }
 0xd52   : > { %v6683_v27 = vsel %vm6682_vm11, %v6675_v15, 0.0 }
 0xd53   : > { %6684 = vadd.xlane.f32.xlu0 %v6683_v27  ;;  %6824 = vmatpush.bf16.msra.mxu0 %v8013_v35 }
 0xd5b   : > { %6680 = vadd.xlane.f32.xlu0 %v6679_v2 }
 0xdc6   : > { %v6685_v37 = vpop.xlane.xlu0 %6684 }
 0xdc7   : > { %v6687_v0 = vmul.f32 %v6685_v37, %v10461_v13 }
 0xdc9   : > { %v6690_v1 = vrot.slane %v6687_v0, 1  ;;  %v6691_v54 = vrot.slane %v6687_v0, 2  ;;  %v6692_v36 = vrot.slane %v6687_v0, 3 }
 0xdcb   : > { %v6698_v30 = vsub.f32 %v6652_v12, %v6690_v1  ;;  %v6699_v14 = vsub.f32 %v6653_v49, %v6691_v54  ;;  %v6700_v51 = vsub.f32 %v6654_v63, %v6692_v36 }
 0xdcd   : > { %v6702_v40 = vmul.f32 %v6698_v30, %v6698_v30  ;;  %v6703_v55 = vmul.f32 %v6699_v14, %v6699_v14  ;;  %v6704_v48 = vmul.f32 %v6700_v51, %v6700_v51 }
 0xdce   : > { %v6681_v47 = vpop.xlane.xlu0 %6680 }
 0xdcf   : > { %v6709_v32 = vrot.slane %v6702_v40, 7  ;;  %v6710_v39 = vrot.slane %v6703_v55, 6  ;;  %v6712_v16 = vrot.slane %v6704_v48, 5  ;;  %v6686_v60 = vmul.f32 %v6681_v47, %v10461_v13 }
 0xdd1   : > { %v6711_v43 = vsel %vm6671_vm8, %v6710_v39, %v6709_v32  ;;  %v6697_v24 = vsub.f32 %v10926_v4, %v6686_v60  ;;  %v8382_v39 = vld [vmem:[%s11107_s4] ss:$0 sm:$0xff] }
 0xdd2   : > { %v6713_v7 = vsel %vm6674_vm10, %v6712_v16, %v6711_v43 }
 0xdd3   : > { %v6719_v3 = vsel %vm6682_vm11, %v6713_v7, 0.0  ;;  %v6701_v9 = vmul.f32 %v6697_v24, %v6697_v24 }
 0xdd4   : > { %6720 = vadd.xlane.f32.xlu1 %v6719_v3 }
 0xdd5   : > { %v6716_v28 = vsel %vm6678_vm12, %v6701_v9, 0.0 }
 0xddc   : > { %6717 = vadd.xlane.f32.xlu1 %v6716_v28 }
 0xe47   : > { %v6721_v5 = vpop.xlane.xlu1 %6720 }
 0xe48   : > { %v6723_v56 = vmul.f32 %v6721_v5, %v10461_v13 }
 0xe4a   : > { %v6725_v21 = vadd.f32 1e-05, %v6723_v56 }
 0xe4c   : > { %8383 = vrsqrt.f32 %v6725_v21  ;;  %vm6742_vm14 = vweird.f32 %v6725_v21 }
 0xe4f   : > { %v6718_v33 = vpop.xlane.xlu1 %6717 }
 0xe50   : > { %v6722_v57 = vmul.f32 %v6718_v33, %v10461_v13  ;;  %v8380_v13 = vld [vmem:[%s11105_s9] ss:$0 sm:$0xff] }
 0xe52   : > { %v8384_v34 = vpop.eup %8383  ;;  %v6724_v4 = vadd.f32 1e-05, %v6722_v57 }
 0xe53   : > { %v6737_v59 = vmul.f32 %v8384_v34, %v6725_v21  ;;  %vm6743_vm13 = vweird.f32 %v8384_v34 }
 0xe54   : > { %8385 = vrsqrt.f32 %v6724_v4  ;;  %vm6744_vm15 = vmor %vm6742_vm14, %vm6743_vm13  ;;  %vm6732_vm1 = vweird.f32 %v6724_v4 }
 0xe55   : > { %v6738_v42 = vmul.f32 %v8384_v34, %v6737_v59 }
 0xe57   : > { %v6739_v38 = vmul.f32 0.5, %v6738_v42 }
 0xe59   : > { %v6740_v11 = vsub.f32 1.5, %v6739_v38 }
 0xe5a   : > { %v8386_v22 = vpop.eup %8385 }
 0xe5b   : > { %v6741_v20 = vmul.f32 %v8384_v34, %v6740_v11  ;;  %v6727_v6 = vmul.f32 %v8386_v22, %v6724_v4  ;;  %vm6733_vm0 = vweird.f32 %v8386_v22 }
 0xe5c   : > { %vm6734_vm2 = vmor %vm6732_vm1, %vm6733_vm0 }
 0xe5d   : > { %v6745_v25 = vsel %vm6744_vm15, %v8384_v34, %v6741_v20  ;;  %v6728_v53 = vmul.f32 %v8386_v22, %v6727_v6 }
 0xe5e   : > { %v6748_v10 = vrot.slane %v6745_v25, 1  ;;  %v6749_v12 = vrot.slane %v6745_v25, 2  ;;  %v6750_v29 = vrot.slane %v6745_v25, 3 }
 0xe5f   : > { %v6729_v23 = vmul.f32 0.5, %v6728_v53 }
 0xe60   : > { %v6756_v58 = vmul.f32 %v6748_v10, %v6698_v30  ;;  %v6757_v45 = vmul.f32 %v6749_v12, %v6699_v14  ;;  %v6758_v41 = vmul.f32 %v6750_v29, %v6700_v51 }
 0xe61   : > { %v6730_v17 = vsub.f32 1.5, %v6729_v23 }
 0xe62   : > { %v6763_v61 = vmul.f32 %v8380_v13, %v6756_v58  ;;  %v6764_v49 = vmul.f32 %v8380_v13, %v6757_v45  ;;  %v6765_v46 = vmul.f32 %v8380_v13, %v6758_v41 }
 0xe63   : > { %v6731_v44 = vmul.f32 %v8386_v22, %v6730_v17 }
 0xe64   : > { %v6770_v18 = vadd.f32 %v8381_v62, %v6763_v61  ;;  %v6771_v63 = vadd.f32 %v8381_v62, %v6764_v49  ;;  %v6772_v19 = vadd.f32 %v8381_v62, %v6765_v46 }
 0xe65   : > { %v6735_v31 = vsel %vm6734_vm2, %v8386_v22, %v6731_v44 }
 0xe66   : > { %v6755_v8 = vmul.f32 %v6735_v31, %v6697_v24  ;;  %v6774_v52 = vpack.c.bf16 %v6770_v18, %v6770_v18  ;;  %v6775_v15 = vpack.c.bf16 %v6771_v63, %v6771_v63  ;;  %v6776_v2 = vpack.c.bf16 %v6772_v19, %v6772_v19 }
 0xe68   : > { %v6762_v26 = vmul.f32 %v8380_v13, %v6755_v8  ;;  %v6790_v0 = vunpack.c.l.b16 %v6774_v52  ;;  %v6791_v1 = vunpack.c.l.b16 %v6775_v15  ;;  %v6792_v36 = vunpack.c.l.b16 %v6776_v2 }
 0xe6a   : > { %v6769_v27 = vadd.f32 %v8381_v62, %v6762_v26  ;;  %v6794_v14 = vrot.slane %v6790_v0, 6  ;;  %v6796_v51 = vrot.slane %v6791_v1, 5  ;;  %v6798_v55 = vrot.slane %v6792_v36, 4 }
 0xe6c   : > { %v6773_v37 = vpack.c.bf16 %v6769_v27, %v6769_v27 }
 0xe6e   : > { %v6789_v54 = vunpack.c.l.b16 %v6773_v37 }
 0xe70   : > { %v6793_v30 = vrot.slane %v6789_v54, 7 }
 0xe72   : > { %v6795_v40 = vsel %vm6671_vm8, %v6794_v14, %v6793_v30 }
 0xe73   : > { %v6797_v48 = vsel %vm6674_vm10, %v6796_v51, %v6795_v40 }
 0xe74   : > { %v6800_v47 = vsel %vm6799_vm3, %v6798_v55, %v6797_v48 }
 0xe75   : > { %v6801_v32 = vpack.c.b16 %v6800_v47, %v6800_v47 }
 0xe77   : > { %7830 = vmatmul.msk.bf16.vlgmr.msra.gmra.mxu0 %vm1550_vm7, %v6801_v32 }
 0xef4   : > { %v6826_v16 = vpop.f32.mrf.mxu0 }
 0xef5   : > { %v6827_v60 = vadd.f32 %v8382_v39, %v6826_v16 }
 0xef7   : > { %v6830_v43 = vsel %vm3613_vm9, %v6827_v60, -inf }
 0xef8   : > { %6831 = vmax.xlane.f32.xlu2 %v6830_v43 }
 0xefc   : > { %v6828_v24 = vpop.f32.mrf.mxu0 }
 0xf6b   : > { %v6832_v7 = vpop.xlane.xlu2 %6831 }
 0xf6c   : > { %v6833_v3 = vsub.f32 %v6827_v60, %v6832_v7 }
 0xf6e   : > { %v6834_v9 = vmul.f32 1.442695, %v6833_v3 }
 0xf70   : > { %8387 = vpow2.f32 %v6834_v9 }
 0xf76   : > { %v8388_v28 = vpop.eup %8387 }
 0xf77   : > { %v6836_v5 = vsel %vm3613_vm9, %v8388_v28, 0.0 }
 0xf78   : > { %6837 = vadd.xlane.f32.xlu2 %v6836_v5 }
 0xfeb   : > { %v6838_v56 = vpop.xlane.xlu2 %6837 }
 0xfec   : > { %8389 = vlog2.f32 %v6838_v56 }
 0xff2   : > { %v8390_v50 = vpop.eup %8389 }
 0xff3   : > { %v6840_v21 = vmul.f32 0.6931472, %v8390_v50 }
 0xff5   : > { %v6841_v35 = vsub.f32 %v6833_v3, %v6840_v21 }
 0xff7   : > { %6842 = vst [vmem:[%s8676_s25] sm:$0xf] %v6841_v35 }
 0xff8 PF: > { %s11108_s29 = sld [smem:[#allocation6_spill]] }
 0xff9   : > { %s11109_s5 = sld [smem:[#allocation4_spill]] }
 0xffa   : > { %s11110_s26 = sld [smem:[#allocation5_spill]] }
 0xffb   : > { %s11111_s27 = sld [smem:[#allocation7_spill]] }
 0xffc   : > { %s11112_s28 = sld [smem:[#allocation8_spill]] }
 0xffe   : > { %s34_s6 = sadd.s32 1, %s11108_s29  }
 0xfff   : > { %p31_p10 = scmp.ge.s32.totalorder %s34_s6, 6  }
0x1001   :  { %33 = sbr.rel (!%p31_p10) target bundleno = 17 (0x11), region = 190 }

</bundles_post_ra>
